<compile_context>
chip_gen: v7x
topology: tpu7x:2x2x1
jax: 0.10.0
libtpu: 0.0.40
codegen_flags: <defaults>
</compile_context>

<pallas_src>
import jax
import jax.numpy as jnp
from jax.experimental import pallas as pl
from jax.experimental.pallas import tpu as pltpu

BN_EPS = 1e-5


# ---------------------------------------------------------------------------
# Pallas kernels (everything in transposed, lane-dense (C, R) layout)
# ---------------------------------------------------------------------------
def _bn_scale_shift(y, gamma, beta, inv_n):
    """Folded training-mode BN: returns per-channel (scale, shift), each (C, 1)."""
    s1 = jnp.sum(y, axis=-1, keepdims=True) * inv_n          # mean
    s2 = jnp.sum(y * y, axis=-1, keepdims=True) * inv_n      # E[y^2]
    scale = gamma * jax.lax.rsqrt(s2 - s1 * s1 + BN_EPS)
    shift = beta - s1 * scale
    return scale, shift


def _conv_bn_relu_bn_kernel(p_ref, w_ref, prm_ref, o_ref):
    """bn_outer(relu(bn_inner(conv(x))))  — stage `bn1(conv1(x))`.

    p: (K, R) bf16 patches, w: (C, K) bf16, prm: (C, 8) f32, o: (C, R) f32.
    prm columns: [bias, gamma_in, beta_in, gamma_out, beta_out, 0, 0, 0].
    """
    prm = prm_ref[...]
    bias, g_a, b_a, g_b, b_b = (prm[:, i:i + 1] for i in range(5))
    y = jnp.dot(w_ref[...], p_ref[...], preferred_element_type=jnp.float32) + bias
    inv_n = 1.0 / y.shape[-1]
    s, t = _bn_scale_shift(y, g_a, b_a, inv_n)
    z = jnp.maximum(y * s + t, 0.0)
    s2, t2 = _bn_scale_shift(z, g_b, b_b, inv_n)
    o_ref[...] = z * s2 + t2


def _conv_bn_relu_pool_bn_kernel(p_ref, w_ref, prm_ref, o_ref):
    """bn_outer(maxpool2(relu(bn_inner(conv(x)))))  — stages bn2/bn3/bn4.

    p: (4, K, Rp) bf16, columns of chunk q hold the pre-pool pixels sitting at
    2x2-window position q, so MaxPool2d(2) is an elementwise max over q.
    w: (C, K) bf16, prm: (C, 8) f32, o: (C, Rp) f32.
    """
    w = w_ref[...]
    prm = prm_ref[...]
    bias, g_a, b_a, g_b, b_b = (prm[:, i:i + 1] for i in range(5))

    ys = [jnp.dot(w, p_ref[q], preferred_element_type=jnp.float32) + bias
          for q in range(4)]

    rp = o_ref.shape[-1]
    inv_n = 1.0 / (4 * rp)                      # inner BN stats over pre-pool tensor
    s1 = sum(jnp.sum(y, axis=-1, keepdims=True) for y in ys) * inv_n
    s2 = sum(jnp.sum(y * y, axis=-1, keepdims=True) for y in ys) * inv_n
    scale = g_a * jax.lax.rsqrt(s2 - s1 * s1 + BN_EPS)
    shift = b_a - s1 * scale

    zs = [jnp.maximum(y * scale + shift, 0.0) for y in ys]
    z = jnp.maximum(jnp.maximum(zs[0], zs[1]), jnp.maximum(zs[2], zs[3]))

    s2o, t2o = _bn_scale_shift(z, g_b, b_b, 1.0 / rp)   # outer BN on pooled tensor
    o_ref[...] = z * s2o + t2o


def _conv_bn_relu_residual_kernel(p_ref, w_ref, prm_ref, x_ref, o_ref):
    """relu(relu(bn(conv(x))) + x)  — residual stages res1/res2/res3.

    p: (K, R) bf16, w: (C, K) bf16, prm: (C, 8) f32, x: (C, R) f32 residual.
    """
    prm = prm_ref[...]
    bias, g, b = (prm[:, i:i + 1] for i in range(3))
    y = jnp.dot(w_ref[...], p_ref[...], preferred_element_type=jnp.float32) + bias
    s, t = _bn_scale_shift(y, g, b, 1.0 / y.shape[-1])
    z = jnp.maximum(y * s + t, 0.0)
    o_ref[...] = jnp.maximum(z + x_ref[...], 0.0)


# ---------------------------------------------------------------------------
# pallas_call wrappers (each stage fits whole in VMEM at these shapes)
# ---------------------------------------------------------------------------
def _vmem():
    return pl.BlockSpec(memory_space=pltpu.MemorySpace.VMEM)


def conv_bn_relu_bn(p, w, prm):
    c, r = w.shape[0], p.shape[-1]
    return pl.pallas_call(
        _conv_bn_relu_bn_kernel,
        out_shape=jax.ShapeDtypeStruct((c, r), jnp.float32),
        in_specs=[_vmem()] * 3,
        out_specs=_vmem(),
    )(p, w, prm)


def conv_bn_relu_pool_bn(p, w, prm):
    c, rp = w.shape[0], p.shape[-1]
    return pl.pallas_call(
        _conv_bn_relu_pool_bn_kernel,
        out_shape=jax.ShapeDtypeStruct((c, rp), jnp.float32),
        in_specs=[_vmem()] * 3,
        out_specs=_vmem(),
    )(p, w, prm)


def conv_bn_relu_residual(p, w, prm, x_res):
    c, r = w.shape[0], p.shape[-1]
    return pl.pallas_call(
        _conv_bn_relu_residual_kernel,
        out_shape=jax.ShapeDtypeStruct((c, r), jnp.float32),
        in_specs=[_vmem()] * 4,
        out_specs=_vmem(),
    )(p, w, prm, x_res)


# ---------------------------------------------------------------------------
# JAX glue: transposed im2col (pure layout) for 3x3 / pad=1 / stride=1 convs
# ---------------------------------------------------------------------------
def _im2col_T(x, pooled):
    """(C, N, H, W) -> bf16 patch matrix with K = 9*C rows (PyTorch weight
    flattening order: cin*9 + kh*3 + kw) and pixels on the lane axis.

    pooled=False: (K, N*H*W), columns ordered (n, h, w).
    pooled=True : (4, K, N*(H//2)*(W//2)); leading axis is the 2x2 max-pool
                  window position, inner columns ordered (n, h//2, w//2).
    """
    c, n, h, w = x.shape
    xp = jnp.pad(x, ((0, 0), (0, 0), (1, 1), (1, 1)))
    taps = [xp[:, :, dy:dy + h, dx:dx + w] for dy in range(3) for dx in range(3)]
    p = jnp.stack(taps, axis=1)                 # (C, 9, N, H, W)
    if pooled:
        hp, wp = h // 2, w // 2
        p = p.reshape(c, 9, n, hp, 2, wp, 2)
        p = p.transpose(4, 6, 0, 1, 2, 3, 5)    # (2, 2, C, 9, N, hp, wp)
        p = p.reshape(4, c * 9, n * hp * wp)
    else:
        p = p.reshape(c * 9, n * h * w)
    return p.astype(jnp.bfloat16)


# ---------------------------------------------------------------------------
# Forward pass (matches model_heatmapResNet.forward, training-mode BatchNorm)
# ---------------------------------------------------------------------------
def model_heatmap_resnet_forward(x_nchw, params):
    x = jnp.transpose(x_nchw, (1, 0, 2, 3)).astype(jnp.float32)  # (C, N, H, W)

    def plain(xc, st):        # conv_block (no pool) + outer BN      -> bn1(conv1(.))
        _, n, h, w = xc.shape
        p = _im2col_T(xc, pooled=False)
        cout = st["w"].shape[0]
        return conv_bn_relu_bn(p, st["w"], st["prm"]).reshape(cout, n, h, w)

    def pooled(xc, st):       # conv_block(pool=True) + outer BN     -> bn{2,3,4}(conv{2,3,4}(.))
        _, n, h, w = xc.shape
        p = _im2col_T(xc, pooled=True)
        cout = st["w"].shape[0]
        return conv_bn_relu_pool_bn(p, st["w"], st["prm"]).reshape(
            cout, n, h // 2, w // 2)

    def residual(xc, st):     # relu(conv_block(x) + x)              -> res{1,2,3}
        c, n, h, w = xc.shape
        p = _im2col_T(xc, pooled=False)
        xr = xc.reshape(c, n * h * w)
        return conv_bn_relu_residual(p, st["w"], st["prm"], xr).reshape(c, n, h, w)

    out = plain(x, params["s1"])        # out = bn1(conv1(x))
    out = pooled(out, params["s2"])     # out = bn2(conv2(out))
    out = residual(out, params["s3"])   # out = relu(res1(out) + out)
    out = pooled(out, params["s4"])     # out = bn3(conv3(out))
    out = residual(out, params["s5"])   # out = relu(res2(out) + out)
    out = pooled(out, params["s6"])     # out = bn4(conv4(out))
    out = residual(out, params["s7"])   # out = relu(res3(out) + out)

    return jnp.transpose(out, (1, 0, 2, 3))     # back to NCHW for the consumer


# ---------------------------------------------------------------------------
# Deterministic, kernel-ready parameters
# ---------------------------------------------------------------------------
def init_params(key, channels=8):
    c = channels
    specs = [
        ("s1", 1, 2 * c, True),       # conv1 + bn1
        ("s2", 2 * c, 4 * c, True),   # conv2 (pool) + bn2
        ("s3", 4 * c, 4 * c, False),  # res1
        ("s4", 4 * c, 4 * c, True),   # conv3 (pool) + bn3
        ("s5", 4 * c, 4 * c, False),  # res2
        ("s6", 4 * c, c, True),       # conv4 (pool) + bn4
        ("s7", c, c, False),          # res3
    ]
    params = {}
    for k, (name, cin, cout, outer_bn) in zip(jax.random.split(key, len(specs)), specs):
        kw, kb, kg, kbt, kg2, kb2 = jax.random.split(k, 6)
        bound = 1.0 / jnp.sqrt(jnp.float32(cin * 9))
        w = jax.random.uniform(kw, (cout, cin, 3, 3), jnp.float32, -1.0, 1.0) * bound
        bias = jax.random.uniform(kb, (cout,), jnp.float32, -1.0, 1.0) * bound
        g_a = 1.0 + 0.1 * jax.random.normal(kg, (cout,), jnp.float32)
        b_a = 0.1 * jax.random.normal(kbt, (cout,), jnp.float32)
        if outer_bn:
            g_b = 1.0 + 0.1 * jax.random.normal(kg2, (cout,), jnp.float32)
            b_b = 0.1 * jax.random.normal(kb2, (cout,), jnp.float32)
        else:
            g_b = jnp.ones((cout,), jnp.float32)
            b_b = jnp.zeros((cout,), jnp.float32)
        prm = jnp.stack([bias, g_a, b_a, g_b, b_b], axis=1)    # (Cout, 5)
        prm = jnp.pad(prm, ((0, 0), (0, 3)))                   # (Cout, 8)
        params[name] = {
            "w": w.reshape(cout, cin * 9).astype(jnp.bfloat16),  # (Cout, 9*Cin)
            "prm": prm.astype(jnp.float32),
        }
    return params


if __name__ == "__main__":
    key = jax.random.PRNGKey(0)
    k_in, k_par = jax.random.split(key)

    channels = 8
    n, h, w = 2, 16, 16
    x = jax.random.normal(k_in, (n, 1, h, w), jnp.float32)     # NCHW, 1 input channel
    params = init_params(k_par, channels)

    fwd = jax.jit(model_heatmap_resnet_forward)
    out = jax.block_until_ready(fwd(x, params))

    assert out.shape == (n, channels, h // 8, w // 8), out.shape
    assert bool(jnp.all(jnp.isfinite(out)))
    print("KERNEL_OK")
</pallas_src>

<mosaic_0001>
module attributes {stable_mosaic.version = 11 : i64} {
  func.func @_conv_bn_relu_bn_kernel(%arg0: memref<9x512xbf16, #tpu.memory_space<vmem>>, %arg1: memref<16x9xbf16, #tpu.memory_space<vmem>>, %arg2: memref<16x8xf32, #tpu.memory_space<vmem>>, %arg3: memref<16x512xf32, #tpu.memory_space<vmem>>) attributes {dimension_semantics = [], scalar_prefetch = 0 : i64, scratch_operands = 0 : i64, tpu.core_type = #tpu.core_type<tc>} {
    %c0 = arith.constant 0 : index
    %c0_0 = arith.constant 0 : index
    %0 = vector.load %arg2[%c0, %c0_0] : memref<16x8xf32, #tpu.memory_space<vmem>>, vector<16x8xf32>
    %1 = vector.extract_strided_slice %0 {offsets = [0, 0], sizes = [16, 1], strides = [1, 1]} : vector<16x8xf32> to vector<16x1xf32>
    %2 = vector.extract_strided_slice %0 {offsets = [0, 1], sizes = [16, 1], strides = [1, 1]} : vector<16x8xf32> to vector<16x1xf32>
    %3 = vector.extract_strided_slice %0 {offsets = [0, 2], sizes = [16, 1], strides = [1, 1]} : vector<16x8xf32> to vector<16x1xf32>
    %4 = vector.extract_strided_slice %0 {offsets = [0, 3], sizes = [16, 1], strides = [1, 1]} : vector<16x8xf32> to vector<16x1xf32>
    %5 = vector.extract_strided_slice %0 {offsets = [0, 4], sizes = [16, 1], strides = [1, 1]} : vector<16x8xf32> to vector<16x1xf32>
    %c0_1 = arith.constant 0 : index
    %c0_2 = arith.constant 0 : index
    %6 = vector.load %arg1[%c0_1, %c0_2] : memref<16x9xbf16, #tpu.memory_space<vmem>>, vector<16x9xbf16>
    %c0_3 = arith.constant 0 : index
    %c0_4 = arith.constant 0 : index
    %7 = vector.load %arg0[%c0_3, %c0_4] : memref<9x512xbf16, #tpu.memory_space<vmem>>, vector<9x512xbf16>
    %cst = arith.constant dense<0.000000e+00> : vector<16x512xf32>
    %8 = tpu.matmul %6, %7, %cst {dimension_numbers = #tpu.dot_dimension_numbers<[1], [0], [0], [1], [0, 0, 1, 1], [], []>} : vector<16x9xbf16>, vector<9x512xbf16>, vector<16x512xf32> -> vector<16x512xf32>
    %9 = vector.broadcast %1 : vector<16x1xf32> to vector<16x512xf32>
    %10 = arith.addf %8, %9 : vector<16x512xf32>
    %cst_5 = arith.constant dense<0.000000e+00> : vector<16xf32>
    %11 = vector.multi_reduction <add>, %10, %cst_5 [1] : vector<16x512xf32> to vector<16xf32>
    %12 = vector.shape_cast %11 : vector<16xf32> to vector<16x1xf32>
    %cst_6 = arith.constant 0.001953125 : f32
    %13 = vector.broadcast %cst_6 : f32 to vector<16x1xf32>
    %14 = arith.mulf %12, %13 : vector<16x1xf32>
    %15 = arith.mulf %10, %10 : vector<16x512xf32>
    %cst_7 = arith.constant dense<0.000000e+00> : vector<16xf32>
    %16 = vector.multi_reduction <add>, %15, %cst_7 [1] : vector<16x512xf32> to vector<16xf32>
    %17 = vector.shape_cast %16 : vector<16xf32> to vector<16x1xf32>
    %cst_8 = arith.constant 0.001953125 : f32
    %18 = vector.broadcast %cst_8 : f32 to vector<16x1xf32>
    %19 = arith.mulf %17, %18 : vector<16x1xf32>
    %20 = arith.mulf %14, %14 : vector<16x1xf32>
    %21 = arith.subf %19, %20 : vector<16x1xf32>
    %cst_9 = arith.constant 9.99999974E-6 : f32
    %22 = vector.broadcast %cst_9 : f32 to vector<16x1xf32>
    %23 = arith.addf %21, %22 : vector<16x1xf32>
    %24 = math.rsqrt %23 : vector<16x1xf32>
    %25 = arith.mulf %2, %24 : vector<16x1xf32>
    %26 = arith.mulf %14, %25 : vector<16x1xf32>
    %27 = arith.subf %3, %26 : vector<16x1xf32>
    %28 = vector.broadcast %25 : vector<16x1xf32> to vector<16x512xf32>
    %29 = arith.mulf %10, %28 : vector<16x512xf32>
    %30 = vector.broadcast %27 : vector<16x1xf32> to vector<16x512xf32>
    %31 = arith.addf %29, %30 : vector<16x512xf32>
    %cst_10 = arith.constant 0.000000e+00 : f32
    %32 = vector.broadcast %cst_10 : f32 to vector<16x512xf32>
    %33 = arith.maximumf %31, %32 : vector<16x512xf32>
    %cst_11 = arith.constant dense<0.000000e+00> : vector<16xf32>
    %34 = vector.multi_reduction <add>, %33, %cst_11 [1] : vector<16x512xf32> to vector<16xf32>
    %35 = vector.shape_cast %34 : vector<16xf32> to vector<16x1xf32>
    %cst_12 = arith.constant 0.001953125 : f32
    %36 = vector.broadcast %cst_12 : f32 to vector<16x1xf32>
    %37 = arith.mulf %35, %36 : vector<16x1xf32>
    %38 = arith.mulf %33, %33 : vector<16x512xf32>
    %cst_13 = arith.constant dense<0.000000e+00> : vector<16xf32>
    %39 = vector.multi_reduction <add>, %38, %cst_13 [1] : vector<16x512xf32> to vector<16xf32>
    %40 = vector.shape_cast %39 : vector<16xf32> to vector<16x1xf32>
    %cst_14 = arith.constant 0.001953125 : f32
    %41 = vector.broadcast %cst_14 : f32 to vector<16x1xf32>
    %42 = arith.mulf %40, %41 : vector<16x1xf32>
    %43 = arith.mulf %37, %37 : vector<16x1xf32>
    %44 = arith.subf %42, %43 : vector<16x1xf32>
    %cst_15 = arith.constant 9.99999974E-6 : f32
    %45 = vector.broadcast %cst_15 : f32 to vector<16x1xf32>
    %46 = arith.addf %44, %45 : vector<16x1xf32>
    %47 = math.rsqrt %46 : vector<16x1xf32>
    %48 = arith.mulf %4, %47 : vector<16x1xf32>
    %49 = arith.mulf %37, %48 : vector<16x1xf32>
    %50 = arith.subf %5, %49 : vector<16x1xf32>
    %51 = vector.broadcast %48 : vector<16x1xf32> to vector<16x512xf32>
    %52 = arith.mulf %33, %51 : vector<16x512xf32>
    %53 = vector.broadcast %50 : vector<16x1xf32> to vector<16x512xf32>
    %54 = arith.addf %52, %53 : vector<16x512xf32>
    %c0_16 = arith.constant 0 : index
    %c0_17 = arith.constant 0 : index
    %55 = vector.load %arg3[%c0_16, %c0_17] : memref<16x512xf32, #tpu.memory_space<vmem>>, vector<16x512xf32>
    tpu.vector_store %arg3[%c0_16, %c0_17], %54 {strides = array<i32>} : memref<16x512xf32, #tpu.memory_space<vmem>>, vector<16x512xf32>,
    return
  }
}

module attributes {stable_mosaic.version = 11 : i64} {
  func.func @_conv_bn_relu_pool_bn_kernel(%arg0: memref<4x144x128xbf16, #tpu.memory_space<vmem>>, %arg1: memref<32x144xbf16, #tpu.memory_space<vmem>>, %arg2: memref<32x8xf32, #tpu.memory_space<vmem>>, %arg3: memref<32x128xf32, #tpu.memory_space<vmem>>) attributes {dimension_semantics = [], scalar_prefetch = 0 : i64, scratch_operands = 0 : i64, tpu.core_type = #tpu.core_type<tc>} {
    %c0 = arith.constant 0 : index
    %c0_0 = arith.constant 0 : index
    %0 = vector.load %arg1[%c0, %c0_0] : memref<32x144xbf16, #tpu.memory_space<vmem>>, vector<32x144xbf16>
    %c0_1 = arith.constant 0 : index
    %c0_2 = arith.constant 0 : index
    %1 = vector.load %arg2[%c0_1, %c0_2] : memref<32x8xf32, #tpu.memory_space<vmem>>, vector<32x8xf32>
    %2 = vector.extract_strided_slice %1 {offsets = [0, 0], sizes = [32, 1], strides = [1, 1]} : vector<32x8xf32> to vector<32x1xf32>
    %3 = vector.extract_strided_slice %1 {offsets = [0, 1], sizes = [32, 1], strides = [1, 1]} : vector<32x8xf32> to vector<32x1xf32>
    %4 = vector.extract_strided_slice %1 {offsets = [0, 2], sizes = [32, 1], strides = [1, 1]} : vector<32x8xf32> to vector<32x1xf32>
    %5 = vector.extract_strided_slice %1 {offsets = [0, 3], sizes = [32, 1], strides = [1, 1]} : vector<32x8xf32> to vector<32x1xf32>
    %6 = vector.extract_strided_slice %1 {offsets = [0, 4], sizes = [32, 1], strides = [1, 1]} : vector<32x8xf32> to vector<32x1xf32>
    %c0_3 = arith.constant 0 : index
    %c0_4 = arith.constant 0 : index
    %c0_5 = arith.constant 0 : index
    %7 = vector.load %arg0[%c0_3, %c0_4, %c0_5] : memref<4x144x128xbf16, #tpu.memory_space<vmem>>, vector<1x144x128xbf16>
    %8 = vector.shape_cast %7 : vector<1x144x128xbf16> to vector<144x128xbf16>
    %cst = arith.constant dense<0.000000e+00> : vector<32x128xf32>
    %9 = tpu.matmul %0, %8, %cst {dimension_numbers = #tpu.dot_dimension_numbers<[1], [0], [0], [1], [0, 0, 1, 1], [], []>} : vector<32x144xbf16>, vector<144x128xbf16>, vector<32x128xf32> -> vector<32x128xf32>
    %10 = vector.broadcast %2 : vector<32x1xf32> to vector<32x128xf32>
    %11 = arith.addf %9, %10 : vector<32x128xf32>
    %c1 = arith.constant 1 : index
    %c0_6 = arith.constant 0 : index
    %c0_7 = arith.constant 0 : index
    %12 = vector.load %arg0[%c1, %c0_6, %c0_7] : memref<4x144x128xbf16, #tpu.memory_space<vmem>>, vector<1x144x128xbf16>
    %13 = vector.shape_cast %12 : vector<1x144x128xbf16> to vector<144x128xbf16>
    %cst_8 = arith.constant dense<0.000000e+00> : vector<32x128xf32>
    %14 = tpu.matmul %0, %13, %cst_8 {dimension_numbers = #tpu.dot_dimension_numbers<[1], [0], [0], [1], [0, 0, 1, 1], [], []>} : vector<32x144xbf16>, vector<144x128xbf16>, vector<32x128xf32> -> vector<32x128xf32>
    %15 = vector.broadcast %2 : vector<32x1xf32> to vector<32x128xf32>
    %16 = arith.addf %14, %15 : vector<32x128xf32>
    %c2 = arith.constant 2 : index
    %c0_9 = arith.constant 0 : index
    %c0_10 = arith.constant 0 : index
    %17 = vector.load %arg0[%c2, %c0_9, %c0_10] : memref<4x144x128xbf16, #tpu.memory_space<vmem>>, vector<1x144x128xbf16>
    %18 = vector.shape_cast %17 : vector<1x144x128xbf16> to vector<144x128xbf16>
    %cst_11 = arith.constant dense<0.000000e+00> : vector<32x128xf32>
    %19 = tpu.matmul %0, %18, %cst_11 {dimension_numbers = #tpu.dot_dimension_numbers<[1], [0], [0], [1], [0, 0, 1, 1], [], []>} : vector<32x144xbf16>, vector<144x128xbf16>, vector<32x128xf32> -> vector<32x128xf32>
    %20 = vector.broadcast %2 : vector<32x1xf32> to vector<32x128xf32>
    %21 = arith.addf %19, %20 : vector<32x128xf32>
    %c3 = arith.constant 3 : index
    %c0_12 = arith.constant 0 : index
    %c0_13 = arith.constant 0 : index
    %22 = vector.load %arg0[%c3, %c0_12, %c0_13] : memref<4x144x128xbf16, #tpu.memory_space<vmem>>, vector<1x144x128xbf16>
    %23 = vector.shape_cast %22 : vector<1x144x128xbf16> to vector<144x128xbf16>
    %cst_14 = arith.constant dense<0.000000e+00> : vector<32x128xf32>
    %24 = tpu.matmul %0, %23, %cst_14 {dimension_numbers = #tpu.dot_dimension_numbers<[1], [0], [0], [1], [0, 0, 1, 1], [], []>} : vector<32x144xbf16>, vector<144x128xbf16>, vector<32x128xf32> -> vector<32x128xf32>
    %25 = vector.broadcast %2 : vector<32x1xf32> to vector<32x128xf32>
    %26 = arith.addf %24, %25 : vector<32x128xf32>
    %cst_15 = arith.constant dense<0.000000e+00> : vector<32xf32>
    %27 = vector.multi_reduction <add>, %11, %cst_15 [1] : vector<32x128xf32> to vector<32xf32>
    %28 = vector.shape_cast %27 : vector<32xf32> to vector<32x1xf32>
    %cst_16 = arith.constant 0.000000e+00 : f32
    %29 = vector.broadcast %cst_16 : f32 to vector<32x1xf32>
    %30 = arith.addf %29, %28 : vector<32x1xf32>
    %cst_17 = arith.constant dense<0.000000e+00> : vector<32xf32>
    %31 = vector.multi_reduction <add>, %16, %cst_17 [1] : vector<32x128xf32> to vector<32xf32>
    %32 = vector.shape_cast %31 : vector<32xf32> to vector<32x1xf32>
    %33 = arith.addf %30, %32 : vector<32x1xf32>
    %cst_18 = arith.constant dense<0.000000e+00> : vector<32xf32>
    %34 = vector.multi_reduction <add>, %21, %cst_18 [1] : vector<32x128xf32> to vector<32xf32>
    %35 = vector.shape_cast %34 : vector<32xf32> to vector<32x1xf32>
    %36 = arith.addf %33, %35 : vector<32x1xf32>
    %cst_19 = arith.constant dense<0.000000e+00> : vector<32xf32>
    %37 = vector.multi_reduction <add>, %26, %cst_19 [1] : vector<32x128xf32> to vector<32xf32>
    %38 = vector.shape_cast %37 : vector<32xf32> to vector<32x1xf32>
    %39 = arith.addf %36, %38 : vector<32x1xf32>
    %cst_20 = arith.constant 0.001953125 : f32
    %40 = vector.broadcast %cst_20 : f32 to vector<32x1xf32>
    %41 = arith.mulf %39, %40 : vector<32x1xf32>
    %42 = arith.mulf %11, %11 : vector<32x128xf32>
    %cst_21 = arith.constant dense<0.000000e+00> : vector<32xf32>
    %43 = vector.multi_reduction <add>, %42, %cst_21 [1] : vector<32x128xf32> to vector<32xf32>
    %44 = vector.shape_cast %43 : vector<32xf32> to vector<32x1xf32>
    %cst_22 = arith.constant 0.000000e+00 : f32
    %45 = vector.broadcast %cst_22 : f32 to vector<32x1xf32>
    %46 = arith.addf %45, %44 : vector<32x1xf32>
    %47 = arith.mulf %16, %16 : vector<32x128xf32>
    %cst_23 = arith.constant dense<0.000000e+00> : vector<32xf32>
    %48 = vector.multi_reduction <add>, %47, %cst_23 [1] : vector<32x128xf32> to vector<32xf32>
    %49 = vector.shape_cast %48 : vector<32xf32> to vector<32x1xf32>
    %50 = arith.addf %46, %49 : vector<32x1xf32>
    %51 = arith.mulf %21, %21 : vector<32x128xf32>
    %cst_24 = arith.constant dense<0.000000e+00> : vector<32xf32>
    %52 = vector.multi_reduction <add>, %51, %cst_24 [1] : vector<32x128xf32> to vector<32xf32>
    %53 = vector.shape_cast %52 : vector<32xf32> to vector<32x1xf32>
    %54 = arith.addf %50, %53 : vector<32x1xf32>
    %55 = arith.mulf %26, %26 : vector<32x128xf32>
    %cst_25 = arith.constant dense<0.000000e+00> : vector<32xf32>
    %56 = vector.multi_reduction <add>, %55, %cst_25 [1] : vector<32x128xf32> to vector<32xf32>
    %57 = vector.shape_cast %56 : vector<32xf32> to vector<32x1xf32>
    %58 = arith.addf %54, %57 : vector<32x1xf32>
    %cst_26 = arith.constant 0.001953125 : f32
    %59 = vector.broadcast %cst_26 : f32 to vector<32x1xf32>
    %60 = arith.mulf %58, %59 : vector<32x1xf32>
    %61 = arith.mulf %41, %41 : vector<32x1xf32>
    %62 = arith.subf %60, %61 : vector<32x1xf32>
    %cst_27 = arith.constant 9.99999974E-6 : f32
    %63 = vector.broadcast %cst_27 : f32 to vector<32x1xf32>
    %64 = arith.addf %62, %63 : vector<32x1xf32>
    %65 = math.rsqrt %64 : vector<32x1xf32>
    %66 = arith.mulf %3, %65 : vector<32x1xf32>
    %67 = arith.mulf %41, %66 : vector<32x1xf32>
    %68 = arith.subf %4, %67 : vector<32x1xf32>
    %69 = vector.broadcast %66 : vector<32x1xf32> to vector<32x128xf32>
    %70 = arith.mulf %11, %69 : vector<32x128xf32>
    %71 = vector.broadcast %68 : vector<32x1xf32> to vector<32x128xf32>
    %72 = arith.addf %70, %71 : vector<32x128xf32>
    %cst_28 = arith.constant 0.000000e+00 : f32
    %73 = vector.broadcast %cst_28 : f32 to vector<32x128xf32>
    %74 = arith.maximumf %72, %73 : vector<32x128xf32>
    %75 = vector.broadcast %66 : vector<32x1xf32> to vector<32x128xf32>
    %76 = arith.mulf %16, %75 : vector<32x128xf32>
    %77 = vector.broadcast %68 : vector<32x1xf32> to vector<32x128xf32>
    %78 = arith.addf %76, %77 : vector<32x128xf32>
    %cst_29 = arith.constant 0.000000e+00 : f32
    %79 = vector.broadcast %cst_29 : f32 to vector<32x128xf32>
    %80 = arith.maximumf %78, %79 : vector<32x128xf32>
    %81 = vector.broadcast %66 : vector<32x1xf32> to vector<32x128xf32>
    %82 = arith.mulf %21, %81 : vector<32x128xf32>
    %83 = vector.broadcast %68 : vector<32x1xf32> to vector<32x128xf32>
    %84 = arith.addf %82, %83 : vector<32x128xf32>
    %cst_30 = arith.constant 0.000000e+00 : f32
    %85 = vector.broadcast %cst_30 : f32 to vector<32x128xf32>
    %86 = arith.maximumf %84, %85 : vector<32x128xf32>
    %87 = vector.broadcast %66 : vector<32x1xf32> to vector<32x128xf32>
    %88 = arith.mulf %26, %87 : vector<32x128xf32>
    %89 = vector.broadcast %68 : vector<32x1xf32> to vector<32x128xf32>
    %90 = arith.addf %88, %89 : vector<32x128xf32>
    %cst_31 = arith.constant 0.000000e+00 : f32
    %91 = vector.broadcast %cst_31 : f32 to vector<32x128xf32>
    %92 = arith.maximumf %90, %91 : vector<32x128xf32>
    %93 = arith.maximumf %74, %80 : vector<32x128xf32>
    %94 = arith.maximumf %86, %92 : vector<32x128xf32>
    %95 = arith.maximumf %93, %94 : vector<32x128xf32>
    %cst_32 = arith.constant dense<0.000000e+00> : vector<32xf32>
    %96 = vector.multi_reduction <add>, %95, %cst_32 [1] : vector<32x128xf32> to vector<32xf32>
    %97 = vector.shape_cast %96 : vector<32xf32> to vector<32x1xf32>
    %cst_33 = arith.constant 7.812500e-03 : f32
    %98 = vector.broadcast %cst_33 : f32 to vector<32x1xf32>
    %99 = arith.mulf %97, %98 : vector<32x1xf32>
    %100 = arith.mulf %95, %95 : vector<32x128xf32>
    %cst_34 = arith.constant dense<0.000000e+00> : vector<32xf32>
    %101 = vector.multi_reduction <add>, %100, %cst_34 [1] : vector<32x128xf32> to vector<32xf32>
    %102 = vector.shape_cast %101 : vector<32xf32> to vector<32x1xf32>
    %cst_35 = arith.constant 7.812500e-03 : f32
    %103 = vector.broadcast %cst_35 : f32 to vector<32x1xf32>
    %104 = arith.mulf %102, %103 : vector<32x1xf32>
    %105 = arith.mulf %99, %99 : vector<32x1xf32>
    %106 = arith.subf %104, %105 : vector<32x1xf32>
    %cst_36 = arith.constant 9.99999974E-6 : f32
    %107 = vector.broadcast %cst_36 : f32 to vector<32x1xf32>
    %108 = arith.addf %106, %107 : vector<32x1xf32>
    %109 = math.rsqrt %108 : vector<32x1xf32>
    %110 = arith.mulf %5, %109 : vector<32x1xf32>
    %111 = arith.mulf %99, %110 : vector<32x1xf32>
    %112 = arith.subf %6, %111 : vector<32x1xf32>
    %113 = vector.broadcast %110 : vector<32x1xf32> to vector<32x128xf32>
    %114 = arith.mulf %95, %113 : vector<32x128xf32>
    %115 = vector.broadcast %112 : vector<32x1xf32> to vector<32x128xf32>
    %116 = arith.addf %114, %115 : vector<32x128xf32>
    %c0_37 = arith.constant 0 : index
    %c0_38 = arith.constant 0 : index
    %117 = vector.load %arg3[%c0_37, %c0_38] : memref<32x128xf32, #tpu.memory_space<vmem>>, vector<32x128xf32>
    tpu.vector_store %arg3[%c0_37, %c0_38], %116 {strides = array<i32>} : memref<32x128xf32, #tpu.memory_space<vmem>>, vector<32x128xf32>,
    return
  }
}

module attributes {stable_mosaic.version = 11 : i64} {
  func.func @_conv_bn_relu_residual_kernel(%arg0: memref<288x128xbf16, #tpu.memory_space<vmem>>, %arg1: memref<32x288xbf16, #tpu.memory_space<vmem>>, %arg2: memref<32x8xf32, #tpu.memory_space<vmem>>, %arg3: memref<32x128xf32, #tpu.memory_space<vmem>>, %arg4: memref<32x128xf32, #tpu.memory_space<vmem>>) attributes {dimension_semantics = [], scalar_prefetch = 0 : i64, scratch_operands = 0 : i64, tpu.core_type = #tpu.core_type<tc>} {
    %c0 = arith.constant 0 : index
    %c0_0 = arith.constant 0 : index
    %0 = vector.load %arg2[%c0, %c0_0] : memref<32x8xf32, #tpu.memory_space<vmem>>, vector<32x8xf32>
    %1 = vector.extract_strided_slice %0 {offsets = [0, 0], sizes = [32, 1], strides = [1, 1]} : vector<32x8xf32> to vector<32x1xf32>
    %2 = vector.extract_strided_slice %0 {offsets = [0, 1], sizes = [32, 1], strides = [1, 1]} : vector<32x8xf32> to vector<32x1xf32>
    %3 = vector.extract_strided_slice %0 {offsets = [0, 2], sizes = [32, 1], strides = [1, 1]} : vector<32x8xf32> to vector<32x1xf32>
    %c0_1 = arith.constant 0 : index
    %c0_2 = arith.constant 0 : index
    %4 = vector.load %arg1[%c0_1, %c0_2] : memref<32x288xbf16, #tpu.memory_space<vmem>>, vector<32x288xbf16>
    %c0_3 = arith.constant 0 : index
    %c0_4 = arith.constant 0 : index
    %5 = vector.load %arg0[%c0_3, %c0_4] : memref<288x128xbf16, #tpu.memory_space<vmem>>, vector<288x128xbf16>
    %cst = arith.constant dense<0.000000e+00> : vector<32x128xf32>
    %6 = tpu.matmul %4, %5, %cst {dimension_numbers = #tpu.dot_dimension_numbers<[1], [0], [0], [1], [0, 0, 1, 1], [], []>} : vector<32x288xbf16>, vector<288x128xbf16>, vector<32x128xf32> -> vector<32x128xf32>
    %7 = vector.broadcast %1 : vector<32x1xf32> to vector<32x128xf32>
    %8 = arith.addf %6, %7 : vector<32x128xf32>
    %cst_5 = arith.constant dense<0.000000e+00> : vector<32xf32>
    %9 = vector.multi_reduction <add>, %8, %cst_5 [1] : vector<32x128xf32> to vector<32xf32>
    %10 = vector.shape_cast %9 : vector<32xf32> to vector<32x1xf32>
    %cst_6 = arith.constant 7.812500e-03 : f32
    %11 = vector.broadcast %cst_6 : f32 to vector<32x1xf32>
    %12 = arith.mulf %10, %11 : vector<32x1xf32>
    %13 = arith.mulf %8, %8 : vector<32x128xf32>
    %cst_7 = arith.constant dense<0.000000e+00> : vector<32xf32>
    %14 = vector.multi_reduction <add>, %13, %cst_7 [1] : vector<32x128xf32> to vector<32xf32>
    %15 = vector.shape_cast %14 : vector<32xf32> to vector<32x1xf32>
    %cst_8 = arith.constant 7.812500e-03 : f32
    %16 = vector.broadcast %cst_8 : f32 to vector<32x1xf32>
    %17 = arith.mulf %15, %16 : vector<32x1xf32>
    %18 = arith.mulf %12, %12 : vector<32x1xf32>
    %19 = arith.subf %17, %18 : vector<32x1xf32>
    %cst_9 = arith.constant 9.99999974E-6 : f32
    %20 = vector.broadcast %cst_9 : f32 to vector<32x1xf32>
    %21 = arith.addf %19, %20 : vector<32x1xf32>
    %22 = math.rsqrt %21 : vector<32x1xf32>
    %23 = arith.mulf %2, %22 : vector<32x1xf32>
    %24 = arith.mulf %12, %23 : vector<32x1xf32>
    %25 = arith.subf %3, %24 : vector<32x1xf32>
    %26 = vector.broadcast %23 : vector<32x1xf32> to vector<32x128xf32>
    %27 = arith.mulf %8, %26 : vector<32x128xf32>
    %28 = vector.broadcast %25 : vector<32x1xf32> to vector<32x128xf32>
    %29 = arith.addf %27, %28 : vector<32x128xf32>
    %cst_10 = arith.constant 0.000000e+00 : f32
    %30 = vector.broadcast %cst_10 : f32 to vector<32x128xf32>
    %31 = arith.maximumf %29, %30 : vector<32x128xf32>
    %c0_11 = arith.constant 0 : index
    %c0_12 = arith.constant 0 : index
    %32 = vector.load %arg3[%c0_11, %c0_12] : memref<32x128xf32, #tpu.memory_space<vmem>>, vector<32x128xf32>
    %33 = arith.addf %31, %32 : vector<32x128xf32>
    %cst_13 = arith.constant 0.000000e+00 : f32
    %34 = vector.broadcast %cst_13 : f32 to vector<32x128xf32>
    %35 = arith.maximumf %33, %34 : vector<32x128xf32>
    %c0_14 = arith.constant 0 : index
    %c0_15 = arith.constant 0 : index
    %36 = vector.load %arg4[%c0_14, %c0_15] : memref<32x128xf32, #tpu.memory_space<vmem>>, vector<32x128xf32>
    tpu.vector_store %arg4[%c0_14, %c0_15], %35 {strides = array<i32>} : memref<32x128xf32, #tpu.memory_space<vmem>>, vector<32x128xf32>,
    return
  }
}

module attributes {stable_mosaic.version = 11 : i64} {
  func.func @_conv_bn_relu_pool_bn_kernel(%arg0: memref<4x288x32xbf16, #tpu.memory_space<vmem>>, %arg1: memref<32x288xbf16, #tpu.memory_space<vmem>>, %arg2: memref<32x8xf32, #tpu.memory_space<vmem>>, %arg3: memref<32x32xf32, #tpu.memory_space<vmem>>) attributes {dimension_semantics = [], scalar_prefetch = 0 : i64, scratch_operands = 0 : i64, tpu.core_type = #tpu.core_type<tc>} {
    %c0 = arith.constant 0 : index
    %c0_0 = arith.constant 0 : index
    %0 = vector.load %arg1[%c0, %c0_0] : memref<32x288xbf16, #tpu.memory_space<vmem>>, vector<32x288xbf16>
    %c0_1 = arith.constant 0 : index
    %c0_2 = arith.constant 0 : index
    %1 = vector.load %arg2[%c0_1, %c0_2] : memref<32x8xf32, #tpu.memory_space<vmem>>, vector<32x8xf32>
    %2 = vector.extract_strided_slice %1 {offsets = [0, 0], sizes = [32, 1], strides = [1, 1]} : vector<32x8xf32> to vector<32x1xf32>
    %3 = vector.extract_strided_slice %1 {offsets = [0, 1], sizes = [32, 1], strides = [1, 1]} : vector<32x8xf32> to vector<32x1xf32>
    %4 = vector.extract_strided_slice %1 {offsets = [0, 2], sizes = [32, 1], strides = [1, 1]} : vector<32x8xf32> to vector<32x1xf32>
    %5 = vector.extract_strided_slice %1 {offsets = [0, 3], sizes = [32, 1], strides = [1, 1]} : vector<32x8xf32> to vector<32x1xf32>
    %6 = vector.extract_strided_slice %1 {offsets = [0, 4], sizes = [32, 1], strides = [1, 1]} : vector<32x8xf32> to vector<32x1xf32>
    %c0_3 = arith.constant 0 : index
    %c0_4 = arith.constant 0 : index
    %c0_5 = arith.constant 0 : index
    %7 = vector.load %arg0[%c0_3, %c0_4, %c0_5] : memref<4x288x32xbf16, #tpu.memory_space<vmem>>, vector<1x288x32xbf16>
    %8 = vector.shape_cast %7 : vector<1x288x32xbf16> to vector<288x32xbf16>
    %cst = arith.constant dense<0.000000e+00> : vector<32x32xf32>
    %9 = tpu.matmul %0, %8, %cst {dimension_numbers = #tpu.dot_dimension_numbers<[1], [0], [0], [1], [0, 0, 1, 1], [], []>} : vector<32x288xbf16>, vector<288x32xbf16>, vector<32x32xf32> -> vector<32x32xf32>
    %10 = vector.broadcast %2 : vector<32x1xf32> to vector<32x32xf32>
    %11 = arith.addf %9, %10 : vector<32x32xf32>
    %c1 = arith.constant 1 : index
    %c0_6 = arith.constant 0 : index
    %c0_7 = arith.constant 0 : index
    %12 = vector.load %arg0[%c1, %c0_6, %c0_7] : memref<4x288x32xbf16, #tpu.memory_space<vmem>>, vector<1x288x32xbf16>
    %13 = vector.shape_cast %12 : vector<1x288x32xbf16> to vector<288x32xbf16>
    %cst_8 = arith.constant dense<0.000000e+00> : vector<32x32xf32>
    %14 = tpu.matmul %0, %13, %cst_8 {dimension_numbers = #tpu.dot_dimension_numbers<[1], [0], [0], [1], [0, 0, 1, 1], [], []>} : vector<32x288xbf16>, vector<288x32xbf16>, vector<32x32xf32> -> vector<32x32xf32>
    %15 = vector.broadcast %2 : vector<32x1xf32> to vector<32x32xf32>
    %16 = arith.addf %14, %15 : vector<32x32xf32>
    %c2 = arith.constant 2 : index
    %c0_9 = arith.constant 0 : index
    %c0_10 = arith.constant 0 : index
    %17 = vector.load %arg0[%c2, %c0_9, %c0_10] : memref<4x288x32xbf16, #tpu.memory_space<vmem>>, vector<1x288x32xbf16>
    %18 = vector.shape_cast %17 : vector<1x288x32xbf16> to vector<288x32xbf16>
    %cst_11 = arith.constant dense<0.000000e+00> : vector<32x32xf32>
    %19 = tpu.matmul %0, %18, %cst_11 {dimension_numbers = #tpu.dot_dimension_numbers<[1], [0], [0], [1], [0, 0, 1, 1], [], []>} : vector<32x288xbf16>, vector<288x32xbf16>, vector<32x32xf32> -> vector<32x32xf32>
    %20 = vector.broadcast %2 : vector<32x1xf32> to vector<32x32xf32>
    %21 = arith.addf %19, %20 : vector<32x32xf32>
    %c3 = arith.constant 3 : index
    %c0_12 = arith.constant 0 : index
    %c0_13 = arith.constant 0 : index
    %22 = vector.load %arg0[%c3, %c0_12, %c0_13] : memref<4x288x32xbf16, #tpu.memory_space<vmem>>, vector<1x288x32xbf16>
    %23 = vector.shape_cast %22 : vector<1x288x32xbf16> to vector<288x32xbf16>
    %cst_14 = arith.constant dense<0.000000e+00> : vector<32x32xf32>
    %24 = tpu.matmul %0, %23, %cst_14 {dimension_numbers = #tpu.dot_dimension_numbers<[1], [0], [0], [1], [0, 0, 1, 1], [], []>} : vector<32x288xbf16>, vector<288x32xbf16>, vector<32x32xf32> -> vector<32x32xf32>
    %25 = vector.broadcast %2 : vector<32x1xf32> to vector<32x32xf32>
    %26 = arith.addf %24, %25 : vector<32x32xf32>
    %cst_15 = arith.constant dense<0.000000e+00> : vector<32xf32>
    %27 = vector.multi_reduction <add>, %11, %cst_15 [1] : vector<32x32xf32> to vector<32xf32>
    %28 = vector.shape_cast %27 : vector<32xf32> to vector<32x1xf32>
    %cst_16 = arith.constant 0.000000e+00 : f32
    %29 = vector.broadcast %cst_16 : f32 to vector<32x1xf32>
    %30 = arith.addf %29, %28 : vector<32x1xf32>
    %cst_17 = arith.constant dense<0.000000e+00> : vector<32xf32>
    %31 = vector.multi_reduction <add>, %16, %cst_17 [1] : vector<32x32xf32> to vector<32xf32>
    %32 = vector.shape_cast %31 : vector<32xf32> to vector<32x1xf32>
    %33 = arith.addf %30, %32 : vector<32x1xf32>
    %cst_18 = arith.constant dense<0.000000e+00> : vector<32xf32>
    %34 = vector.multi_reduction <add>, %21, %cst_18 [1] : vector<32x32xf32> to vector<32xf32>
    %35 = vector.shape_cast %34 : vector<32xf32> to vector<32x1xf32>
    %36 = arith.addf %33, %35 : vector<32x1xf32>
    %cst_19 = arith.constant dense<0.000000e+00> : vector<32xf32>
    %37 = vector.multi_reduction <add>, %26, %cst_19 [1] : vector<32x32xf32> to vector<32xf32>
    %38 = vector.shape_cast %37 : vector<32xf32> to vector<32x1xf32>
    %39 = arith.addf %36, %38 : vector<32x1xf32>
    %cst_20 = arith.constant 7.812500e-03 : f32
    %40 = vector.broadcast %cst_20 : f32 to vector<32x1xf32>
    %41 = arith.mulf %39, %40 : vector<32x1xf32>
    %42 = arith.mulf %11, %11 : vector<32x32xf32>
    %cst_21 = arith.constant dense<0.000000e+00> : vector<32xf32>
    %43 = vector.multi_reduction <add>, %42, %cst_21 [1] : vector<32x32xf32> to vector<32xf32>
    %44 = vector.shape_cast %43 : vector<32xf32> to vector<32x1xf32>
    %cst_22 = arith.constant 0.000000e+00 : f32
    %45 = vector.broadcast %cst_22 : f32 to vector<32x1xf32>
    %46 = arith.addf %45, %44 : vector<32x1xf32>
    %47 = arith.mulf %16, %16 : vector<32x32xf32>
    %cst_23 = arith.constant dense<0.000000e+00> : vector<32xf32>
    %48 = vector.multi_reduction <add>, %47, %cst_23 [1] : vector<32x32xf32> to vector<32xf32>
    %49 = vector.shape_cast %48 : vector<32xf32> to vector<32x1xf32>
    %50 = arith.addf %46, %49 : vector<32x1xf32>
    %51 = arith.mulf %21, %21 : vector<32x32xf32>
    %cst_24 = arith.constant dense<0.000000e+00> : vector<32xf32>
    %52 = vector.multi_reduction <add>, %51, %cst_24 [1] : vector<32x32xf32> to vector<32xf32>
    %53 = vector.shape_cast %52 : vector<32xf32> to vector<32x1xf32>
    %54 = arith.addf %50, %53 : vector<32x1xf32>
    %55 = arith.mulf %26, %26 : vector<32x32xf32>
    %cst_25 = arith.constant dense<0.000000e+00> : vector<32xf32>
    %56 = vector.multi_reduction <add>, %55, %cst_25 [1] : vector<32x32xf32> to vector<32xf32>
    %57 = vector.shape_cast %56 : vector<32xf32> to vector<32x1xf32>
    %58 = arith.addf %54, %57 : vector<32x1xf32>
    %cst_26 = arith.constant 7.812500e-03 : f32
    %59 = vector.broadcast %cst_26 : f32 to vector<32x1xf32>
    %60 = arith.mulf %58, %59 : vector<32x1xf32>
    %61 = arith.mulf %41, %41 : vector<32x1xf32>
    %62 = arith.subf %60, %61 : vector<32x1xf32>
    %cst_27 = arith.constant 9.99999974E-6 : f32
    %63 = vector.broadcast %cst_27 : f32 to vector<32x1xf32>
    %64 = arith.addf %62, %63 : vector<32x1xf32>
    %65 = math.rsqrt %64 : vector<32x1xf32>
    %66 = arith.mulf %3, %65 : vector<32x1xf32>
    %67 = arith.mulf %41, %66 : vector<32x1xf32>
    %68 = arith.subf %4, %67 : vector<32x1xf32>
    %69 = vector.broadcast %66 : vector<32x1xf32> to vector<32x32xf32>
    %70 = arith.mulf %11, %69 : vector<32x32xf32>
    %71 = vector.broadcast %68 : vector<32x1xf32> to vector<32x32xf32>
    %72 = arith.addf %70, %71 : vector<32x32xf32>
    %cst_28 = arith.constant 0.000000e+00 : f32
    %73 = vector.broadcast %cst_28 : f32 to vector<32x32xf32>
    %74 = arith.maximumf %72, %73 : vector<32x32xf32>
    %75 = vector.broadcast %66 : vector<32x1xf32> to vector<32x32xf32>
    %76 = arith.mulf %16, %75 : vector<32x32xf32>
    %77 = vector.broadcast %68 : vector<32x1xf32> to vector<32x32xf32>
    %78 = arith.addf %76, %77 : vector<32x32xf32>
    %cst_29 = arith.constant 0.000000e+00 : f32
    %79 = vector.broadcast %cst_29 : f32 to vector<32x32xf32>
    %80 = arith.maximumf %78, %79 : vector<32x32xf32>
    %81 = vector.broadcast %66 : vector<32x1xf32> to vector<32x32xf32>
    %82 = arith.mulf %21, %81 : vector<32x32xf32>
    %83 = vector.broadcast %68 : vector<32x1xf32> to vector<32x32xf32>
    %84 = arith.addf %82, %83 : vector<32x32xf32>
    %cst_30 = arith.constant 0.000000e+00 : f32
    %85 = vector.broadcast %cst_30 : f32 to vector<32x32xf32>
    %86 = arith.maximumf %84, %85 : vector<32x32xf32>
    %87 = vector.broadcast %66 : vector<32x1xf32> to vector<32x32xf32>
    %88 = arith.mulf %26, %87 : vector<32x32xf32>
    %89 = vector.broadcast %68 : vector<32x1xf32> to vector<32x32xf32>
    %90 = arith.addf %88, %89 : vector<32x32xf32>
    %cst_31 = arith.constant 0.000000e+00 : f32
    %91 = vector.broadcast %cst_31 : f32 to vector<32x32xf32>
    %92 = arith.maximumf %90, %91 : vector<32x32xf32>
    %93 = arith.maximumf %74, %80 : vector<32x32xf32>
    %94 = arith.maximumf %86, %92 : vector<32x32xf32>
    %95 = arith.maximumf %93, %94 : vector<32x32xf32>
    %cst_32 = arith.constant dense<0.000000e+00> : vector<32xf32>
    %96 = vector.multi_reduction <add>, %95, %cst_32 [1] : vector<32x32xf32> to vector<32xf32>
    %97 = vector.shape_cast %96 : vector<32xf32> to vector<32x1xf32>
    %cst_33 = arith.constant 3.125000e-02 : f32
    %98 = vector.broadcast %cst_33 : f32 to vector<32x1xf32>
    %99 = arith.mulf %97, %98 : vector<32x1xf32>
    %100 = arith.mulf %95, %95 : vector<32x32xf32>
    %cst_34 = arith.constant dense<0.000000e+00> : vector<32xf32>
    %101 = vector.multi_reduction <add>, %100, %cst_34 [1] : vector<32x32xf32> to vector<32xf32>
    %102 = vector.shape_cast %101 : vector<32xf32> to vector<32x1xf32>
    %cst_35 = arith.constant 3.125000e-02 : f32
    %103 = vector.broadcast %cst_35 : f32 to vector<32x1xf32>
    %104 = arith.mulf %102, %103 : vector<32x1xf32>
    %105 = arith.mulf %99, %99 : vector<32x1xf32>
    %106 = arith.subf %104, %105 : vector<32x1xf32>
    %cst_36 = arith.constant 9.99999974E-6 : f32
    %107 = vector.broadcast %cst_36 : f32 to vector<32x1xf32>
    %108 = arith.addf %106, %107 : vector<32x1xf32>
    %109 = math.rsqrt %108 : vector<32x1xf32>
    %110 = arith.mulf %5, %109 : vector<32x1xf32>
    %111 = arith.mulf %99, %110 : vector<32x1xf32>
    %112 = arith.subf %6, %111 : vector<32x1xf32>
    %113 = vector.broadcast %110 : vector<32x1xf32> to vector<32x32xf32>
    %114 = arith.mulf %95, %113 : vector<32x32xf32>
    %115 = vector.broadcast %112 : vector<32x1xf32> to vector<32x32xf32>
    %116 = arith.addf %114, %115 : vector<32x32xf32>
    %c0_37 = arith.constant 0 : index
    %c0_38 = arith.constant 0 : index
    %117 = vector.load %arg3[%c0_37, %c0_38] : memref<32x32xf32, #tpu.memory_space<vmem>>, vector<32x32xf32>
    tpu.vector_store %arg3[%c0_37, %c0_38], %116 {strides = array<i32>} : memref<32x32xf32, #tpu.memory_space<vmem>>, vector<32x32xf32>,
    return
  }
}

module attributes {stable_mosaic.version = 11 : i64} {
  func.func @_conv_bn_relu_residual_kernel(%arg0: memref<288x32xbf16, #tpu.memory_space<vmem>>, %arg1: memref<32x288xbf16, #tpu.memory_space<vmem>>, %arg2: memref<32x8xf32, #tpu.memory_space<vmem>>, %arg3: memref<32x32xf32, #tpu.memory_space<vmem>>, %arg4: memref<32x32xf32, #tpu.memory_space<vmem>>) attributes {dimension_semantics = [], scalar_prefetch = 0 : i64, scratch_operands = 0 : i64, tpu.core_type = #tpu.core_type<tc>} {
    %c0 = arith.constant 0 : index
    %c0_0 = arith.constant 0 : index
    %0 = vector.load %arg2[%c0, %c0_0] : memref<32x8xf32, #tpu.memory_space<vmem>>, vector<32x8xf32>
    %1 = vector.extract_strided_slice %0 {offsets = [0, 0], sizes = [32, 1], strides = [1, 1]} : vector<32x8xf32> to vector<32x1xf32>
    %2 = vector.extract_strided_slice %0 {offsets = [0, 1], sizes = [32, 1], strides = [1, 1]} : vector<32x8xf32> to vector<32x1xf32>
    %3 = vector.extract_strided_slice %0 {offsets = [0, 2], sizes = [32, 1], strides = [1, 1]} : vector<32x8xf32> to vector<32x1xf32>
    %c0_1 = arith.constant 0 : index
    %c0_2 = arith.constant 0 : index
    %4 = vector.load %arg1[%c0_1, %c0_2] : memref<32x288xbf16, #tpu.memory_space<vmem>>, vector<32x288xbf16>
    %c0_3 = arith.constant 0 : index
    %c0_4 = arith.constant 0 : index
    %5 = vector.load %arg0[%c0_3, %c0_4] : memref<288x32xbf16, #tpu.memory_space<vmem>>, vector<288x32xbf16>
    %cst = arith.constant dense<0.000000e+00> : vector<32x32xf32>
    %6 = tpu.matmul %4, %5, %cst {dimension_numbers = #tpu.dot_dimension_numbers<[1], [0], [0], [1], [0, 0, 1, 1], [], []>} : vector<32x288xbf16>, vector<288x32xbf16>, vector<32x32xf32> -> vector<32x32xf32>
    %7 = vector.broadcast %1 : vector<32x1xf32> to vector<32x32xf32>
    %8 = arith.addf %6, %7 : vector<32x32xf32>
    %cst_5 = arith.constant dense<0.000000e+00> : vector<32xf32>
    %9 = vector.multi_reduction <add>, %8, %cst_5 [1] : vector<32x32xf32> to vector<32xf32>
    %10 = vector.shape_cast %9 : vector<32xf32> to vector<32x1xf32>
    %cst_6 = arith.constant 3.125000e-02 : f32
    %11 = vector.broadcast %cst_6 : f32 to vector<32x1xf32>
    %12 = arith.mulf %10, %11 : vector<32x1xf32>
    %13 = arith.mulf %8, %8 : vector<32x32xf32>
    %cst_7 = arith.constant dense<0.000000e+00> : vector<32xf32>
    %14 = vector.multi_reduction <add>, %13, %cst_7 [1] : vector<32x32xf32> to vector<32xf32>
    %15 = vector.shape_cast %14 : vector<32xf32> to vector<32x1xf32>
    %cst_8 = arith.constant 3.125000e-02 : f32
    %16 = vector.broadcast %cst_8 : f32 to vector<32x1xf32>
    %17 = arith.mulf %15, %16 : vector<32x1xf32>
    %18 = arith.mulf %12, %12 : vector<32x1xf32>
    %19 = arith.subf %17, %18 : vector<32x1xf32>
    %cst_9 = arith.constant 9.99999974E-6 : f32
    %20 = vector.broadcast %cst_9 : f32 to vector<32x1xf32>
    %21 = arith.addf %19, %20 : vector<32x1xf32>
    %22 = math.rsqrt %21 : vector<32x1xf32>
    %23 = arith.mulf %2, %22 : vector<32x1xf32>
    %24 = arith.mulf %12, %23 : vector<32x1xf32>
    %25 = arith.subf %3, %24 : vector<32x1xf32>
    %26 = vector.broadcast %23 : vector<32x1xf32> to vector<32x32xf32>
    %27 = arith.mulf %8, %26 : vector<32x32xf32>
    %28 = vector.broadcast %25 : vector<32x1xf32> to vector<32x32xf32>
    %29 = arith.addf %27, %28 : vector<32x32xf32>
    %cst_10 = arith.constant 0.000000e+00 : f32
    %30 = vector.broadcast %cst_10 : f32 to vector<32x32xf32>
    %31 = arith.maximumf %29, %30 : vector<32x32xf32>
    %c0_11 = arith.constant 0 : index
    %c0_12 = arith.constant 0 : index
    %32 = vector.load %arg3[%c0_11, %c0_12] : memref<32x32xf32, #tpu.memory_space<vmem>>, vector<32x32xf32>
    %33 = arith.addf %31, %32 : vector<32x32xf32>
    %cst_13 = arith.constant 0.000000e+00 : f32
    %34 = vector.broadcast %cst_13 : f32 to vector<32x32xf32>
    %35 = arith.maximumf %33, %34 : vector<32x32xf32>
    %c0_14 = arith.constant 0 : index
    %c0_15 = arith.constant 0 : index
    %36 = vector.load %arg4[%c0_14, %c0_15] : memref<32x32xf32, #tpu.memory_space<vmem>>, vector<32x32xf32>
    tpu.vector_store %arg4[%c0_14, %c0_15], %35 {strides = array<i32>} : memref<32x32xf32, #tpu.memory_space<vmem>>, vector<32x32xf32>,
    return
  }
}

module attributes {stable_mosaic.version = 11 : i64} {
  func.func @_conv_bn_relu_pool_bn_kernel(%arg0: memref<4x288x8xbf16, #tpu.memory_space<vmem>>, %arg1: memref<8x288xbf16, #tpu.memory_space<vmem>>, %arg2: memref<8x8xf32, #tpu.memory_space<vmem>>, %arg3: memref<8x8xf32, #tpu.memory_space<vmem>>) attributes {dimension_semantics = [], scalar_prefetch = 0 : i64, scratch_operands = 0 : i64, tpu.core_type = #tpu.core_type<tc>} {
    %c0 = arith.constant 0 : index
    %c0_0 = arith.constant 0 : index
    %0 = vector.load %arg1[%c0, %c0_0] : memref<8x288xbf16, #tpu.memory_space<vmem>>, vector<8x288xbf16>
    %c0_1 = arith.constant 0 : index
    %c0_2 = arith.constant 0 : index
    %1 = vector.load %arg2[%c0_1, %c0_2] : memref<8x8xf32, #tpu.memory_space<vmem>>, vector<8x8xf32>
    %2 = vector.extract_strided_slice %1 {offsets = [0, 0], sizes = [8, 1], strides = [1, 1]} : vector<8x8xf32> to vector<8x1xf32>
    %3 = vector.extract_strided_slice %1 {offsets = [0, 1], sizes = [8, 1], strides = [1, 1]} : vector<8x8xf32> to vector<8x1xf32>
    %4 = vector.extract_strided_slice %1 {offsets = [0, 2], sizes = [8, 1], strides = [1, 1]} : vector<8x8xf32> to vector<8x1xf32>
    %5 = vector.extract_strided_slice %1 {offsets = [0, 3], sizes = [8, 1], strides = [1, 1]} : vector<8x8xf32> to vector<8x1xf32>
    %6 = vector.extract_strided_slice %1 {offsets = [0, 4], sizes = [8, 1], strides = [1, 1]} : vector<8x8xf32> to vector<8x1xf32>
    %c0_3 = arith.constant 0 : index
    %c0_4 = arith.constant 0 : index
    %c0_5 = arith.constant 0 : index
    %7 = vector.load %arg0[%c0_3, %c0_4, %c0_5] : memref<4x288x8xbf16, #tpu.memory_space<vmem>>, vector<1x288x8xbf16>
    %8 = vector.shape_cast %7 : vector<1x288x8xbf16> to vector<288x8xbf16>
    %cst = arith.constant dense<0.000000e+00> : vector<8x8xf32>
    %9 = tpu.matmul %0, %8, %cst {dimension_numbers = #tpu.dot_dimension_numbers<[1], [0], [0], [1], [0, 0, 1, 1], [], []>} : vector<8x288xbf16>, vector<288x8xbf16>, vector<8x8xf32> -> vector<8x8xf32>
    %10 = vector.broadcast %2 : vector<8x1xf32> to vector<8x8xf32>
    %11 = arith.addf %9, %10 : vector<8x8xf32>
    %c1 = arith.constant 1 : index
    %c0_6 = arith.constant 0 : index
    %c0_7 = arith.constant 0 : index
    %12 = vector.load %arg0[%c1, %c0_6, %c0_7] : memref<4x288x8xbf16, #tpu.memory_space<vmem>>, vector<1x288x8xbf16>
    %13 = vector.shape_cast %12 : vector<1x288x8xbf16> to vector<288x8xbf16>
    %cst_8 = arith.constant dense<0.000000e+00> : vector<8x8xf32>
    %14 = tpu.matmul %0, %13, %cst_8 {dimension_numbers = #tpu.dot_dimension_numbers<[1], [0], [0], [1], [0, 0, 1, 1], [], []>} : vector<8x288xbf16>, vector<288x8xbf16>, vector<8x8xf32> -> vector<8x8xf32>
    %15 = vector.broadcast %2 : vector<8x1xf32> to vector<8x8xf32>
    %16 = arith.addf %14, %15 : vector<8x8xf32>
    %c2 = arith.constant 2 : index
    %c0_9 = arith.constant 0 : index
    %c0_10 = arith.constant 0 : index
    %17 = vector.load %arg0[%c2, %c0_9, %c0_10] : memref<4x288x8xbf16, #tpu.memory_space<vmem>>, vector<1x288x8xbf16>
    %18 = vector.shape_cast %17 : vector<1x288x8xbf16> to vector<288x8xbf16>
    %cst_11 = arith.constant dense<0.000000e+00> : vector<8x8xf32>
    %19 = tpu.matmul %0, %18, %cst_11 {dimension_numbers = #tpu.dot_dimension_numbers<[1], [0], [0], [1], [0, 0, 1, 1], [], []>} : vector<8x288xbf16>, vector<288x8xbf16>, vector<8x8xf32> -> vector<8x8xf32>
    %20 = vector.broadcast %2 : vector<8x1xf32> to vector<8x8xf32>
    %21 = arith.addf %19, %20 : vector<8x8xf32>
    %c3 = arith.constant 3 : index
    %c0_12 = arith.constant 0 : index
    %c0_13 = arith.constant 0 : index
    %22 = vector.load %arg0[%c3, %c0_12, %c0_13] : memref<4x288x8xbf16, #tpu.memory_space<vmem>>, vector<1x288x8xbf16>
    %23 = vector.shape_cast %22 : vector<1x288x8xbf16> to vector<288x8xbf16>
    %cst_14 = arith.constant dense<0.000000e+00> : vector<8x8xf32>
    %24 = tpu.matmul %0, %23, %cst_14 {dimension_numbers = #tpu.dot_dimension_numbers<[1], [0], [0], [1], [0, 0, 1, 1], [], []>} : vector<8x288xbf16>, vector<288x8xbf16>, vector<8x8xf32> -> vector<8x8xf32>
    %25 = vector.broadcast %2 : vector<8x1xf32> to vector<8x8xf32>
    %26 = arith.addf %24, %25 : vector<8x8xf32>
    %cst_15 = arith.constant dense<0.000000e+00> : vector<8xf32>
    %27 = vector.multi_reduction <add>, %11, %cst_15 [1] : vector<8x8xf32> to vector<8xf32>
    %28 = vector.shape_cast %27 : vector<8xf32> to vector<8x1xf32>
    %cst_16 = arith.constant 0.000000e+00 : f32
    %29 = vector.broadcast %cst_16 : f32 to vector<8x1xf32>
    %30 = arith.addf %29, %28 : vector<8x1xf32>
    %cst_17 = arith.constant dense<0.000000e+00> : vector<8xf32>
    %31 = vector.multi_reduction <add>, %16, %cst_17 [1] : vector<8x8xf32> to vector<8xf32>
    %32 = vector.shape_cast %31 : vector<8xf32> to vector<8x1xf32>
    %33 = arith.addf %30, %32 : vector<8x1xf32>
    %cst_18 = arith.constant dense<0.000000e+00> : vector<8xf32>
    %34 = vector.multi_reduction <add>, %21, %cst_18 [1] : vector<8x8xf32> to vector<8xf32>
    %35 = vector.shape_cast %34 : vector<8xf32> to vector<8x1xf32>
    %36 = arith.addf %33, %35 : vector<8x1xf32>
    %cst_19 = arith.constant dense<0.000000e+00> : vector<8xf32>
    %37 = vector.multi_reduction <add>, %26, %cst_19 [1] : vector<8x8xf32> to vector<8xf32>
    %38 = vector.shape_cast %37 : vector<8xf32> to vector<8x1xf32>
    %39 = arith.addf %36, %38 : vector<8x1xf32>
    %cst_20 = arith.constant 3.125000e-02 : f32
    %40 = vector.broadcast %cst_20 : f32 to vector<8x1xf32>
    %41 = arith.mulf %39, %40 : vector<8x1xf32>
    %42 = arith.mulf %11, %11 : vector<8x8xf32>
    %cst_21 = arith.constant dense<0.000000e+00> : vector<8xf32>
    %43 = vector.multi_reduction <add>, %42, %cst_21 [1] : vector<8x8xf32> to vector<8xf32>
    %44 = vector.shape_cast %43 : vector<8xf32> to vector<8x1xf32>
    %cst_22 = arith.constant 0.000000e+00 : f32
    %45 = vector.broadcast %cst_22 : f32 to vector<8x1xf32>
    %46 = arith.addf %45, %44 : vector<8x1xf32>
    %47 = arith.mulf %16, %16 : vector<8x8xf32>
    %cst_23 = arith.constant dense<0.000000e+00> : vector<8xf32>
    %48 = vector.multi_reduction <add>, %47, %cst_23 [1] : vector<8x8xf32> to vector<8xf32>
    %49 = vector.shape_cast %48 : vector<8xf32> to vector<8x1xf32>
    %50 = arith.addf %46, %49 : vector<8x1xf32>
    %51 = arith.mulf %21, %21 : vector<8x8xf32>
    %cst_24 = arith.constant dense<0.000000e+00> : vector<8xf32>
    %52 = vector.multi_reduction <add>, %51, %cst_24 [1] : vector<8x8xf32> to vector<8xf32>
    %53 = vector.shape_cast %52 : vector<8xf32> to vector<8x1xf32>
    %54 = arith.addf %50, %53 : vector<8x1xf32>
    %55 = arith.mulf %26, %26 : vector<8x8xf32>
    %cst_25 = arith.constant dense<0.000000e+00> : vector<8xf32>
    %56 = vector.multi_reduction <add>, %55, %cst_25 [1] : vector<8x8xf32> to vector<8xf32>
    %57 = vector.shape_cast %56 : vector<8xf32> to vector<8x1xf32>
    %58 = arith.addf %54, %57 : vector<8x1xf32>
    %cst_26 = arith.constant 3.125000e-02 : f32
    %59 = vector.broadcast %cst_26 : f32 to vector<8x1xf32>
    %60 = arith.mulf %58, %59 : vector<8x1xf32>
    %61 = arith.mulf %41, %41 : vector<8x1xf32>
    %62 = arith.subf %60, %61 : vector<8x1xf32>
    %cst_27 = arith.constant 9.99999974E-6 : f32
    %63 = vector.broadcast %cst_27 : f32 to vector<8x1xf32>
    %64 = arith.addf %62, %63 : vector<8x1xf32>
    %65 = math.rsqrt %64 : vector<8x1xf32>
    %66 = arith.mulf %3, %65 : vector<8x1xf32>
    %67 = arith.mulf %41, %66 : vector<8x1xf32>
    %68 = arith.subf %4, %67 : vector<8x1xf32>
    %69 = vector.broadcast %66 : vector<8x1xf32> to vector<8x8xf32>
    %70 = arith.mulf %11, %69 : vector<8x8xf32>
    %71 = vector.broadcast %68 : vector<8x1xf32> to vector<8x8xf32>
    %72 = arith.addf %70, %71 : vector<8x8xf32>
    %cst_28 = arith.constant 0.000000e+00 : f32
    %73 = vector.broadcast %cst_28 : f32 to vector<8x8xf32>
    %74 = arith.maximumf %72, %73 : vector<8x8xf32>
    %75 = vector.broadcast %66 : vector<8x1xf32> to vector<8x8xf32>
    %76 = arith.mulf %16, %75 : vector<8x8xf32>
    %77 = vector.broadcast %68 : vector<8x1xf32> to vector<8x8xf32>
    %78 = arith.addf %76, %77 : vector<8x8xf32>
    %cst_29 = arith.constant 0.000000e+00 : f32
    %79 = vector.broadcast %cst_29 : f32 to vector<8x8xf32>
    %80 = arith.maximumf %78, %79 : vector<8x8xf32>
    %81 = vector.broadcast %66 : vector<8x1xf32> to vector<8x8xf32>
    %82 = arith.mulf %21, %81 : vector<8x8xf32>
    %83 = vector.broadcast %68 : vector<8x1xf32> to vector<8x8xf32>
    %84 = arith.addf %82, %83 : vector<8x8xf32>
    %cst_30 = arith.constant 0.000000e+00 : f32
    %85 = vector.broadcast %cst_30 : f32 to vector<8x8xf32>
    %86 = arith.maximumf %84, %85 : vector<8x8xf32>
    %87 = vector.broadcast %66 : vector<8x1xf32> to vector<8x8xf32>
    %88 = arith.mulf %26, %87 : vector<8x8xf32>
    %89 = vector.broadcast %68 : vector<8x1xf32> to vector<8x8xf32>
    %90 = arith.addf %88, %89 : vector<8x8xf32>
    %cst_31 = arith.constant 0.000000e+00 : f32
    %91 = vector.broadcast %cst_31 : f32 to vector<8x8xf32>
    %92 = arith.maximumf %90, %91 : vector<8x8xf32>
    %93 = arith.maximumf %74, %80 : vector<8x8xf32>
    %94 = arith.maximumf %86, %92 : vector<8x8xf32>
    %95 = arith.maximumf %93, %94 : vector<8x8xf32>
    %cst_32 = arith.constant dense<0.000000e+00> : vector<8xf32>
    %96 = vector.multi_reduction <add>, %95, %cst_32 [1] : vector<8x8xf32> to vector<8xf32>
    %97 = vector.shape_cast %96 : vector<8xf32> to vector<8x1xf32>
    %cst_33 = arith.constant 1.250000e-01 : f32
    %98 = vector.broadcast %cst_33 : f32 to vector<8x1xf32>
    %99 = arith.mulf %97, %98 : vector<8x1xf32>
    %100 = arith.mulf %95, %95 : vector<8x8xf32>
    %cst_34 = arith.constant dense<0.000000e+00> : vector<8xf32>
    %101 = vector.multi_reduction <add>, %100, %cst_34 [1] : vector<8x8xf32> to vector<8xf32>
    %102 = vector.shape_cast %101 : vector<8xf32> to vector<8x1xf32>
    %cst_35 = arith.constant 1.250000e-01 : f32
    %103 = vector.broadcast %cst_35 : f32 to vector<8x1xf32>
    %104 = arith.mulf %102, %103 : vector<8x1xf32>
    %105 = arith.mulf %99, %99 : vector<8x1xf32>
    %106 = arith.subf %104, %105 : vector<8x1xf32>
    %cst_36 = arith.constant 9.99999974E-6 : f32
    %107 = vector.broadcast %cst_36 : f32 to vector<8x1xf32>
    %108 = arith.addf %106, %107 : vector<8x1xf32>
    %109 = math.rsqrt %108 : vector<8x1xf32>
    %110 = arith.mulf %5, %109 : vector<8x1xf32>
    %111 = arith.mulf %99, %110 : vector<8x1xf32>
    %112 = arith.subf %6, %111 : vector<8x1xf32>
    %113 = vector.broadcast %110 : vector<8x1xf32> to vector<8x8xf32>
    %114 = arith.mulf %95, %113 : vector<8x8xf32>
    %115 = vector.broadcast %112 : vector<8x1xf32> to vector<8x8xf32>
    %116 = arith.addf %114, %115 : vector<8x8xf32>
    %c0_37 = arith.constant 0 : index
    %c0_38 = arith.constant 0 : index
    %117 = vector.load %arg3[%c0_37, %c0_38] : memref<8x8xf32, #tpu.memory_space<vmem>>, vector<8x8xf32>
    tpu.vector_store %arg3[%c0_37, %c0_38], %116 {strides = array<i32>} : memref<8x8xf32, #tpu.memory_space<vmem>>, vector<8x8xf32>,
    return
  }
}

module attributes {stable_mosaic.version = 11 : i64} {
  func.func @_conv_bn_relu_residual_kernel(%arg0: memref<72x8xbf16, #tpu.memory_space<vmem>>, %arg1: memref<8x72xbf16, #tpu.memory_space<vmem>>, %arg2: memref<8x8xf32, #tpu.memory_space<vmem>>, %arg3: memref<8x8xf32, #tpu.memory_space<vmem>>, %arg4: memref<8x8xf32, #tpu.memory_space<vmem>>) attributes {dimension_semantics = [], scalar_prefetch = 0 : i64, scratch_operands = 0 : i64, tpu.core_type = #tpu.core_type<tc>} {
    %c0 = arith.constant 0 : index
    %c0_0 = arith.constant 0 : index
    %0 = vector.load %arg2[%c0, %c0_0] : memref<8x8xf32, #tpu.memory_space<vmem>>, vector<8x8xf32>
    %1 = vector.extract_strided_slice %0 {offsets = [0, 0], sizes = [8, 1], strides = [1, 1]} : vector<8x8xf32> to vector<8x1xf32>
    %2 = vector.extract_strided_slice %0 {offsets = [0, 1], sizes = [8, 1], strides = [1, 1]} : vector<8x8xf32> to vector<8x1xf32>
    %3 = vector.extract_strided_slice %0 {offsets = [0, 2], sizes = [8, 1], strides = [1, 1]} : vector<8x8xf32> to vector<8x1xf32>
    %c0_1 = arith.constant 0 : index
    %c0_2 = arith.constant 0 : index
    %4 = vector.load %arg1[%c0_1, %c0_2] : memref<8x72xbf16, #tpu.memory_space<vmem>>, vector<8x72xbf16>
    %c0_3 = arith.constant 0 : index
    %c0_4 = arith.constant 0 : index
    %5 = vector.load %arg0[%c0_3, %c0_4] : memref<72x8xbf16, #tpu.memory_space<vmem>>, vector<72x8xbf16>
    %cst = arith.constant dense<0.000000e+00> : vector<8x8xf32>
    %6 = tpu.matmul %4, %5, %cst {dimension_numbers = #tpu.dot_dimension_numbers<[1], [0], [0], [1], [0, 0, 1, 1], [], []>} : vector<8x72xbf16>, vector<72x8xbf16>, vector<8x8xf32> -> vector<8x8xf32>
    %7 = vector.broadcast %1 : vector<8x1xf32> to vector<8x8xf32>
    %8 = arith.addf %6, %7 : vector<8x8xf32>
    %cst_5 = arith.constant dense<0.000000e+00> : vector<8xf32>
    %9 = vector.multi_reduction <add>, %8, %cst_5 [1] : vector<8x8xf32> to vector<8xf32>
    %10 = vector.shape_cast %9 : vector<8xf32> to vector<8x1xf32>
    %cst_6 = arith.constant 1.250000e-01 : f32
    %11 = vector.broadcast %cst_6 : f32 to vector<8x1xf32>
    %12 = arith.mulf %10, %11 : vector<8x1xf32>
    %13 = arith.mulf %8, %8 : vector<8x8xf32>
    %cst_7 = arith.constant dense<0.000000e+00> : vector<8xf32>
    %14 = vector.multi_reduction <add>, %13, %cst_7 [1] : vector<8x8xf32> to vector<8xf32>
    %15 = vector.shape_cast %14 : vector<8xf32> to vector<8x1xf32>
    %cst_8 = arith.constant 1.250000e-01 : f32
    %16 = vector.broadcast %cst_8 : f32 to vector<8x1xf32>
    %17 = arith.mulf %15, %16 : vector<8x1xf32>
    %18 = arith.mulf %12, %12 : vector<8x1xf32>
    %19 = arith.subf %17, %18 : vector<8x1xf32>
    %cst_9 = arith.constant 9.99999974E-6 : f32
    %20 = vector.broadcast %cst_9 : f32 to vector<8x1xf32>
    %21 = arith.addf %19, %20 : vector<8x1xf32>
    %22 = math.rsqrt %21 : vector<8x1xf32>
    %23 = arith.mulf %2, %22 : vector<8x1xf32>
    %24 = arith.mulf %12, %23 : vector<8x1xf32>
    %25 = arith.subf %3, %24 : vector<8x1xf32>
    %26 = vector.broadcast %23 : vector<8x1xf32> to vector<8x8xf32>
    %27 = arith.mulf %8, %26 : vector<8x8xf32>
    %28 = vector.broadcast %25 : vector<8x1xf32> to vector<8x8xf32>
    %29 = arith.addf %27, %28 : vector<8x8xf32>
    %cst_10 = arith.constant 0.000000e+00 : f32
    %30 = vector.broadcast %cst_10 : f32 to vector<8x8xf32>
    %31 = arith.maximumf %29, %30 : vector<8x8xf32>
    %c0_11 = arith.constant 0 : index
    %c0_12 = arith.constant 0 : index
    %32 = vector.load %arg3[%c0_11, %c0_12] : memref<8x8xf32, #tpu.memory_space<vmem>>, vector<8x8xf32>
    %33 = arith.addf %31, %32 : vector<8x8xf32>
    %cst_13 = arith.constant 0.000000e+00 : f32
    %34 = vector.broadcast %cst_13 : f32 to vector<8x8xf32>
    %35 = arith.maximumf %33, %34 : vector<8x8xf32>
    %c0_14 = arith.constant 0 : index
    %c0_15 = arith.constant 0 : index
    %36 = vector.load %arg4[%c0_14, %c0_15] : memref<8x8xf32, #tpu.memory_space<vmem>>, vector<8x8xf32>
    tpu.vector_store %arg4[%c0_14, %c0_15], %35 {strides = array<i32>} : memref<8x8xf32, #tpu.memory_space<vmem>>, vector<8x8xf32>,
    return
  }
}

</mosaic_0001>

<bundles_post_ra>
// kernel: model_heatmap_resnet_forward.7
= control target key start
LH: loop header
LB: loop body
LE: loop exit
PB: predicated region body
PF: predicated region fallthrough
CT: control target
= control target key end

     0   :  { %8 = vsyncpa [#allocation3], 0  ;;  %s439_s12 = smov [#allocation2]   ;;  %s637_s0 = inlined_call_operand.vmem [shape: bf16[9,512], index: 0, kind: input, shape index: {}]   ;;  %s638_s1 = inlined_call_operand.hbm [shape: bf16[16,9], index: 1, kind: input, shape index: {}]   ;;  %s639_s2 = inlined_call_operand.vmem [shape: f32[16,8], index: 2, kind: input, shape index: {}]   ;;  %s640_s3 = inlined_call_operand.vmem [shape: f32[16,512], index: 3, kind: output, shape index: {}]  }
   0x1   :  { %s16_s13 = sshll.u32 %s439_s12, 4  ;;  %s415_s16 = scalar_lea.hbm %s638_s1, 128  ;;  %s17_s13 = int_to_ptr.vmem [resolvable:$true] %s16_s13 }
   0x2   :  { %p416_p0 = scmp.ne.s32.totalorder %s638_s1, %s415_s16  ;;  %p419_p1 = scmp.lt.u32.totalorder %s415_s16, %s638_s1 }
   0x4   :  { %p421_p2 = pnand %p419_p1, %p416_p0 }
   0x6   :  { %424 = shalt.err (!%p421_p2)
}
   0x7   :  { %s425_s21 = scalar_lea.vmem %s17_s13, 128  ;;  %p430_p4 = scmp.lt.s32.totalorder %s17_s13, %s17_s13 }
   0x8   :  { %p426_p3 = scmp.ne.s32.totalorder %s17_s13, %s425_s21  ;;  %p431_p5 = scmp.lt.s32.totalorder %s425_s21, %s425_s21 }
   0xa   :  { %p432_p6 = por %p431_p5, %p430_p4 }
   0xc   :  { %p433_p7 = pnand %p432_p6, %p426_p3 }
   0xe   :  { %436 = shalt.err (!%p433_p7)
}
   0xf   :  { %s440_s22 = smov 64   ;;  %s441_s23 = smov 4  }
  0x10   :  { %22 = dma.hbm_to_vmem [thread:$0]  %s638_s1, 128, %s17_s13, [#allocation3], %s440_s22, %s440_s22, %s441_s23  }
  0x11   :  { %437 = dma.done.wait [#allocation3], 128  }
  0x12   :  { %438 = vsyncadd [#allocation3], 4294967168  ;;  %vm72_vm0 = vcmask 1043456   ;;  %v442_v0 = vmov 0   ;;  %vm73_vm1 = vcmask 1044480   ;;  %v443_v1 = vmov 65535  }
  0x13   :  { %120 = vmatprep.mubr.bf16.mxu0 %v442_v0  ;;  %163 = vmatprep.mubr.bf16.mxu1 %v442_v0  ;;  %v74_v2 = vsel %vm72_vm0, 4294967295, %v443_v1  ;;  %v400_v4 = vld [vmem:[%s637_s0 + $0x4] ss:$16 sps:$4 sm:$0x1f]   ;;  %vm68_vm2 = vcmask 72704   ;;  %v502_v14 = vld [vmem:[%s639_s2 + $0x8] sm:$0xff] }
  0x14   :  { %392 = vset.pattern.permute.xlu0 %v442_v0  ;;  %v75_v3 = vsel %vm73_vm1, %v74_v2, 0  ;;  %v402_v5 = vld [vmem:[%s637_s0 + $0xc] ss:$16 sps:$4 sm:$0x1f]   ;;  %v496_v12 = vld [vmem:[%s639_s2] sm:$0xff]  ;;  %v444_v53 = vmov 1  }
  0x15   :  { %v80_v6 = vand.u32 %v400_v4, %v75_v3  ;;  %v404_v7 = vld [vmem:[%s637_s0] ss:$16 sps:$4 sm:$0x1f]   ;;  %v405_v8 = vld [vmem:[%s637_s0 + $0x8] ss:$16 sps:$4 sm:$0x1f]   ;;  %v86_v9 = vand.u32 %v402_v5, %v75_v3  ;;  %39 = vperm.xlu0 %392, %v496_v12   ;;  %393 = vset.pattern.permute.xlu1 %v444_v53 }
  0x16   :  { %v77_v10 = vand.u32 %v404_v7, %v75_v3  ;;  %v83_v11 = vand.u32 %v405_v8, %v75_v3  ;;  %v406_v13 = vld [vmem:[#allocation2] sm:$0xff]   ;;  %v445_v3 = vmov 2   ;;  %s446_s0 = smov 1  }
  0x17   :  { %88 = vmatprep.subr.bf16.mxu0 %v80_v6  ;;  %131 = vmatprep.subr.bf16.mxu1 %v86_v9 }
  0x18   :  { %89 = vmatpush1.bf16.msra.mxu0 %v77_v10  ;;  %132 = vmatpush1.bf16.msra.mxu1 %v83_v11 }
  0x19   :  { %44 = vperm.xlu0 %392, %v502_v14  }
  0x1b   :  { %380 = vmatmul.mubr.msk.bf16.vlgmr.msra.gmra.mrb[0].mxu0 %vm68_vm2, %v406_v13  ;;  %381 = vmatmul.mubr.msk.bf16.vlgmr.msra.gmra.mrb[0].mxu1 %vm68_vm2, %v406_v13 }
  0x1d   :  { %394 = vset.pattern.permute.xlu0 %v445_v3 }
  0x94   :  { %v40_v15 = vpop.permute.xlu0 %39 }
  0x98   :  { %v45_v16 = vpop.permute.xlu0 %44 }
  0xee   :  { %v122_v17 = vpop.f32.mrb[0].mxu0  ;;  %v165_v18 = vpop.f32.mrb[0].mxu1 }
  0xef   :  { %v505_v19 = vadd.f32 %v122_v17, %v40_v15  ;;  %v507_v20 = vadd.f32 %v165_v18, %v40_v15  ;;  %v124_v21 = vpop.f32.mrb[1].mxu0  ;;  %v167_v22 = vpop.f32.mrb[1].mxu1 }
  0xf0   :  { %v509_v23 = vadd.f32 %v124_v21, %v40_v15  ;;  %v126_v24 = vpop.f32.mrb[2].mxu0  ;;  %v169_v25 = vpop.f32.mrb[2].mxu1  ;;  %v513_v27 = vadd.f32 %v167_v22, %v40_v15 }
  0xf1   :  { %v186_v26 = vmul.f32 %v505_v19, %v505_v19  ;;  %v515_v28 = vadd.f32 %v126_v24, %v45_v16  ;;  %v128_v29 = vpop.f32.mrb[3].mxu0  ;;  %v171_v30 = vpop.f32.mrb[3].mxu1  ;;  %v188_v34 = vmul.f32 %v507_v20, %v507_v20  ;;  %v527_v36 = vadd.f32 %v169_v25, %v45_v16 }
  0xf2   :  { %v187_v31 = vmul.f32 %v509_v23, %v509_v23  ;;  %v519_v32 = vadd.f32 %v128_v29, %v45_v16  ;;  %v174_v33 = vadd.f32 %v509_v23, %v505_v19  ;;  %v189_v41 = vmul.f32 %v513_v27, %v513_v27 }
  0xf3   :  { %v190_v35 = vmul.f32 %v515_v28, %v515_v28  ;;  %v192_v46 = vmul.f32 %v527_v36, %v527_v36  ;;  %v540_v47 = vadd.f32 %v171_v30, %v45_v16 }
  0xf4   :  { %v179_v37 = vadd.f32 %v519_v32, %v515_v28  ;;  %v191_v38 = vmul.f32 %v519_v32, %v519_v32  ;;  %v175_v39 = vadd.f32 %v174_v33, %v507_v20  ;;  %v194_v40 = vadd.f32 %v187_v31, %v186_v26 }
  0xf5   :  { %v193_v51 = vmul.f32 %v540_v47, %v540_v47 }
  0xf6   :  { %v176_v42 = vadd.f32 %v175_v39, %v513_v27  ;;  %v195_v43 = vadd.f32 %v194_v40, %v188_v34  ;;  %v180_v44 = vadd.f32 %v179_v37, %v527_v36  ;;  %v199_v45 = vadd.f32 %v191_v38, %v190_v35 }
  0xf8   :  { %177 = vadd.xlane.f32.xlu1 %v176_v42  ;;  %v196_v48 = vadd.f32 %v195_v43, %v189_v41  ;;  %v181_v49 = vadd.f32 %v180_v44, %v540_v47  ;;  %v200_v50 = vadd.f32 %v199_v45, %v192_v46 }
  0xfa   :  { %197 = vadd.xlane.f32.xlu0 %v196_v48  ;;  %v201_v52 = vadd.f32 %v200_v50, %v193_v51 }
  0xfc   :  { %182 = vadd.xlane.f32.xlu1 %v181_v49 }
 0x100   :  { %202 = vadd.xlane.f32.xlu1 %v201_v52 }
 0x185   :  { %v178_v54 = vpop.xlane.xlu1 %177 }
 0x186   :  { %v184_v55 = vmul.f32 0.001953125, %v178_v54 }
 0x187   :  { %v198_v56 = vpop.xlane.xlu0 %197 }
 0x188   :  { %v206_v57 = vmul.f32 %v184_v55, %v184_v55  ;;  %v204_v58 = vmul.f32 0.001953125, %v198_v56 }
 0x189   :  { %v183_v59 = vpop.xlane.xlu1 %182 }
 0x18a   :  { %v208_v60 = vsub.f32 %v204_v58, %v206_v57  ;;  %v185_v61 = vmul.f32 0.001953125, %v183_v59 }
 0x18c   :  { %v210_v62 = vadd.f32 1e-05, %v208_v60  ;;  %v207_v0 = vmul.f32 %v185_v61, %v185_v61 }
 0x18d   :  { %v203_v63 = vpop.xlane.xlu1 %202 }
 0x18e   :  { %407 = vrsqrt.f32 %v210_v62  ;;  %v205_v1 = vmul.f32 0.001953125, %v203_v63 }
 0x190   :  { %v209_v2 = vsub.f32 %v205_v1, %v207_v0  ;;  %v447_v1 = vmov 3  }
 0x192   :  { %v211_v4 = vadd.f32 1e-05, %v209_v2 }
 0x194   :  { %409 = vrsqrt.f32 %v211_v4 }
 0x198   :  { %v408_v5 = vpop.eup %407 }
 0x199   :  { %v214_v6 = vmul.f32 %v408_v5, %v496_v12 }
 0x19b   :  { %v216_v7 = vmul.f32 %v214_v6, %v184_v55 }
 0x19d   :  { %220 = vrot.lane.b32.xlu1 %v216_v7, %s446_s0 }
 0x19e   :  { %v410_v8 = vpop.eup %409 }
 0x19f   :  { %v215_v9 = vmul.f32 %v410_v8, %v502_v14 }
 0x1a1   :  { %v217_v10 = vmul.f32 %v215_v9, %v185_v61 }
 0x1a3   :  { %222 = vrot.lane.b32.xlu1 %v217_v10, %s446_s0 }
 0x1a7   :  { %230 = vperm.xlu1 %393, %v214_v6  }
 0x1ab   :  { %235 = vperm.xlu1 %393, %v215_v9  }
 0x1af   :  { %395 = vset.pattern.permute.xlu1 %v445_v3 }
 0x20f   :  { %v221_v11 = vpop.permute.xlu1 %220 }
 0x210   :  { %v226_v13 = vsub.f32 %v496_v12, %v221_v11 }
 0x212   :  { %248 = vperm.xlu0 %394, %v226_v13  }
 0x215   :  { %v223_v15 = vpop.permute.xlu1 %222 }
 0x216   :  { %v227_v16 = vsub.f32 %v502_v14, %v223_v15  ;;  %397 = vset.pattern.permute.xlu0 %v447_v1 }
 0x218   :  { %253 = vperm.xlu1 %395, %v227_v16  }
 0x21c   :  { %396 = vset.pattern.permute.xlu1 %v447_v1 }
 0x226   :  { %v231_v17 = vpop.permute.xlu1 %230 }
 0x227   :  { %v238_v18 = vmul.f32 %v231_v17, %v505_v19  ;;  %v239_v21 = vmul.f32 %v231_v17, %v509_v23  ;;  %v240_v22 = vmul.f32 %v231_v17, %v507_v20  ;;  %v241_v24 = vmul.f32 %v231_v17, %v513_v27 }
 0x22a   :  { %v236_v26 = vpop.permute.xlu1 %235 }
 0x22b   :  { %v242_v37 = vmul.f32 %v236_v26, %v515_v28  ;;  %v243_v19 = vmul.f32 %v236_v26, %v519_v32  ;;  %v244_v20 = vmul.f32 %v236_v26, %v527_v36  ;;  %v245_v28 = vmul.f32 %v236_v26, %v540_v47 }
 0x291   :  { %v249_v25 = vpop.permute.xlu0 %248 }
 0x292   :  { %v256_v29 = vadd.f32 %v249_v25, %v238_v18  ;;  %v257_v30 = vadd.f32 %v249_v25, %v239_v21  ;;  %v258_v31 = vadd.f32 %v249_v25, %v240_v22  ;;  %v259_v33 = vadd.f32 %v249_v25, %v241_v24 }
 0x294   :  { %v555_v34 = vmax.f32 %v256_v29, 0.0  ;;  %v557_v35 = vmax.f32 %v257_v30, 0.0  ;;  %v561_v38 = vmax.f32 %v258_v31, 0.0  ;;  %v570_v41 = vmax.f32 %v259_v33, 0.0 }
 0x295   :  { %v448_v29 = vmov 4  }
 0x296   :  { %v272_v23 = vadd.f32 %v557_v35, %v555_v34  ;;  %v284_v27 = vmul.f32 %v555_v34, %v555_v34  ;;  %v285_v39 = vmul.f32 %v557_v35, %v557_v35  ;;  %v286_v36 = vmul.f32 %v561_v38, %v561_v38 }
 0x297   :  { %v254_v40 = vpop.permute.xlu1 %253  ;;  %v287_v47 = vmul.f32 %v570_v41, %v570_v41 }
 0x298   :  { %v260_v42 = vadd.f32 %v254_v40, %v242_v37  ;;  %v261_v32 = vadd.f32 %v254_v40, %v243_v19  ;;  %v262_v43 = vadd.f32 %v254_v40, %v244_v20  ;;  %v273_v44 = vadd.f32 %v272_v23, %v561_v38 }
 0x299   :  { %v292_v45 = vadd.f32 %v285_v39, %v284_v27  ;;  %v263_v46 = vadd.f32 %v254_v40, %v245_v28 }
 0x29a   :  { %v576_v48 = vmax.f32 %v260_v42, 0.0  ;;  %v578_v49 = vmax.f32 %v261_v32, 0.0  ;;  %v580_v50 = vmax.f32 %v262_v43, 0.0  ;;  %v274_v51 = vadd.f32 %v273_v44, %v570_v41 }
 0x29b   :  { %v293_v52 = vadd.f32 %v292_v45, %v286_v36  ;;  %v591_v57 = vmax.f32 %v263_v46, 0.0 }
 0x29c   :  { %v277_v53 = vadd.f32 %v578_v49, %v576_v48  ;;  %v288_v54 = vmul.f32 %v576_v48, %v576_v48  ;;  %v289_v55 = vmul.f32 %v578_v49, %v578_v49  ;;  %275 = vadd.xlane.f32.xlu1 %v274_v51  ;;  %v290_v59 = vmul.f32 %v580_v50, %v580_v50 }
 0x29d   :  { %v294_v56 = vadd.f32 %v293_v52, %v287_v47  ;;  %v291_v63 = vmul.f32 %v591_v57, %v591_v57 }
 0x29e   :  { %v278_v58 = vadd.f32 %v277_v53, %v580_v50  ;;  %v297_v60 = vadd.f32 %v289_v55, %v288_v54 }
 0x29f   :  { %295 = vadd.xlane.f32.xlu0 %v294_v56 }
 0x2a0   :  { %v279_v61 = vadd.f32 %v278_v58, %v591_v57  ;;  %v298_v62 = vadd.f32 %v297_v60, %v290_v59 }
 0x2a2   :  { %280 = vadd.xlane.f32.xlu1 %v279_v61  ;;  %v299_v0 = vadd.f32 %v298_v62, %v291_v63 }
 0x2a6   :  { %300 = vadd.xlane.f32.xlu1 %v299_v0 }
 0x329   :  { %v276_v2 = vpop.xlane.xlu1 %275 }
 0x32a   :  { %v282_v3 = vmul.f32 0.001953125, %v276_v2 }
 0x32c   :  { %v296_v4 = vpop.xlane.xlu0 %295  ;;  %v304_v5 = vmul.f32 %v282_v3, %v282_v3 }
 0x32d   :  { %v302_v6 = vmul.f32 0.001953125, %v296_v4 }
 0x32f   :  { %v306_v7 = vsub.f32 %v302_v6, %v304_v5  ;;  %v281_v8 = vpop.xlane.xlu1 %280 }
 0x330   :  { %v283_v9 = vmul.f32 0.001953125, %v281_v8 }
 0x331   :  { %v308_v10 = vadd.f32 1e-05, %v306_v7 }
 0x332   :  { %v305_v13 = vmul.f32 %v283_v9, %v283_v9 }
 0x333   :  { %411 = vrsqrt.f32 %v308_v10  ;;  %v301_v11 = vpop.xlane.xlu1 %300 }
 0x334   :  { %v303_v15 = vmul.f32 0.001953125, %v301_v11 }
 0x336   :  { %v307_v16 = vsub.f32 %v303_v15, %v305_v13 }
 0x338   :  { %v309_v17 = vadd.f32 1e-05, %v307_v16 }
 0x33a   :  { %413 = vrsqrt.f32 %v309_v17 }
 0x33d   :  { %v412_v18 = vpop.eup %411 }
 0x33e   :  { %v312_v21 = vmul.f32 %v412_v18, %v496_v12 }
 0x340   :  { %v314_v22 = vmul.f32 %v312_v21, %v282_v3 }
 0x342   :  { %318 = vrot.lane.b32.xlu1 %v314_v22, %s446_s0 }
 0x344   :  { %v414_v24 = vpop.eup %413 }
 0x345   :  { %v313_v25 = vmul.f32 %v414_v24, %v502_v14 }
 0x347   :  { %333 = vperm.xlu0 %397, %v313_v25   ;;  %v315_v26 = vmul.f32 %v313_v25, %v283_v9 }
 0x349   :  { %320 = vrot.lane.b32.xlu1 %v315_v26, %s446_s0 }
 0x34b   :  { %399 = vset.pattern.permute.xlu0 %v448_v29 }
 0x34d   :  { %328 = vperm.xlu1 %396, %v312_v21  }
 0x351   :  { %398 = vset.pattern.permute.xlu1 %v448_v29 }
 0x3b4   :  { %v319_v30 = vpop.permute.xlu1 %318 }
 0x3b5   :  { %v324_v31 = vsub.f32 %v496_v12, %v319_v30 }
 0x3b7   :  { %346 = vperm.xlu1 %398, %v324_v31  }
 0x3bb   :  { %v321_v33 = vpop.permute.xlu1 %320 }
 0x3bc   :  { %v325_v37 = vsub.f32 %v502_v14, %v321_v33 }
 0x3be   :  { %351 = vperm.xlu1 %398, %v325_v37  }
 0x3c6   :  { %v334_v12 = vpop.permute.xlu0 %333 }
 0x3c7   :  { %v340_v14 = vmul.f32 %v334_v12, %v576_v48 }
 0x3cc   :  { %v329_v19 = vpop.permute.xlu1 %328 }
 0x3cd   :  { %v336_v20 = vmul.f32 %v329_v19, %v555_v34  ;;  %v337_v23 = vmul.f32 %v329_v19, %v557_v35  ;;  %v338_v27 = vmul.f32 %v329_v19, %v561_v38  ;;  %v339_v39 = vmul.f32 %v329_v19, %v570_v41 }
 0x3ce   :  { %v341_v34 = vmul.f32 %v334_v12, %v578_v49  ;;  %v342_v35 = vmul.f32 %v334_v12, %v580_v50  ;;  %v343_v38 = vmul.f32 %v334_v12, %v591_v57 }
 0x436   :  { %v347_v40 = vpop.permute.xlu1 %346 }
 0x437   :  { %v354_v28 = vadd.f32 %v347_v40, %v336_v20  ;;  %v355_v42 = vadd.f32 %v347_v40, %v337_v23  ;;  %v356_v32 = vadd.f32 %v347_v40, %v338_v27  ;;  %v357_v43 = vadd.f32 %v347_v40, %v339_v39 }
 0x439   :  { %362 = vst [vmem:[%s640_s3] sm:$0xff] %v354_v28  ;;  %363 = vst [vmem:[%s640_s3 + $0x8] sm:$0xff] %v355_v42 }
 0x43a   :  { %364 = vst [vmem:[%s640_s3 + $0x10] sm:$0xff] %v356_v32  ;;  %365 = vst [vmem:[%s640_s3 + $0x18] sm:$0xff] %v357_v43 }
 0x43d   :  { %v352_v41 = vpop.permute.xlu1 %351 }
 0x43e   :  { %v358_v44 = vadd.f32 %v352_v41, %v340_v14  ;;  %v359_v36 = vadd.f32 %v352_v41, %v341_v34  ;;  %v360_v45 = vadd.f32 %v352_v41, %v342_v35  ;;  %v361_v46 = vadd.f32 %v352_v41, %v343_v38 }
 0x440   :  { %366 = vst [vmem:[%s640_s3 + $0x20] sm:$0xff] %v358_v44  ;;  %367 = vst [vmem:[%s640_s3 + $0x28] sm:$0xff] %v359_v36 }
 0x441   :  { %368 = vst [vmem:[%s640_s3 + $0x30] sm:$0xff] %v360_v45  ;;  %369 = vst [vmem:[%s640_s3 + $0x38] sm:$0xff] %v361_v46 }
 0x442   :  { %374 = vsyncpa [#allocation3], 1 }

// kernel: model_heatmap_resnet_forward.8
= control target key start
LH: loop header
LB: loop body
LE: loop exit
PB: predicated region body
PF: predicated region fallthrough
CT: control target
= control target key end

     0   :  { %v1123_v0 = vmov 0   ;;  %vm133_vm0 = vcmask 130048   ;;  %s1531_s0 = inlined_call_operand.vmem [shape: bf16[4,144,128], index: 0, kind: input, shape index: {}]   ;;  %s1532_s1 = inlined_call_operand.vmem [shape: bf16[32,144], index: 1, kind: input, shape index: {}]   ;;  %s1533_s2 = inlined_call_operand.vmem [shape: f32[32,8], index: 2, kind: input, shape index: {}]   ;;  %s1534_s3 = inlined_call_operand.vmem [shape: f32[32,128], index: 3, kind: output, shape index: {}]  }
   0x1   :  { %140 = vmatprep.subr.bf16.mxu0 %v1123_v0  ;;  %262 = vmatprep.subr.bf16.mxu1 %v1123_v0  ;;  %v1065_v1 = vld [vmem:[%s1531_s0] sm:$0xff]   ;;  %v1066_v2 = vld [vmem:[%s1531_s0 + $0x48] sm:$0xff]   ;;  %v1068_v4 = vld [vmem:[%s1531_s0 + $0x50] sm:$0xff]  }
   0x2   :  { %1055 = vset.pattern.permute.xlu0 %v1123_v0  ;;  %1056 = vset.pattern.permute.xlu1 %v1123_v0  ;;  %v1067_v3 = vld [vmem:[%s1531_s0 + $0x8] sm:$0xff]   ;;  %v1069_v5 = vld [vmem:[%s1531_s0 + $0x10] sm:$0xff]   ;;  %v1070_v6 = vld [vmem:[%s1531_s0 + $0x58] sm:$0xff]  }
   0x3   :  { %141 = vmatpush1.bf16.msra.mxu0 %v1065_v1  ;;  %263 = vmatpush1.bf16.msra.mxu1 %v1066_v2  ;;  %v1071_v7 = vld [vmem:[%s1531_s0 + $0x18] sm:$0xff]   ;;  %v1072_v8 = vld [vmem:[%s1531_s0 + $0x60] sm:$0xff]   ;;  %v1074_v10 = vld [vmem:[%s1531_s0 + $0x68] sm:$0xff]  }
   0x4   :  { %142 = vmatprep.subr.bf16.mxu0 %v1123_v0  ;;  %264 = vmatprep.subr.bf16.mxu1 %v1123_v0  ;;  %v1073_v9 = vld [vmem:[%s1531_s0 + $0x20] sm:$0xff]   ;;  %v1075_v11 = vld [vmem:[%s1531_s0 + $0x28] sm:$0xff]   ;;  %v1076_v13 = vld [vmem:[%s1531_s0 + $0x70] sm:$0xff]  }
   0x5   :  { %v1197_v12 = vld [vmem:[%s1532_s1 + $0x4] ss:$8 sps:$4 sm:$0xff]   ;;  %v1077_v14 = vld [vmem:[%s1531_s0 + $0x30] sm:$0xff]   ;;  %v1078_v15 = vld [vmem:[%s1531_s0 + $0x78] sm:$0xff]  }
   0x6   :  { %960 = vmatprep.mubr.msk.bf16.mxu0 %vm133_vm0, %v1197_v12  ;;  %989 = vmatprep.mubr.msk.bf16.mxu1 %vm133_vm0, %v1197_v12  ;;  %v1079_v16 = vld [vmem:[%s1531_s0 + $0x38] sm:$0xff]   ;;  %v1080_v17 = vld [vmem:[%s1531_s0 + $0x80] sm:$0xff]   ;;  %v1082_v19 = vld [vmem:[%s1531_s0 + $0x88] sm:$0xff]  }
   0x7   :  { %143 = vmatpush1.bf16.msra.mxu0 %v1067_v3  ;;  %265 = vmatpush1.bf16.msra.mxu1 %v1068_v4  ;;  %v1081_v18 = vld [vmem:[%s1531_s0 + $0x40] sm:$0xff]   ;;  %v1086_v21 = vld [vmem:[%s1531_s0 + $0x90] sm:$0xff]   ;;  %v1087_v22 = vld [vmem:[%s1531_s0 + $0xd8] sm:$0xff]  }
   0x8   :  { %144 = vmatprep.subr.bf16.mxu0 %v1123_v0  ;;  %266 = vmatprep.subr.bf16.mxu1 %v1123_v0  ;;  %v1235_v20 = vld [vmem:[%s1532_s1] ss:$8 sps:$4 sm:$0xff]   ;;  %v1248_v23 = vld [vmem:[%s1532_s1 + $0x14] ss:$8 sps:$4 sm:$0xff]   ;;  %v1096_v28 = vld [vmem:[%s1532_s1 + $0x10] ss:$8 sps:$4 sm:$0xff]  }
   0x9   :  { %v1088_v24 = vld [vmem:[%s1531_s0 + $0x98] sm:$0xff]   ;;  %v1258_v25 = vld [vmem:[%s1533_s2] sm:$0xff]  ;;  %v1267_v27 = vld [vmem:[%s1533_s2 + $0x10] sm:$0xff] }
   0xa   :  { %v1089_v26 = vld [vmem:[%s1531_s0 + $0xe0] sm:$0xff]   ;;  %43 = vperm.xlu0 %1055, %v1258_v25   ;;  %v1284_v30 = vld [vmem:[%s1533_s2 + $0x8] sm:$0xff]  ;;  %53 = vperm.xlu1 %1056, %v1267_v27   ;;  %v1299_v33 = vld [vmem:[%s1533_s2 + $0x18] sm:$0xff] }
   0xb   :  { %145 = vmatpush1.bf16.msra.mxu0 %v1069_v5  ;;  %267 = vmatpush1.bf16.msra.mxu1 %v1070_v6  ;;  %v1090_v29 = vld [vmem:[%s1531_s0 + $0xa0] sm:$0xff]   ;;  %v1091_v31 = vld [vmem:[%s1531_s0 + $0xe8] sm:$0xff]   ;;  %v1093_v34 = vld [vmem:[%s1531_s0 + $0xf0] sm:$0xff]  }
   0xc   :  { %146 = vmatprep.subr.bf16.mxu0 %v1123_v0  ;;  %268 = vmatprep.subr.bf16.mxu1 %v1123_v0  ;;  %v1092_v32 = vld [vmem:[%s1531_s0 + $0xa8] sm:$0xff]   ;;  %v1097_v35 = vld [vmem:[%s1531_s0 + $0xb0] sm:$0xff]   ;;  %v1098_v36 = vld [vmem:[%s1531_s0 + $0xf8] sm:$0xff]  }
   0xd   :  { %v1099_v37 = vld [vmem:[%s1531_s0 + $0xb8] sm:$0xff]   ;;  %v1100_v38 = vld [vmem:[%s1531_s0 + $0x100] sm:$0xff]   ;;  %v1102_v40 = vld [vmem:[%s1531_s0 + $0x108] sm:$0xff]  }
   0xe   :  { %48 = vperm.xlu0 %1055, %v1284_v30   ;;  %58 = vperm.xlu1 %1056, %v1299_v33   ;;  %v1101_v39 = vld [vmem:[%s1531_s0 + $0xc0] sm:$0xff]   ;;  %v1103_v41 = vld [vmem:[%s1531_s0 + $0xc8] sm:$0xff]   ;;  %v1104_v42 = vld [vmem:[%s1531_s0 + $0x110] sm:$0xff]  }
   0xf   :  { %147 = vmatpush1.bf16.msra.mxu0 %v1071_v7  ;;  %269 = vmatpush1.bf16.msra.mxu1 %v1072_v8  ;;  %v1105_v43 = vld [vmem:[%s1531_s0 + $0xd0] sm:$0xff]   ;;  %v1106_v44 = vld [vmem:[%s1531_s0 + $0x118] sm:$0xff]   ;;  %s1125_s0 = smov 1  }
  0x10   :  { %148 = vmatprep.subr.bf16.mxu0 %v1123_v0  ;;  %270 = vmatprep.subr.bf16.mxu1 %v1123_v0 }
  0x13   :  { %149 = vmatpush1.bf16.msra.mxu0 %v1073_v9  ;;  %271 = vmatpush1.bf16.msra.mxu1 %v1074_v10 }
  0x14   :  { %150 = vmatprep.subr.bf16.mxu0 %v1123_v0  ;;  %272 = vmatprep.subr.bf16.mxu1 %v1123_v0 }
  0x17   :  { %151 = vmatpush1.bf16.msra.mxu0 %v1075_v11  ;;  %273 = vmatpush1.bf16.msra.mxu1 %v1076_v13 }
  0x18   :  { %152 = vmatprep.subr.bf16.mxu0 %v1123_v0  ;;  %274 = vmatprep.subr.bf16.mxu1 %v1123_v0 }
  0x1b   :  { %153 = vmatpush1.bf16.msra.mxu0 %v1077_v14  ;;  %275 = vmatpush1.bf16.msra.mxu1 %v1078_v15 }
  0x1c   :  { %154 = vmatprep.subr.bf16.mxu0 %v1123_v0  ;;  %276 = vmatprep.subr.bf16.mxu1 %v1123_v0 }
  0x1f   :  { %155 = vmatpush1.bf16.msra.mxu0 %v1079_v16  ;;  %277 = vmatpush1.bf16.msra.mxu1 %v1080_v17 }
  0x20   :  { %156 = vmatprep.subr.bf16.mxu0 %v1123_v0  ;;  %278 = vmatprep.subr.bf16.mxu1 %v1123_v0 }
  0x23   :  { %157 = vmatpush1.bf16.msra.mxu0 %v1081_v18  ;;  %279 = vmatpush1.bf16.msra.mxu1 %v1082_v19 }
  0x24   :  { %384 = vmatprep.subr.bf16.mxu0 %v1123_v0  ;;  %506 = vmatprep.subr.bf16.mxu1 %v1123_v0 }
  0x26   :  { %173 = vmatmul.mubr.bf16.vlgmr.msra.gmra.mrb[0].mxu0 %v1235_v20  ;;  %295 = vmatmul.mubr.bf16.vlgmr.msra.gmra.mrb[0].mxu1 %v1235_v20 }
  0x27   :  { %385 = vmatpush1.bf16.msra.mxu0 %v1086_v21  ;;  %507 = vmatpush1.bf16.msra.mxu1 %v1087_v22 }
  0x28   :  { %386 = vmatprep.subr.bf16.mxu0 %v1123_v0  ;;  %508 = vmatprep.subr.bf16.mxu1 %v1123_v0 }
  0x29   :  { %961 = vmatprep.mubr.msk.bf16.mxu0 %vm133_vm0, %v1248_v23  ;;  %990 = vmatprep.mubr.msk.bf16.mxu1 %vm133_vm0, %v1248_v23 }
  0x2b   :  { %387 = vmatpush1.bf16.msra.mxu0 %v1088_v24  ;;  %509 = vmatpush1.bf16.msra.mxu1 %v1089_v26 }
  0x2c   :  { %388 = vmatprep.subr.bf16.mxu0 %v1123_v0  ;;  %510 = vmatprep.subr.bf16.mxu1 %v1123_v0 }
  0x2e   :  { %181 = vmatmul.mubr.bf16.gmra.mrb[4].mxu0 %v1096_v28  ;;  %303 = vmatmul.mubr.bf16.gmra.mrb[4].mxu1 %v1096_v28 }
  0x2f   :  { %389 = vmatpush1.bf16.msra.mxu0 %v1090_v29  ;;  %511 = vmatpush1.bf16.msra.mxu1 %v1091_v31 }
  0x30   :  { %390 = vmatprep.subr.bf16.mxu0 %v1123_v0  ;;  %512 = vmatprep.subr.bf16.mxu1 %v1123_v0 }
  0x31   :  { %1018 = vmatprep.mubr.msk.bf16.mxu0 %vm133_vm0, %v1197_v12  ;;  %1047 = vmatprep.mubr.msk.bf16.mxu1 %vm133_vm0, %v1197_v12 }
  0x33   :  { %391 = vmatpush1.bf16.msra.mxu0 %v1092_v32  ;;  %513 = vmatpush1.bf16.msra.mxu1 %v1093_v34 }
  0x34   :  { %392 = vmatprep.subr.bf16.mxu0 %v1123_v0  ;;  %514 = vmatprep.subr.bf16.mxu1 %v1123_v0 }
  0x37   :  { %393 = vmatpush1.bf16.msra.mxu0 %v1097_v35  ;;  %515 = vmatpush1.bf16.msra.mxu1 %v1098_v36 }
  0x38   :  { %394 = vmatprep.subr.bf16.mxu0 %v1123_v0  ;;  %516 = vmatprep.subr.bf16.mxu1 %v1123_v0 }
  0x3b   :  { %395 = vmatpush1.bf16.msra.mxu0 %v1099_v37  ;;  %517 = vmatpush1.bf16.msra.mxu1 %v1100_v38 }
  0x3c   :  { %396 = vmatprep.subr.bf16.mxu0 %v1123_v0  ;;  %518 = vmatprep.subr.bf16.mxu1 %v1123_v0 }
  0x3f   :  { %397 = vmatpush1.bf16.msra.mxu0 %v1101_v39  ;;  %519 = vmatpush1.bf16.msra.mxu1 %v1102_v40 }
  0x40   :  { %398 = vmatprep.subr.bf16.mxu0 %v1123_v0  ;;  %520 = vmatprep.subr.bf16.mxu1 %v1123_v0 }
  0x43   :  { %399 = vmatpush1.bf16.msra.mxu0 %v1103_v41  ;;  %521 = vmatpush1.bf16.msra.mxu1 %v1104_v42 }
  0x44   :  { %400 = vmatprep.subr.bf16.mxu0 %v1123_v0  ;;  %522 = vmatprep.subr.bf16.mxu1 %v1123_v0 }
  0x47   :  { %401 = vmatpush1.bf16.msra.mxu0 %v1105_v43  ;;  %523 = vmatpush1.bf16.msra.mxu1 %v1106_v44 }
  0x4a   :  { %417 = vmatmul.mubr.bf16.vlgmr.msra.gmra.mrb[8].mxu0 %v1235_v20  ;;  %539 = vmatmul.mubr.bf16.vlgmr.msra.gmra.mrb[8].mxu1 %v1235_v20 }
  0x4b   :  { %1019 = vmatprep.mubr.msk.bf16.mxu0 %vm133_vm0, %v1248_v23  ;;  %1048 = vmatprep.mubr.msk.bf16.mxu1 %vm133_vm0, %v1248_v23 }
  0x52   :  { %425 = vmatmul.mubr.bf16.gmra.mrb[12].mxu0 %v1096_v28  ;;  %547 = vmatmul.mubr.bf16.gmra.mrb[12].mxu1 %v1096_v28 }
  0x89   :  { %v1357_v45 = vpop.permute.xlu0 %43  ;;  %v1377_v59 = vpop.permute.xlu1 %53 }
  0x8d   :  { %v1359_v47 = vpop.permute.xlu0 %48  ;;  %v59_v10 = vpop.permute.xlu1 %58 }
  0xf9   :  { %v174_v46 = vpop.f32.mrb[0].mxu0  ;;  %v296_v49 = vpop.f32.mrb[0].mxu1 }
  0xfa   :  { %v1362_v48 = vadd.f32 %v174_v46, %v1357_v45  ;;  %v176_v50 = vpop.f32.mrb[1].mxu0  ;;  %v1365_v51 = vadd.f32 %v296_v49, %v1357_v45  ;;  %v298_v53 = vpop.f32.mrb[1].mxu1 }
  0xfb   :  { %v177_v52 = vpop.f32.mrb[2].mxu0  ;;  %v299_v55 = vpop.f32.mrb[2].mxu1 }
  0xfc   :  { %v179_v54 = vpop.f32.mrb[3].mxu0  ;;  %555 = vadd.xlane.f32.xlu0 %v1362_v48  ;;  %567 = vadd.xlane.f32.xlu1 %v1365_v51  ;;  %v1370_v56 = vadd.f32 %v299_v55, %v1359_v47  ;;  %v301_v57 = vpop.f32.mrb[3].mxu1  ;;  %v1373_v58 = vadd.f32 %v177_v52, %v1359_v47  ;;  %v607_v0 = vmul.f32 %v1362_v48, %v1362_v48  ;;  %v1124_v55 = vmov 1  }
  0xfd   :  { %v623_v7 = vmul.f32 %v1365_v51, %v1365_v51  ;;  %1057 = vset.pattern.permute.xlu0 %v1124_v55  ;;  %1058 = vset.pattern.permute.xlu1 %v1124_v55 }
  0xfe   :  { %v608_v61 = vmul.f32 %v1373_v58, %v1373_v58  ;;  %v624_v6 = vmul.f32 %v1370_v56, %v1370_v56 }
 0x100   :  { %569 = vadd.xlane.f32.xlu0 %v1370_v56  ;;  %557 = vadd.xlane.f32.xlu1 %v1373_v58 }
 0x101   :  { %v182_v60 = vpop.f32.mrb[4].mxu0  ;;  %v304_v62 = vpop.f32.mrb[4].mxu1 }
 0x102   :  { %v184_v63 = vpop.f32.mrb[5].mxu0  ;;  %v306_v2 = vpop.f32.mrb[5].mxu1  ;;  %v1388_v8 = vadd.f32 %v182_v60, %v1377_v59  ;;  %v1391_v9 = vadd.f32 %v304_v62, %v1377_v59 }
 0x103   :  { %v185_v1 = vpop.f32.mrb[6].mxu0  ;;  %v307_v4 = vpop.f32.mrb[6].mxu1 }
 0x104   :  { %613 = vadd.xlane.f32.xlu0 %v608_v61  ;;  %v187_v3 = vpop.f32.mrb[7].mxu0  ;;  %611 = vadd.xlane.f32.xlu1 %v607_v0  ;;  %v309_v5 = vpop.f32.mrb[7].mxu1  ;;  %v1394_v11 = vadd.f32 %v185_v1, %v59_v10  ;;  %v609_v12 = vmul.f32 %v1388_v8, %v1388_v8  ;;  %v1400_v13 = vadd.f32 %v307_v4, %v59_v10 }
 0x105   :  { %v625_v14 = vmul.f32 %v1391_v9, %v1391_v9 }
 0x106   :  { %v610_v15 = vmul.f32 %v1394_v11, %v1394_v11  ;;  %v626_v16 = vmul.f32 %v1400_v13, %v1400_v13 }
 0x108   :  { %629 = vadd.xlane.f32.xlu0 %v624_v6  ;;  %627 = vadd.xlane.f32.xlu1 %v623_v7 }
 0x10c   :  { %559 = vadd.xlane.f32.xlu0 %v1388_v8  ;;  %571 = vadd.xlane.f32.xlu1 %v1391_v9 }
 0x110   :  { %561 = vadd.xlane.f32.xlu0 %v1394_v11  ;;  %615 = vadd.xlane.f32.xlu1 %v609_v12 }
 0x114   :  { %573 = vadd.xlane.f32.xlu0 %v1400_v13  ;;  %631 = vadd.xlane.f32.xlu1 %v625_v14 }
 0x118   :  { %617 = vadd.xlane.f32.xlu0 %v610_v15 }
 0x11c   :  { %633 = vadd.xlane.f32.xlu0 %v626_v16 }
 0x11d   :  { %v418_v17 = vpop.f32.mrb[8].mxu0  ;;  %v540_v19 = vpop.f32.mrb[8].mxu1 }
 0x11e   :  { %v1410_v18 = vadd.f32 %v418_v17, %v1357_v45  ;;  %v420_v20 = vpop.f32.mrb[9].mxu0  ;;  %v542_v21 = vpop.f32.mrb[9].mxu1  ;;  %v1417_v29 = vadd.f32 %v540_v19, %v1357_v45 }
 0x11f   :  { %v421_v22 = vpop.f32.mrb[10].mxu0  ;;  %v543_v24 = vpop.f32.mrb[10].mxu1 }
 0x120   :  { %v1413_v23 = vadd.f32 %v421_v22, %v1359_v47  ;;  %v423_v26 = vpop.f32.mrb[11].mxu0  ;;  %579 = vadd.xlane.f32.xlu1 %v1410_v18  ;;  %v545_v28 = vpop.f32.mrb[11].mxu1  ;;  %v1421_v31 = vadd.f32 %v543_v24, %v1359_v47  ;;  %v639_v36 = vmul.f32 %v1410_v18, %v1410_v18  ;;  %v655_v43 = vmul.f32 %v1417_v29, %v1417_v29 }
 0x122   :  { %581 = vadd.xlane.f32.xlu0 %v1413_v23  ;;  %v640_v40 = vmul.f32 %v1413_v23, %v1413_v23  ;;  %v656_v44 = vmul.f32 %v1421_v31, %v1421_v31 }
 0x124   :  { %591 = vadd.xlane.f32.xlu1 %v1417_v29 }
 0x125   :  { %v426_v32 = vpop.f32.mrb[12].mxu0  ;;  %v548_v34 = vpop.f32.mrb[12].mxu1 }
 0x126   :  { %v428_v35 = vpop.f32.mrb[13].mxu0  ;;  %593 = vadd.xlane.f32.xlu0 %v1421_v31  ;;  %v550_v37 = vpop.f32.mrb[13].mxu1  ;;  %v1434_v45 = vadd.f32 %v426_v32, %v1377_v59  ;;  %v1440_v47 = vadd.f32 %v548_v34, %v1377_v59 }
 0x127   :  { %v429_v38 = vpop.f32.mrb[14].mxu0  ;;  %v551_v39 = vpop.f32.mrb[14].mxu1 }
 0x128   :  { %643 = vadd.xlane.f32.xlu1 %v639_v36  ;;  %v431_v41 = vpop.f32.mrb[15].mxu0  ;;  %v553_v42 = vpop.f32.mrb[15].mxu1  ;;  %v1436_v46 = vadd.f32 %v429_v38, %v59_v10  ;;  %v1443_v49 = vadd.f32 %v551_v39, %v59_v10  ;;  %v641_v50 = vmul.f32 %v1434_v45, %v1434_v45  ;;  %v657_v53 = vmul.f32 %v1440_v47, %v1440_v47 }
 0x12a   :  { %645 = vadd.xlane.f32.xlu0 %v640_v40  ;;  %v642_v52 = vmul.f32 %v1436_v46, %v1436_v46  ;;  %v658_v54 = vmul.f32 %v1443_v49, %v1443_v49 }
 0x12c   :  { %659 = vadd.xlane.f32.xlu1 %v655_v43 }
 0x12e   :  { %661 = vadd.xlane.f32.xlu0 %v656_v44 }
 0x130   :  { %583 = vadd.xlane.f32.xlu1 %v1434_v45 }
 0x132   :  { %585 = vadd.xlane.f32.xlu0 %v1436_v46 }
 0x134   :  { %595 = vadd.xlane.f32.xlu1 %v1440_v47 }
 0x136   :  { %597 = vadd.xlane.f32.xlu0 %v1443_v49 }
 0x138   :  { %647 = vadd.xlane.f32.xlu1 %v641_v50 }
 0x13a   :  { %649 = vadd.xlane.f32.xlu0 %v642_v52 }
 0x13c   :  { %663 = vadd.xlane.f32.xlu1 %v657_v53 }
 0x13e   :  { %665 = vadd.xlane.f32.xlu0 %v658_v54 }
 0x189   :  { %v556_v57 = vpop.xlane.xlu0 %555  ;;  %v568_v59 = vpop.xlane.xlu1 %567 }
 0x18a   :  { %v575_v16 = vadd.f32 %v568_v59, %v556_v57 }
 0x18d   :  { %v570_v60 = vpop.xlane.xlu0 %569  ;;  %v558_v61 = vpop.xlane.xlu1 %557 }
 0x18e   :  { %v576_v19 = vadd.f32 %v570_v60, %v558_v61 }
 0x191   :  { %v614_v62 = vpop.xlane.xlu0 %613  ;;  %v612_v63 = vpop.xlane.xlu1 %611 }
 0x195   :  { %v630_v0 = vpop.xlane.xlu0 %629  ;;  %v628_v1 = vpop.xlane.xlu1 %627 }
 0x196   :  { %v635_v28 = vadd.f32 %v628_v1, %v612_v63  ;;  %v636_v35 = vadd.f32 %v630_v0, %v614_v62 }
 0x199   :  { %v560_v2 = vpop.xlane.xlu0 %559  ;;  %v572_v3 = vpop.xlane.xlu1 %571 }
 0x19a   :  { %v577_v59 = vadd.f32 %v572_v3, %v560_v2 }
 0x19d   :  { %v562_v4 = vpop.xlane.xlu0 %561  ;;  %v616_v6 = vpop.xlane.xlu1 %615 }
 0x1a1   :  { %v574_v5 = vpop.xlane.xlu0 %573  ;;  %v632_v10 = vpop.xlane.xlu1 %631 }
 0x1a2   :  { %v578_v62 = vadd.f32 %v574_v5, %v562_v4 }
 0x1a5   :  { %v618_v7 = vpop.xlane.xlu0 %617 }
 0x1a9   :  { %v634_v12 = vpop.xlane.xlu0 %633 }
 0x1ad   :  { %v580_v14 = vpop.xlane.xlu1 %579 }
 0x1ae   :  { %v587_v20 = vadd.f32 %v580_v14, %v575_v16 }
 0x1af   :  { %v582_v15 = vpop.xlane.xlu0 %581 }
 0x1b0   :  { %v588_v22 = vadd.f32 %v582_v15, %v576_v19  ;;  %v637_v19 = vadd.f32 %v632_v10, %v616_v6 }
 0x1b1   :  { %v592_v17 = vpop.xlane.xlu1 %591 }
 0x1b2   :  { %v599_v24 = vadd.f32 %v592_v17, %v587_v20 }
 0x1b3   :  { %v594_v21 = vpop.xlane.xlu0 %593 }
 0x1b4   :  { %v600_v32 = vadd.f32 %v594_v21, %v588_v22  ;;  %v603_v36 = vmul.f32 0.001953125, %v599_v24  ;;  %v638_v22 = vadd.f32 %v634_v12, %v618_v7 }
 0x1b5   :  { %v644_v26 = vpop.xlane.xlu1 %643 }
 0x1b6   :  { %v651_v37 = vadd.f32 %v644_v26, %v635_v28  ;;  %v604_v39 = vmul.f32 0.001953125, %v600_v32  ;;  %v675_v43 = vmul.f32 %v603_v36, %v603_v36 }
 0x1b7   :  { %v646_v34 = vpop.xlane.xlu0 %645 }
 0x1b8   :  { %v652_v40 = vadd.f32 %v646_v34, %v636_v35  ;;  %v676_v53 = vmul.f32 %v604_v39, %v604_v39 }
 0x1b9   :  { %v660_v38 = vpop.xlane.xlu1 %659 }
 0x1ba   :  { %v667_v41 = vadd.f32 %v660_v38, %v651_v37 }
 0x1bb   :  { %v662_v42 = vpop.xlane.xlu0 %661 }
 0x1bc   :  { %v671_v44 = vmul.f32 0.001953125, %v667_v41  ;;  %v668_v50 = vadd.f32 %v662_v42, %v652_v40 }
 0x1bd   :  { %v584_v52 = vpop.xlane.xlu1 %583 }
 0x1be   :  { %v679_v54 = vsub.f32 %v671_v44, %v675_v43  ;;  %v672_v55 = vmul.f32 0.001953125, %v668_v50  ;;  %v589_v1 = vadd.f32 %v584_v52, %v577_v59 }
 0x1bf   :  { %v586_v57 = vpop.xlane.xlu0 %585 }
 0x1c0   :  { %v683_v60 = vadd.f32 1e-05, %v679_v54  ;;  %v680_v61 = vsub.f32 %v672_v55, %v676_v53  ;;  %v590_v15 = vadd.f32 %v586_v57, %v578_v62 }
 0x1c1   :  { %v596_v63 = vpop.xlane.xlu1 %595 }
 0x1c2   :  { %1107 = vrsqrt.f32 %v683_v60  ;;  %v684_v0 = vadd.f32 1e-05, %v680_v61  ;;  %v601_v16 = vadd.f32 %v596_v63, %v589_v1 }
 0x1c3   :  { %v598_v14 = vpop.xlane.xlu0 %597 }
 0x1c4   :  { %1109 = vrsqrt.f32 %v684_v0  ;;  %v602_v20 = vadd.f32 %v598_v14, %v590_v15  ;;  %v605_v24 = vmul.f32 0.001953125, %v601_v16 }
 0x1c5   :  { %v648_v17 = vpop.xlane.xlu1 %647 }
 0x1c6   :  { %v653_v26 = vadd.f32 %v648_v17, %v637_v19  ;;  %v606_v2 = vmul.f32 0.001953125, %v602_v20  ;;  %v677_v5 = vmul.f32 %v605_v24, %v605_v24 }
 0x1c7   :  { %v650_v21 = vpop.xlane.xlu0 %649 }
 0x1c8   :  { %v654_v3 = vadd.f32 %v650_v21, %v638_v22  ;;  %v678_v41 = vmul.f32 %v606_v2, %v606_v2 }
 0x1c9   :  { %v664_v28 = vpop.xlane.xlu1 %663 }
 0x1ca   :  { %v669_v32 = vadd.f32 %v664_v28, %v653_v26 }
 0x1cb   :  { %v666_v34 = vpop.xlane.xlu0 %665 }
 0x1cc   :  { %v1108_v4 = vpop.eup %1107  ;;  %v673_v35 = vmul.f32 0.001953125, %v669_v32  ;;  %v670_v37 = vadd.f32 %v666_v34, %v654_v3 }
 0x1cd   :  { %v691_v38 = vmul.f32 %v1108_v4, %v1258_v25 }
 0x1ce   :  { %v1110_v40 = vpop.eup %1109  ;;  %v681_v42 = vsub.f32 %v673_v35, %v677_v5  ;;  %v674_v6 = vmul.f32 0.001953125, %v670_v37 }
 0x1cf   :  { %v695_v10 = vmul.f32 %v691_v38, %v603_v36  ;;  %v692_v7 = vmul.f32 %v1110_v40, %v1284_v30 }
 0x1d0   :  { %v685_v12 = vadd.f32 1e-05, %v681_v42  ;;  %v682_v43 = vsub.f32 %v674_v6, %v678_v41 }
 0x1d1   :  { %703 = vrot.lane.b32.xlu1 %v695_v10, %s1125_s0  ;;  %v696_v44 = vmul.f32 %v692_v7, %v604_v39  ;;  %v1126_v39 = vmov 2  }
 0x1d2   :  { %1111 = vrsqrt.f32 %v685_v12  ;;  %v686_v50 = vadd.f32 1e-05, %v682_v43 }
 0x1d3   :  { %705 = vrot.lane.b32.xlu0 %v696_v44, %s1125_s0 }
 0x1d4   :  { %1113 = vrsqrt.f32 %v686_v50 }
 0x1d7   :  { %721 = vperm.xlu0 %1057, %v691_v38  }
 0x1dc   :  { %v1112_v52 = vpop.eup %1111 }
 0x1dd   :  { %v693_v53 = vmul.f32 %v1112_v52, %v1267_v27 }
 0x1de   :  { %v1114_v54 = vpop.eup %1113 }
 0x1df   :  { %v694_v36 = vmul.f32 %v1114_v54, %v1299_v33  ;;  %v697_v55 = vmul.f32 %v693_v53, %v605_v24 }
 0x1e1   :  { %736 = vperm.xlu0 %1057, %v694_v36   ;;  %707 = vrot.lane.b32.xlu1 %v697_v55, %s1125_s0  ;;  %v698_v57 = vmul.f32 %v694_v36, %v606_v2 }
 0x1e5   :  { %709 = vrot.lane.b32.xlu1 %v698_v57, %s1125_s0  ;;  %1060 = vset.pattern.permute.xlu0 %v1126_v39 }
 0x1e9   :  { %726 = vperm.xlu1 %1058, %v692_v7  }
 0x1ed   :  { %731 = vperm.xlu1 %1058, %v693_v53  }
 0x1f1   :  { %1059 = vset.pattern.permute.xlu1 %v1126_v39 }
 0x243   :  { %v704_v59 = vpop.permute.xlu1 %703 }
 0x244   :  { %v715_v60 = vsub.f32 %v1258_v25, %v704_v59 }
 0x245   :  { %v706_v61 = vpop.permute.xlu0 %705 }
 0x246   :  { %v716_v63 = vsub.f32 %v1284_v30, %v706_v61  ;;  %745 = vperm.xlu1 %1059, %v715_v60  }
 0x248   :  { %750 = vperm.xlu0 %1060, %v716_v63  }
 0x253   :  { %v708_v62 = vpop.permute.xlu1 %707 }
 0x254   :  { %v717_v0 = vsub.f32 %v1267_v27, %v708_v62 }
 0x256   :  { %755 = vperm.xlu1 %1059, %v717_v0   ;;  %v722_v16 = vpop.permute.xlu0 %721 }
 0x257   :  { %v710_v1 = vpop.permute.xlu1 %709  ;;  %v739_v20 = vmul.f32 %v722_v16, %v1362_v48  ;;  %v771_v21 = vmul.f32 %v722_v16, %v1365_v51  ;;  %v783_v22 = vmul.f32 %v722_v16, %v1410_v18  ;;  %v795_v24 = vmul.f32 %v722_v16, %v1417_v29 }
 0x258   :  { %v718_v14 = vsub.f32 %v1299_v33, %v710_v1 }
 0x25a   :  { %760 = vperm.xlu1 %1059, %v718_v14  }
 0x260   :  { %v737_v19 = vpop.permute.xlu0 %736 }
 0x261   :  { %v742_v63 = vmul.f32 %v737_v19, %v1394_v11  ;;  %v774_v62 = vmul.f32 %v737_v19, %v1400_v13  ;;  %v786_v0 = vmul.f32 %v737_v19, %v1436_v46 }
 0x268   :  { %v727_v15 = vpop.permute.xlu1 %726 }
 0x269   :  { %v740_v34 = vmul.f32 %v727_v15, %v1373_v58  ;;  %v772_v4 = vmul.f32 %v727_v15, %v1370_v56  ;;  %v784_v5 = vmul.f32 %v727_v15, %v1413_v23  ;;  %v796_v35 = vmul.f32 %v727_v15, %v1421_v31 }
 0x26c   :  { %v732_v17 = vpop.permute.xlu1 %731 }
 0x26d   :  { %v741_v53 = vmul.f32 %v732_v17, %v1388_v8  ;;  %v773_v54 = vmul.f32 %v732_v17, %v1391_v9  ;;  %v785_v36 = vmul.f32 %v732_v17, %v1434_v45  ;;  %v797_v55 = vmul.f32 %v732_v17, %v1440_v47 }
 0x26e   :  { %v798_v8 = vmul.f32 %v737_v19, %v1443_v49 }
 0x2c5   :  { %v746_v26 = vpop.permute.xlu1 %745 }
 0x2c6   :  { %v763_v28 = vadd.f32 %v746_v26, %v739_v20  ;;  %v775_v2 = vadd.f32 %v771_v21, %v746_v26  ;;  %v787_v3 = vadd.f32 %v783_v22, %v746_v26  ;;  %v799_v32 = vadd.f32 %v795_v24, %v746_v26 }
 0x2c7   :  { %v751_v48 = vpop.permute.xlu0 %750 }
 0x2c8   :  { %v767_v37 = vmax.f32 %v763_v28, 0.0  ;;  %v779_v51 = vmax.f32 %v775_v2, 0.0  ;;  %v791_v38 = vmax.f32 %v787_v3, 0.0  ;;  %v803_v18 = vmax.f32 %v799_v32, 0.0 }
 0x2c9   :  { %v764_v40 = vadd.f32 %v751_v48, %v740_v34  ;;  %v776_v29 = vadd.f32 %v772_v4, %v751_v48  ;;  %v788_v41 = vadd.f32 %v784_v5, %v751_v48  ;;  %v800_v42 = vadd.f32 %v796_v35, %v751_v48 }
 0x2ca   :  { %v807_v6 = vmax.f32 %v767_v37, %v779_v51  ;;  %v811_v10 = vmax.f32 %v791_v38, %v803_v18  ;;  %v1127_v32 = vmov 3  }
 0x2cb   :  { %v768_v7 = vmax.f32 %v764_v40, 0.0  ;;  %v780_v12 = vmax.f32 %v776_v29, 0.0  ;;  %v792_v58 = vmax.f32 %v788_v41, 0.0  ;;  %v804_v43 = vmax.f32 %v800_v42, 0.0  ;;  %1061 = vset.pattern.permute.xlu0 %v1127_v32  ;;  %1062 = vset.pattern.permute.xlu1 %v1127_v32 }
 0x2cc   :  { %v1475_v56 = vmax.f32 %v807_v6, %v811_v10 }
 0x2cd   :  { %v808_v23 = vmax.f32 %v768_v7, %v780_v12  ;;  %v812_v44 = vmax.f32 %v792_v58, %v804_v43 }
 0x2ce   :  { %819 = vadd.xlane.f32.xlu0 %v1475_v56  ;;  %v831_v52 = vmul.f32 %v1475_v56, %v1475_v56 }
 0x2cf   :  { %v1478_v31 = vmax.f32 %v808_v23, %v812_v44 }
 0x2d1   :  { %821 = vadd.xlane.f32.xlu1 %v1478_v31  ;;  %v832_v50 = vmul.f32 %v1478_v31, %v1478_v31 }
 0x2d3   :  { %837 = vadd.xlane.f32.xlu0 %v832_v50 }
 0x2d5   :  { %835 = vadd.xlane.f32.xlu1 %v831_v52  ;;  %v756_v57 = vpop.permute.xlu1 %755 }
 0x2d6   :  { %v765_v39 = vadd.f32 %v756_v57, %v741_v53  ;;  %v777_v59 = vadd.f32 %v773_v54, %v756_v57  ;;  %v789_v60 = vadd.f32 %v785_v36, %v756_v57  ;;  %v801_v61 = vadd.f32 %v797_v55, %v756_v57 }
 0x2d8   :  { %v769_v1 = vmax.f32 %v765_v39, 0.0  ;;  %v781_v9 = vmax.f32 %v777_v59, 0.0  ;;  %v793_v14 = vmax.f32 %v789_v60, 0.0  ;;  %v805_v45 = vmax.f32 %v801_v61, 0.0 }
 0x2d9   :  { %v761_v15 = vpop.permute.xlu1 %760 }
 0x2da   :  { %v766_v47 = vadd.f32 %v761_v15, %v742_v63  ;;  %v778_v16 = vadd.f32 %v774_v62, %v761_v15  ;;  %v790_v17 = vadd.f32 %v786_v0, %v761_v15  ;;  %v802_v20 = vadd.f32 %v798_v8, %v761_v15 }
 0x2db   :  { %v809_v21 = vmax.f32 %v769_v1, %v781_v9  ;;  %v813_v22 = vmax.f32 %v793_v14, %v805_v45  ;;  %v1128_v15 = vmov 4  }
 0x2dc   :  { %v770_v24 = vmax.f32 %v766_v47, 0.0  ;;  %v782_v26 = vmax.f32 %v778_v16, 0.0  ;;  %v794_v11 = vmax.f32 %v790_v17, 0.0  ;;  %v806_v28 = vmax.f32 %v802_v20, 0.0 }
 0x2dd   :  { %v1493_v13 = vmax.f32 %v809_v21, %v813_v22 }
 0x2de   :  { %v810_v46 = vmax.f32 %v770_v24, %v782_v26  ;;  %v814_v2 = vmax.f32 %v794_v11, %v806_v28 }
 0x2df   :  { %823 = vadd.xlane.f32.xlu0 %v1493_v13  ;;  %v833_v49 = vmul.f32 %v1493_v13, %v1493_v13 }
 0x2e0   :  { %v1498_v19 = vmax.f32 %v810_v46, %v814_v2 }
 0x2e1   :  { %839 = vadd.xlane.f32.xlu1 %v833_v49 }
 0x2e2   :  { %v834_v3 = vmul.f32 %v1498_v19, %v1498_v19 }
 0x2e3   :  { %825 = vadd.xlane.f32.xlu0 %v1498_v19 }
 0x2e7   :  { %841 = vadd.xlane.f32.xlu0 %v834_v3 }
 0x35b   :  { %v820_v34 = vpop.xlane.xlu0 %819 }
 0x35c   :  { %v827_v5 = vmul.f32 0.0078125, %v820_v34 }
 0x35e   :  { %v822_v4 = vpop.xlane.xlu1 %821  ;;  %v847_v18 = vmul.f32 %v827_v5, %v827_v5 }
 0x35f   :  { %v828_v35 = vmul.f32 0.0078125, %v822_v4 }
 0x360   :  { %v838_v48 = vpop.xlane.xlu0 %837 }
 0x361   :  { %v848_v37 = vmul.f32 %v828_v35, %v828_v35  ;;  %v844_v51 = vmul.f32 0.0078125, %v838_v48 }
 0x362   :  { %v836_v38 = vpop.xlane.xlu1 %835 }
 0x363   :  { %v852_v40 = vsub.f32 %v844_v51, %v848_v37  ;;  %v843_v29 = vmul.f32 0.0078125, %v836_v38 }
 0x365   :  { %v856_v41 = vadd.f32 1e-05, %v852_v40  ;;  %v851_v42 = vsub.f32 %v843_v29, %v847_v18 }
 0x367   :  { %1115 = vrsqrt.f32 %v856_v41  ;;  %v855_v6 = vadd.f32 1e-05, %v851_v42 }
 0x369   :  { %1117 = vrsqrt.f32 %v855_v6 }
 0x36c   :  { %v824_v10 = vpop.xlane.xlu0 %823 }
 0x36d   :  { %v829_v7 = vmul.f32 0.0078125, %v824_v10 }
 0x36e   :  { %v840_v12 = vpop.xlane.xlu1 %839 }
 0x36f   :  { %v849_v58 = vmul.f32 %v829_v7, %v829_v7  ;;  %v845_v43 = vmul.f32 0.0078125, %v840_v12 }
 0x370   :  { %v826_v23 = vpop.xlane.xlu0 %825 }
 0x371   :  { %v1116_v44 = vpop.eup %1115  ;;  %v853_v50 = vsub.f32 %v845_v43, %v849_v58  ;;  %v830_v52 = vmul.f32 0.0078125, %v826_v23 }
 0x372   :  { %v864_v53 = vmul.f32 %v1116_v44, %v1284_v30 }
 0x373   :  { %v1118_v54 = vpop.eup %1117  ;;  %v857_v36 = vadd.f32 1e-05, %v853_v50  ;;  %v850_v59 = vmul.f32 %v830_v52, %v830_v52 }
 0x374   :  { %v842_v55 = vpop.xlane.xlu0 %841  ;;  %v868_v57 = vmul.f32 %v864_v53, %v828_v35  ;;  %v863_v39 = vmul.f32 %v1118_v54, %v1258_v25 }
 0x375   :  { %1119 = vrsqrt.f32 %v857_v36  ;;  %v846_v60 = vmul.f32 0.0078125, %v842_v55 }
 0x376   :  { %877 = vrot.lane.b32.xlu0 %v868_v57, %s1125_s0  ;;  %v867_v61 = vmul.f32 %v863_v39, %v827_v5 }
 0x377   :  { %v854_v63 = vsub.f32 %v846_v60, %v850_v59 }
 0x378   :  { %875 = vrot.lane.b32.xlu1 %v867_v61, %s1125_s0 }
 0x379   :  { %v858_v62 = vadd.f32 1e-05, %v854_v63 }
 0x37a   :  { %893 = vperm.xlu0 %1061, %v863_v39  }
 0x37b   :  { %1121 = vrsqrt.f32 %v858_v62 }
 0x37f   :  { %v1120_v0 = vpop.eup %1119 }
 0x380   :  { %v865_v8 = vmul.f32 %v1120_v0, %v1267_v27 }
 0x382   :  { %v869_v1 = vmul.f32 %v865_v8, %v829_v7 }
 0x384   :  { %879 = vrot.lane.b32.xlu1 %v869_v1, %s1125_s0 }
 0x385   :  { %v1122_v9 = vpop.eup %1121 }
 0x386   :  { %v866_v14 = vmul.f32 %v1122_v9, %v1299_v33 }
 0x388   :  { %908 = vperm.xlu0 %1061, %v866_v14   ;;  %v870_v45 = vmul.f32 %v866_v14, %v830_v52 }
 0x38a   :  { %881 = vrot.lane.b32.xlu1 %v870_v45, %s1125_s0 }
 0x38c   :  { %1064 = vset.pattern.permute.xlu0 %v1128_v15 }
 0x38e   :  { %898 = vperm.xlu1 %1062, %v864_v53  }
 0x392   :  { %903 = vperm.xlu1 %1062, %v865_v8  }
 0x396   :  { %1063 = vset.pattern.permute.xlu1 %v1128_v15 }
 0x3e8   :  { %v878_v47 = vpop.permute.xlu0 %877 }
 0x3e9   :  { %v888_v16 = vsub.f32 %v1284_v30, %v878_v47 }
 0x3ea   :  { %v876_v17 = vpop.permute.xlu1 %875 }
 0x3eb   :  { %v887_v20 = vsub.f32 %v1258_v25, %v876_v17  ;;  %922 = vperm.xlu0 %1064, %v888_v16  }
 0x3ed   :  { %917 = vperm.xlu1 %1063, %v887_v20  }
 0x3f6   :  { %v880_v21 = vpop.permute.xlu1 %879 }
 0x3f7   :  { %v889_v22 = vsub.f32 %v1267_v27, %v880_v21 }
 0x3f9   :  { %927 = vperm.xlu1 %1063, %v889_v22   ;;  %v894_v11 = vpop.permute.xlu0 %893 }
 0x3fa   :  { %v911_v3 = vmul.f32 %v894_v11, %v1475_v56 }
 0x3fc   :  { %v882_v24 = vpop.permute.xlu1 %881 }
 0x3fd   :  { %v890_v26 = vsub.f32 %v1299_v33, %v882_v24 }
 0x3ff   :  { %932 = vperm.xlu1 %1063, %v890_v26  }
 0x407   :  { %v909_v46 = vpop.permute.xlu0 %908 }
 0x408   :  { %v914_v56 = vmul.f32 %v909_v46, %v1498_v19 }
 0x40d   :  { %v899_v28 = vpop.permute.xlu1 %898 }
 0x40e   :  { %v912_v49 = vmul.f32 %v899_v28, %v1478_v31 }
 0x411   :  { %v904_v2 = vpop.permute.xlu1 %903 }
 0x412   :  { %v913_v33 = vmul.f32 %v904_v2, %v1493_v13 }
 0x46a   :  { %v923_v30 = vpop.permute.xlu0 %922 }
 0x46b   :  { %v936_v25 = vadd.f32 %v923_v30, %v912_v49 }
 0x46c   :  { %v918_v32 = vpop.permute.xlu1 %917 }
 0x46d   :  { %940 = vst [vmem:[%s1534_s3 + $0x8] sm:$0xff] %v936_v25  ;;  %v935_v27 = vadd.f32 %v918_v32, %v911_v3 }
 0x46f   :  { %939 = vst [vmem:[%s1534_s3] sm:$0xff] %v935_v27 }
 0x478   :  { %v928_v34 = vpop.permute.xlu1 %927 }
 0x479   :  { %v937_v4 = vadd.f32 %v928_v34, %v913_v33 }
 0x47b   :  { %941 = vst [vmem:[%s1534_s3 + $0x10] sm:$0xff] %v937_v4 }
 0x47e   :  { %v933_v31 = vpop.permute.xlu1 %932 }
 0x47f   :  { %v938_v5 = vadd.f32 %v933_v31, %v914_v56 }
 0x481   :  { %942 = vst [vmem:[%s1534_s3 + $0x18] sm:$0xff] %v938_v5 }

// kernel: model_heatmap_resnet_forward.9
= control target key start
LH: loop header
LB: loop body
LE: loop exit
PB: predicated region body
PF: predicated region fallthrough
CT: control target
= control target key end

     0   :  { %v583_v1 = vmov 0   ;;  %vm224_vm0 = vcmask 261120   ;;  %v584_v61 = vmov 1   ;;  %s766_s0 = inlined_call_operand.vmem [shape: bf16[288,128], index: 0, kind: input, shape index: {}]   ;;  %s767_s1 = inlined_call_operand.vmem [shape: bf16[32,288], index: 1, kind: input, shape index: {}]   ;;  %s768_s2 = inlined_call_operand.vmem [shape: f32[32,8], index: 2, kind: input, shape index: {}]   ;;  %s769_s3 = inlined_call_operand.vmem [shape: f32[32,128], index: 3, kind: input, shape index: {}]   ;;  %s770_s4 = inlined_call_operand.vmem [shape: f32[32,128], index: 4, kind: output, shape index: {}]  }
   0x1   :  { %v549_v0 = vld [vmem:[%s766_s0 + $0x40] sm:$0xff]   ;;  %543 = vset.pattern.permute.xlu0 %v583_v1  ;;  %544 = vset.pattern.permute.xlu1 %v583_v1  ;;  %v551_v3 = vld [vmem:[%s766_s0 + $0x48] sm:$0xff]   ;;  %v553_v5 = vld [vmem:[%s766_s0 + $0x50] sm:$0xff]  }
   0x2   :  { %v550_v2 = vld [vmem:[%s766_s0] sm:$0xff]   ;;  %499 = vmatprep.subr.bf16.mxu0 %v549_v0  ;;  %v552_v4 = vld [vmem:[%s766_s0 + $0x8] sm:$0xff]   ;;  %v554_v6 = vld [vmem:[%s766_s0 + $0x10] sm:$0xff]  }
   0x3   :  { %500 = vmatpush3.bf16.msra.mxu0 %v550_v2  ;;  %v555_v7 = vld [vmem:[%s766_s0 + $0x58] sm:$0xff]   ;;  %v557_v9 = vld [vmem:[%s766_s0 + $0x60] sm:$0xff]   ;;  %v559_v12 = vld [vmem:[%s766_s0 + $0x68] sm:$0xff]  }
   0x4   :  { %501 = vmatprep.subr.bf16.mxu0 %v551_v3  ;;  %v556_v8 = vld [vmem:[%s766_s0 + $0x18] sm:$0xff]   ;;  %v563_v10 = vld [vmem:[%s766_s0 + $0x80] sm:$0xff]   ;;  %v560_v13 = vld [vmem:[%s766_s0 + $0x28] sm:$0xff]  }
   0x5   :  { %v558_v11 = vld [vmem:[%s766_s0 + $0x20] sm:$0xff]   ;;  %531 = vmatprep.subr.bf16.mxu1 %v563_v10  ;;  %v566_v14 = vld [vmem:[%s766_s0 + $0x88] sm:$0xff]   ;;  %v561_v15 = vld [vmem:[%s766_s0 + $0x70] sm:$0xff]  }
   0x6   :  { %532 = vmatpush3.bf16.msra.mxu1 %v563_v10  ;;  %v569_v16 = vld [vmem:[%s767_s1 + $0x4] ss:$12 sps:$4 sm:$0xff]   ;;  %v570_v17 = vld [vmem:[%s767_s1 + $0x8] ss:$12 sps:$4 sm:$0xff]   ;;  %v571_v18 = vld [vmem:[%s767_s1 + $0x20] ss:$12 sps:$4 sm:$0xff]  }
   0x7   :  { %502 = vmatpush3.bf16.msra.mxu0 %v552_v4  ;;  %533 = vmatprep.subr.bf16.mxu1 %v566_v14  ;;  %v670_v19 = vld [vmem:[%s768_s2] sm:$0xff]  ;;  %v562_v20 = vld [vmem:[%s766_s0 + $0x30] sm:$0xff]   ;;  %v564_v22 = vld [vmem:[%s766_s0 + $0x78] sm:$0xff]  }
   0x8   :  { %503 = vmatprep.subr.bf16.mxu0 %v553_v5  ;;  %263 = vmatprep.mubr.bf16.mxu0 %v569_v16  ;;  %v679_v21 = vld [vmem:[%s768_s2 + $0x10] sm:$0xff]  ;;  %v688_v23 = vld [vmem:[%s768_s2 + $0x8] sm:$0xff]  ;;  %v694_v24 = vld [vmem:[%s768_s2 + $0x18] sm:$0xff] }
   0x9   :  { %535 = vmatprep.mubr.msk.bf16.mxu1 %vm224_vm0, %v570_v17  ;;  %68 = vperm.xlu0 %543, %v670_v19   ;;  %v565_v25 = vld [vmem:[%s766_s0 + $0x38] sm:$0xff]   ;;  %v567_v26 = vld [vmem:[%s767_s1] ss:$12 sps:$4 sm:$0xff]   ;;  %s585_s0 = smov 1  }
   0xa   :  { %534 = vmatpush3.bf16.msra.mxu1 %v566_v14  ;;  %78 = vperm.xlu1 %544, %v679_v21   ;;  %v572_v27 = vld [vmem:[%s767_s1 + $0x1c] ss:$12 sps:$4 sm:$0xff]   ;;  %v574_v28 = vld [vmem:[%s767_s1 + $0x18] ss:$12 sps:$4 sm:$0xff]  }
   0xb   :  { %504 = vmatpush3.bf16.msra.mxu0 %v554_v6 }
   0xc   :  { %505 = vmatprep.subr.bf16.mxu0 %v555_v7 }
   0xd   :  { %536 = vmatmul.mubr.msk.bf16.vlgmr.msra.gmra.mrb[0].mxu1 %vm224_vm0, %v571_v18  ;;  %73 = vperm.xlu0 %543, %v688_v23  }
   0xe   :  { %83 = vperm.xlu1 %544, %v694_v24  }
   0xf   :  { %506 = vmatpush3.bf16.msra.mxu0 %v556_v8 }
  0x10   :  { %507 = vmatprep.subr.bf16.mxu0 %v557_v9 }
  0x11   :  { %545 = vset.pattern.permute.xlu0 %v584_v61 }
  0x12   :  { %546 = vset.pattern.permute.xlu1 %v584_v61  ;;  %v454_v61 = vld [vmem:[%s769_s3 + $0x8] sm:$0xff] }
  0x13   :  { %508 = vmatpush3.bf16.msra.mxu0 %v558_v11 }
  0x14   :  { %509 = vmatprep.subr.bf16.mxu0 %v559_v12 }
  0x17   :  { %510 = vmatpush3.bf16.msra.mxu0 %v560_v13 }
  0x18   :  { %511 = vmatprep.subr.bf16.mxu0 %v561_v15 }
  0x1b   :  { %512 = vmatpush3.bf16.msra.mxu0 %v562_v20 }
  0x1c   :  { %513 = vmatprep.subr.bf16.mxu0 %v564_v22 }
  0x1f   :  { %514 = vmatpush3.bf16.msra.mxu0 %v565_v25 }
  0x22   :  { %264 = vmatmul.mubr.bf16.vlgmr.msra.gmra.mrb[0].mxu0 %v567_v26 }
  0x23   :  { %271 = vmatprep.mubr.bf16.mxu0 %v572_v27 }
  0x2a   :  { %272 = vmatmul.mubr.bf16.gmra.mrb[4].mxu0 %v574_v28 }
  0x88   :  { %v69_v33 = vpop.permute.xlu0 %68 }
  0x89   :  { %v79_v44 = vpop.permute.xlu1 %78 }
  0x8c   :  { %v74_v41 = vpop.permute.xlu0 %73 }
  0x8d   :  { %v84_v55 = vpop.permute.xlu1 %83 }
  0xe0   :  { %v537_v29 = vpop.f32.mrb[0].mxu1 }
  0xe1   :  { %v314_v30 = vpop.f32.mrb[1].mxu1 }
  0xe2   :  { %v538_v31 = vpop.f32.mrb[2].mxu1 }
  0xe3   :  { %v317_v32 = vpop.f32.mrb[3].mxu1 }
  0xf5   :  { %v515_v34 = vpop.f32.mrb[0].mxu0 }
  0xf6   :  { %v516_v35 = vpop.f32.mrb[1].mxu0 }
  0xf7   :  { %v517_v36 = vadd.f32 %v516_v35, %v515_v34  ;;  %v518_v37 = vpop.f32.mrb[2].mxu0 }
  0xf8   :  { %v519_v38 = vpop.f32.mrb[3].mxu0 }
  0xf9   :  { %v266_v39 = vadd.f32 %v517_v36, %v69_v33  ;;  %v520_v40 = vadd.f32 %v519_v38, %v518_v37 }
  0xfb   :  { %v710_v42 = vadd.f32 %v314_v30, %v266_v39  ;;  %v269_v43 = vadd.f32 %v520_v40, %v74_v41 }
  0xfd   :  { %v712_v45 = vadd.f32 %v317_v32, %v269_v43  ;;  %v521_v46 = vpop.f32.mrb[4].mxu0  ;;  %329 = vadd.xlane.f32.xlu0 %v710_v42  ;;  %v341_v54 = vmul.f32 %v710_v42, %v710_v42  ;;  %v586_v43 = vmov 2  }
  0xfe   :  { %v522_v47 = vpop.f32.mrb[5].mxu0 }
  0xff   :  { %v523_v48 = vadd.f32 %v522_v47, %v521_v46  ;;  %v524_v49 = vpop.f32.mrb[6].mxu0  ;;  %331 = vadd.xlane.f32.xlu1 %v712_v45  ;;  %v342_v50 = vmul.f32 %v712_v45, %v712_v45 }
 0x100   :  { %v525_v51 = vpop.f32.mrb[7].mxu0 }
 0x101   :  { %v274_v52 = vadd.f32 %v523_v48, %v79_v44  ;;  %v526_v53 = vadd.f32 %v525_v51, %v524_v49  ;;  %347 = vadd.xlane.f32.xlu0 %v342_v50 }
 0x103   :  { %v277_v56 = vadd.f32 %v526_v53, %v84_v55  ;;  %345 = vadd.xlane.f32.xlu1 %v341_v54  ;;  %v720_v57 = vadd.f32 %v537_v29, %v274_v52 }
 0x105   :  { %333 = vadd.xlane.f32.xlu0 %v720_v57  ;;  %v343_v58 = vmul.f32 %v720_v57, %v720_v57  ;;  %v725_v59 = vadd.f32 %v538_v31, %v277_v56 }
 0x107   :  { %349 = vadd.xlane.f32.xlu1 %v343_v58  ;;  %v344_v60 = vmul.f32 %v725_v59, %v725_v59 }
 0x109   :  { %335 = vadd.xlane.f32.xlu0 %v725_v59 }
 0x10d   :  { %351 = vadd.xlane.f32.xlu0 %v344_v60 }
 0x18a   :  { %v330_v62 = vpop.xlane.xlu0 %329 }
 0x18b   :  { %v337_v0 = vmul.f32 0.0078125, %v330_v62 }
 0x18c   :  { %v332_v63 = vpop.xlane.xlu1 %331 }
 0x18d   :  { %v338_v1 = vmul.f32 0.0078125, %v332_v63  ;;  %v357_v6 = vmul.f32 %v337_v0, %v337_v0 }
 0x18e   :  { %v348_v2 = vpop.xlane.xlu0 %347 }
 0x18f   :  { %v358_v3 = vmul.f32 %v338_v1, %v338_v1  ;;  %v354_v4 = vmul.f32 0.0078125, %v348_v2 }
 0x190   :  { %v346_v5 = vpop.xlane.xlu1 %345 }
 0x191   :  { %v362_v7 = vsub.f32 %v354_v4, %v358_v3  ;;  %v353_v8 = vmul.f32 0.0078125, %v346_v5  ;;  %v455_v5 = vld [vmem:[%s769_s3 + $0x10] sm:$0xff] }
 0x192   :  { %v334_v9 = vpop.xlane.xlu0 %333 }
 0x193   :  { %v366_v10 = vadd.f32 1e-05, %v362_v7  ;;  %v361_v11 = vsub.f32 %v353_v8, %v357_v6  ;;  %v339_v12 = vmul.f32 0.0078125, %v334_v9 }
 0x194   :  { %v350_v13 = vpop.xlane.xlu1 %349 }
 0x195   :  { %575 = vrsqrt.f32 %v366_v10  ;;  %v365_v14 = vadd.f32 1e-05, %v361_v11  ;;  %v359_v15 = vmul.f32 %v339_v12, %v339_v12  ;;  %v355_v16 = vmul.f32 0.0078125, %v350_v13 }
 0x196   :  { %v336_v17 = vpop.xlane.xlu0 %335 }
 0x197   :  { %577 = vrsqrt.f32 %v365_v14  ;;  %v363_v18 = vsub.f32 %v355_v16, %v359_v15  ;;  %v340_v20 = vmul.f32 0.0078125, %v336_v17 }
 0x199   :  { %v367_v22 = vadd.f32 1e-05, %v363_v18  ;;  %v360_v26 = vmul.f32 %v340_v20, %v340_v20 }
 0x19a   :  { %v352_v25 = vpop.xlane.xlu0 %351 }
 0x19b   :  { %579 = vrsqrt.f32 %v367_v22  ;;  %v356_v27 = vmul.f32 0.0078125, %v352_v25 }
 0x19d   :  { %v364_v28 = vsub.f32 %v356_v27, %v360_v26 }
 0x19f   :  { %v576_v29 = vpop.eup %575  ;;  %v368_v30 = vadd.f32 1e-05, %v364_v28 }
 0x1a0   :  { %v374_v31 = vmul.f32 %v576_v29, %v688_v23 }
 0x1a1   :  { %v578_v32 = vpop.eup %577  ;;  %581 = vrsqrt.f32 %v368_v30 }
 0x1a2   :  { %v378_v33 = vmul.f32 %v374_v31, %v338_v1  ;;  %v373_v34 = vmul.f32 %v578_v32, %v670_v19 }
 0x1a4   :  { %387 = vrot.lane.b32.xlu0 %v378_v33, %s585_s0  ;;  %v377_v35 = vmul.f32 %v373_v34, %v337_v0 }
 0x1a5   :  { %v580_v36 = vpop.eup %579 }
 0x1a6   :  { %385 = vrot.lane.b32.xlu1 %v377_v35, %s585_s0  ;;  %v375_v37 = vmul.f32 %v580_v36, %v679_v21 }
 0x1a8   :  { %403 = vperm.xlu0 %545, %v373_v34   ;;  %v379_v38 = vmul.f32 %v375_v37, %v339_v12  ;;  %v456_v12 = vld [vmem:[%s769_s3 + $0x18] sm:$0xff] }
 0x1aa   :  { %389 = vrot.lane.b32.xlu1 %v379_v38, %s585_s0 }
 0x1ab   :  { %v582_v39 = vpop.eup %581 }
 0x1ac   :  { %v376_v40 = vmul.f32 %v582_v39, %v694_v24 }
 0x1ae   :  { %418 = vperm.xlu0 %545, %v376_v40   ;;  %v380_v41 = vmul.f32 %v376_v40, %v340_v20 }
 0x1b0   :  { %391 = vrot.lane.b32.xlu1 %v380_v41, %s585_s0 }
 0x1b2   :  { %548 = vset.pattern.permute.xlu0 %v586_v43 }
 0x1b4   :  { %408 = vperm.xlu1 %546, %v374_v31  }
 0x1b8   :  { %413 = vperm.xlu1 %546, %v375_v37  }
 0x1bc   :  { %547 = vset.pattern.permute.xlu1 %v586_v43 }
 0x216   :  { %v388_v44 = vpop.permute.xlu0 %387 }
 0x217   :  { %v398_v46 = vsub.f32 %v688_v23, %v388_v44 }
 0x218   :  { %v386_v47 = vpop.permute.xlu1 %385 }
 0x219   :  { %v397_v48 = vsub.f32 %v670_v19, %v386_v47  ;;  %432 = vperm.xlu0 %548, %v398_v46  }
 0x21b   :  { %427 = vperm.xlu1 %547, %v397_v48  }
 0x21c   :  { %v390_v49 = vpop.permute.xlu1 %389 }
 0x21d   :  { %v399_v50 = vsub.f32 %v679_v21, %v390_v49 }
 0x21f   :  { %437 = vperm.xlu1 %547, %v399_v50  }
 0x222   :  { %v392_v51 = vpop.permute.xlu1 %391 }
 0x223   :  { %v400_v52 = vsub.f32 %v694_v24, %v392_v51  ;;  %v453_v24 = vld [vmem:[%s769_s3] sm:$0xff] }
 0x225   :  { %442 = vperm.xlu1 %547, %v400_v52  }
 0x227   :  { %v404_v53 = vpop.permute.xlu0 %403 }
 0x228   :  { %v421_v60 = vmul.f32 %v404_v53, %v710_v42 }
 0x22d   :  { %v419_v55 = vpop.permute.xlu0 %418 }
 0x22e   :  { %v424_v8 = vmul.f32 %v419_v55, %v725_v59 }
 0x233   :  { %v409_v54 = vpop.permute.xlu1 %408 }
 0x234   :  { %v422_v58 = vmul.f32 %v409_v54, %v712_v45 }
 0x237   :  { %v414_v56 = vpop.permute.xlu1 %413 }
 0x238   :  { %v423_v0 = vmul.f32 %v414_v56, %v720_v57 }
 0x298   :  { %v433_v23 = vpop.permute.xlu0 %432 }
 0x299   :  { %v446_v19 = vadd.f32 %v433_v23, %v422_v58 }
 0x29a   :  { %v428_v21 = vpop.permute.xlu1 %427 }
 0x29b   :  { %v450_v62 = vmax.f32 %v446_v19, 0.0  ;;  %v445_v63 = vadd.f32 %v428_v21, %v421_v60 }
 0x29d   :  { %v458_v1 = vadd.f32 %v454_v61, %v450_v62  ;;  %v449_v2 = vmax.f32 %v445_v63, 0.0 }
 0x29e   :  { %v438_v45 = vpop.permute.xlu1 %437 }
 0x29f   :  { %v462_v3 = vmax.f32 %v458_v1, 0.0  ;;  %v457_v4 = vadd.f32 %v453_v24, %v449_v2  ;;  %v447_v42 = vadd.f32 %v438_v45, %v423_v0 }
 0x2a1   :  { %466 = vst [vmem:[%s770_s4 + $0x8] sm:$0xff] %v462_v3  ;;  %v461_v6 = vmax.f32 %v457_v4, 0.0  ;;  %v451_v7 = vmax.f32 %v447_v42, 0.0 }
 0x2a3   :  { %465 = vst [vmem:[%s770_s4] sm:$0xff] %v461_v6  ;;  %v459_v57 = vadd.f32 %v455_v5, %v451_v7 }
 0x2a4   :  { %v443_v9 = vpop.permute.xlu1 %442 }
 0x2a5   :  { %v463_v10 = vmax.f32 %v459_v57, 0.0  ;;  %v448_v11 = vadd.f32 %v443_v9, %v424_v8 }
 0x2a7   :  { %467 = vst [vmem:[%s770_s4 + $0x10] sm:$0xff] %v463_v10  ;;  %v452_v13 = vmax.f32 %v448_v11, 0.0 }
 0x2a9   :  { %v460_v14 = vadd.f32 %v456_v12, %v452_v13 }
 0x2ab   :  { %v464_v15 = vmax.f32 %v460_v14, 0.0 }
 0x2ad   :  { %468 = vst [vmem:[%s770_s4 + $0x18] sm:$0xff] %v464_v15 }

// kernel: model_heatmap_resnet_forward.10
= control target key start
LH: loop header
LB: loop body
LE: loop exit
PB: predicated region body
PF: predicated region fallthrough
CT: control target
= control target key end

     0   :  { %v1953_v1 = vmov 0   ;;  %vm221_vm0 = vcmask 261120   ;;  %s2505_s0 = inlined_call_operand.vmem [shape: bf16[4,288,32], index: 0, kind: input, shape index: {}]   ;;  %s2506_s1 = inlined_call_operand.vmem [shape: bf16[32,288], index: 1, kind: input, shape index: {}]   ;;  %s2507_s2 = inlined_call_operand.vmem [shape: f32[32,8], index: 2, kind: input, shape index: {}]   ;;  %s2508_s3 = inlined_call_operand.vmem [shape: f32[32,32], index: 3, kind: output, shape index: {}]  }
   0x1   :  { %v1857_v0 = vld [vmem:[%s2505_s0 + $0x40] sm:$0xff]   ;;  %1847 = vset.pattern.permute.xlu0 %v1953_v1  ;;  %1848 = vset.pattern.permute.xlu1 %v1953_v1  ;;  %v1860_v4 = vld [vmem:[%s2505_s0 + $0x48] sm:$0xff]   ;;  %v1864_v8 = vld [vmem:[%s2505_s0 + $0x50] sm:$0xff]  }
   0x2   :  { %v1858_v2 = vld [vmem:[%s2505_s0 + $0x80] sm:$0xff]   ;;  %1681 = vmatprep.subr.bf16.mxu0 %v1857_v0  ;;  %v1861_v5 = vld [vmem:[%s2505_s0 + $0x88] sm:$0xff]   ;;  %v1866_v10 = vld [vmem:[%s2505_s0 + $0xd0] sm:$0xff]  }
   0x3   :  { %v1859_v3 = vld [vmem:[%s2505_s0] sm:$0xff]   ;;  %1809 = vmatprep.subr.bf16.mxu1 %v1858_v2  ;;  %v1862_v6 = vld [vmem:[%s2505_s0 + $0x8] sm:$0xff]   ;;  %v1867_v11 = vld [vmem:[%s2505_s0 + $0x10] sm:$0xff]  }
   0x4   :  { %1682 = vmatpush3.bf16.msra.mxu0 %v1859_v3  ;;  %1810 = vmatpush3.bf16.msra.mxu1 %v1858_v2  ;;  %v2000_v7 = vld [vmem:[%s2506_s1 + $0x8] ss:$12 sps:$4 sm:$0xff]   ;;  %v2008_v9 = vld [vmem:[%s2506_s1 + $0x20] ss:$12 sps:$4 sm:$0xff]   ;;  %v1869_v13 = vld [vmem:[%s2505_s0 + $0x58] sm:$0xff]  }
   0x5   :  { %1683 = vmatprep.subr.bf16.mxu0 %v1860_v4  ;;  %1811 = vmatprep.subr.bf16.mxu1 %v1861_v5  ;;  %v1868_v12 = vld [vmem:[%s2505_s0 + $0x90] sm:$0xff]   ;;  %v1870_v14 = vld [vmem:[%s2505_s0 + $0xd8] sm:$0xff]   ;;  %v1873_v17 = vld [vmem:[%s2505_s0 + $0x60] sm:$0xff]  }
   0x6   :  { %1813 = vmatprep.mubr.msk.bf16.mxu1 %vm221_vm0, %v2000_v7  ;;  %v1871_v15 = vld [vmem:[%s2505_s0 + $0x18] sm:$0xff]   ;;  %v1874_v18 = vld [vmem:[%s2505_s0 + $0xe0] sm:$0xff]   ;;  %v1877_v21 = vld [vmem:[%s2505_s0 + $0x68] sm:$0xff]  }
   0x7   :  { %v1872_v16 = vld [vmem:[%s2505_s0 + $0x98] sm:$0xff]   ;;  %v1875_v19 = vld [vmem:[%s2505_s0 + $0x20] sm:$0xff]   ;;  %v1878_v22 = vld [vmem:[%s2505_s0 + $0xe8] sm:$0xff]  }
   0x8   :  { %1684 = vmatpush3.bf16.msra.mxu0 %v1862_v6  ;;  %1812 = vmatpush3.bf16.msra.mxu1 %v1861_v5  ;;  %v1876_v20 = vld [vmem:[%s2505_s0 + $0xa0] sm:$0xff]   ;;  %v1879_v23 = vld [vmem:[%s2505_s0 + $0x28] sm:$0xff]   ;;  %v1881_v25 = vld [vmem:[%s2505_s0 + $0x70] sm:$0xff]  }
   0x9   :  { %1685 = vmatprep.subr.bf16.mxu0 %v1864_v8  ;;  %1713 = vmatprep.subr.bf16.mxu1 %v1866_v10  ;;  %v1880_v24 = vld [vmem:[%s2505_s0 + $0xa8] sm:$0xff]   ;;  %v1882_v26 = vld [vmem:[%s2505_s0 + $0xf0] sm:$0xff]   ;;  %v1885_v29 = vld [vmem:[%s2505_s0 + $0x78] sm:$0xff]  }
   0xa   :  { %v1883_v27 = vld [vmem:[%s2505_s0 + $0x30] sm:$0xff]   ;;  %v1886_v30 = vld [vmem:[%s2505_s0 + $0xf8] sm:$0xff]   ;;  %v2091_v34 = vld [vmem:[%s2506_s1] ss:$12 sps:$4 sm:$0xff]  }
   0xb   :  { %1814 = vmatmul.mubr.msk.bf16.vlgmr.msra.gmra.mrb[0].mxu1 %vm221_vm0, %v2008_v9  ;;  %v1884_v28 = vld [vmem:[%s2505_s0 + $0xb0] sm:$0xff]   ;;  %v1887_v31 = vld [vmem:[%s2505_s0 + $0x38] sm:$0xff]   ;;  %v1892_v35 = vld [vmem:[%s2505_s0 + $0x100] sm:$0xff]  }
   0xc   :  { %1686 = vmatpush3.bf16.msra.mxu0 %v1867_v11  ;;  %1714 = vmatpush3.bf16.msra.mxu1 %v1868_v12  ;;  %v1888_v32 = vld [vmem:[%s2505_s0 + $0xb8] sm:$0xff]   ;;  %v2086_v33 = vld [vmem:[%s2506_s1 + $0x4] ss:$12 sps:$4 sm:$0xff]   ;;  %v1895_v38 = vld [vmem:[%s2505_s0 + $0x108] sm:$0xff]  }
   0xd   :  { %1687 = vmatprep.subr.bf16.mxu0 %v1869_v13  ;;  %1715 = vmatprep.subr.bf16.mxu1 %v1870_v14  ;;  %v1893_v36 = vld [vmem:[%s2505_s0 + $0x110] sm:$0xff]   ;;  %v1894_v37 = vld [vmem:[%s2505_s0 + $0xc0] sm:$0xff]   ;;  %v1896_v39 = vld [vmem:[%s2505_s0 + $0xc8] sm:$0xff]  }
   0xe   :  { %260 = vmatprep.mubr.bf16.mxu0 %v2086_v33  ;;  %503 = vmatprep.mubr.bf16.mxu1 %v2086_v33  ;;  %v2114_v40 = vld [vmem:[%s2506_s1 + $0x1c] ss:$12 sps:$4 sm:$0xff]   ;;  %v2119_v41 = vld [vmem:[%s2506_s1 + $0x18] ss:$12 sps:$4 sm:$0xff]   ;;  %v1906_v48 = vld [vmem:[%s2505_s0 + $0x170] sm:$0xff]  }
   0xf   :  { %v1900_v42 = vld [vmem:[%s2505_s0 + $0x118] sm:$0xff]   ;;  %v1901_v43 = vld [vmem:[%s2505_s0 + $0x160] sm:$0xff]   ;;  %v1903_v45 = vld [vmem:[%s2505_s0 + $0x168] sm:$0xff]  }
  0x10   :  { %1688 = vmatpush3.bf16.msra.mxu0 %v1871_v15  ;;  %1716 = vmatpush3.bf16.msra.mxu1 %v1872_v16  ;;  %v1902_v44 = vld [vmem:[%s2505_s0 + $0x120] sm:$0xff]   ;;  %v1904_v47 = vld [vmem:[%s2505_s0 + $0x128] sm:$0xff]   ;;  %v1907_v50 = vld [vmem:[%s2505_s0 + $0x130] sm:$0xff]  }
  0x11   :  { %1689 = vmatprep.subr.bf16.mxu0 %v1873_v17  ;;  %1717 = vmatprep.subr.bf16.mxu1 %v1874_v18  ;;  %v1905_v46 = vld [vmem:[%s2505_s0 + $0x1a0] sm:$0xff]   ;;  %v1908_v49 = vld [vmem:[%s2505_s0 + $0x1a8] sm:$0xff]   ;;  %v1909_v51 = vld [vmem:[%s2505_s0 + $0x178] sm:$0xff]  }
  0x12   :  { %v1911_v52 = vld [vmem:[%s2505_s0 + $0x1f0] sm:$0xff]   ;;  %v1910_v53 = vld [vmem:[%s2505_s0 + $0x138] sm:$0xff]   ;;  %v1912_v54 = vld [vmem:[%s2505_s0 + $0x180] sm:$0xff]  }
  0x13   :  { %v1913_v55 = vld [vmem:[%s2505_s0 + $0x1b0] sm:$0xff]   ;;  %v1915_v56 = vld [vmem:[%s2505_s0 + $0x1f8] sm:$0xff]   ;;  %v1914_v57 = vld [vmem:[%s2505_s0 + $0x140] sm:$0xff]  }
  0x14   :  { %1690 = vmatpush3.bf16.msra.mxu0 %v1875_v19  ;;  %1718 = vmatpush3.bf16.msra.mxu1 %v1876_v20  ;;  %v1916_v58 = vld [vmem:[%s2505_s0 + $0x188] sm:$0xff]   ;;  %v1917_v59 = vld [vmem:[%s2505_s0 + $0x1b8] sm:$0xff]   ;;  %v1919_v60 = vld [vmem:[%s2505_s0 + $0x200] sm:$0xff]  }
  0x15   :  { %1691 = vmatprep.subr.bf16.mxu0 %v1877_v21  ;;  %1719 = vmatprep.subr.bf16.mxu1 %v1878_v22  ;;  %v1918_v61 = vld [vmem:[%s2505_s0 + $0x148] sm:$0xff]   ;;  %v1920_v62 = vld [vmem:[%s2505_s0 + $0x190] sm:$0xff]   ;;  %v1921_v63 = vld [vmem:[%s2505_s0 + $0x1c0] sm:$0xff]  }
  0x16   :  { %v1923_v0 = vld [vmem:[%s2505_s0 + $0x208] sm:$0xff]   ;;  %v1922_v1 = vld [vmem:[%s2505_s0 + $0x150] sm:$0xff]   ;;  %v1924_v2 = vld [vmem:[%s2505_s0 + $0x198] sm:$0xff]  }
  0x17   :  { %v1925_v3 = vld [vmem:[%s2505_s0 + $0x1c8] sm:$0xff]   ;;  %v1927_v4 = vld [vmem:[%s2505_s0 + $0x210] sm:$0xff]   ;;  %v1926_v5 = vld [vmem:[%s2505_s0 + $0x158] sm:$0xff]  }
  0x18   :  { %1692 = vmatpush3.bf16.msra.mxu0 %v1879_v23  ;;  %1720 = vmatpush3.bf16.msra.mxu1 %v1880_v24  ;;  %v1930_v6 = vld [vmem:[%s2505_s0 + $0x230] sm:$0xff]   ;;  %v1929_v10 = vld [vmem:[%s2505_s0 + $0x218] sm:$0xff]   ;;  %v2238_v13 = vld [vmem:[%s2507_s2] sm:$0xff] }
  0x19   :  { %1693 = vmatprep.subr.bf16.mxu0 %v1881_v25  ;;  %1721 = vmatprep.subr.bf16.mxu1 %v1882_v26  ;;  %v1928_v8 = vld [vmem:[%s2505_s0 + $0x1d0] sm:$0xff]   ;;  %v1935_v11 = vld [vmem:[%s2505_s0 + $0x238] sm:$0xff]   ;;  %v1932_v14 = vld [vmem:[%s2505_s0 + $0x220] sm:$0xff]  }
  0x1a   :  { %v1931_v12 = vld [vmem:[%s2505_s0 + $0x1d8] sm:$0xff]   ;;  %v2247_v15 = vld [vmem:[%s2507_s2 + $0x10] sm:$0xff]  ;;  %65 = vperm.xlu0 %1847, %v2238_v13   ;;  %v1933_v16 = vld [vmem:[%s2505_s0 + $0x1e0] sm:$0xff]  }
  0x1b   :  { %v2257_v17 = vld [vmem:[%s2507_s2 + $0x8] sm:$0xff]  ;;  %75 = vperm.xlu1 %1848, %v2247_v15   ;;  %v2266_v19 = vld [vmem:[%s2507_s2 + $0x18] sm:$0xff] }
  0x1c   :  { %1694 = vmatpush3.bf16.msra.mxu0 %v1883_v27  ;;  %1722 = vmatpush3.bf16.msra.mxu1 %v1884_v28  ;;  %v1934_v18 = vld [vmem:[%s2505_s0 + $0x228] sm:$0xff]  }
  0x1d   :  { %1695 = vmatprep.subr.bf16.mxu0 %v1885_v29  ;;  %1723 = vmatprep.subr.bf16.mxu1 %v1886_v30  ;;  %v1936_v20 = vld [vmem:[%s2505_s0 + $0x1e8] sm:$0xff]   ;;  %s1955_s0 = smov 1  }
  0x1e   :  { %70 = vperm.xlu0 %1847, %v2257_v17  }
  0x1f   :  { %80 = vperm.xlu1 %1848, %v2266_v19  }
  0x20   :  { %1696 = vmatpush3.bf16.msra.mxu0 %v1887_v31  ;;  %1724 = vmatpush3.bf16.msra.mxu1 %v1888_v32 }
  0x21   :  { %1725 = vmatprep.subr.bf16.mxu1 %v1892_v35  ;;  %1817 = vmatprep.subr.bf16.mxu0 %v1893_v36 }
  0x23   :  { %261 = vmatmul.mubr.bf16.vlgmr.msra.gmra.mrb[0].mxu0 %v2091_v34 }
  0x24   :  { %1726 = vmatpush3.bf16.msra.mxu1 %v1894_v37  ;;  %1818 = vmatpush3.bf16.msra.mxu0 %v1893_v36 }
  0x25   :  { %1727 = vmatprep.subr.bf16.mxu1 %v1895_v38  ;;  %268 = vmatprep.mubr.bf16.mxu0 %v2114_v40 }
  0x26   :  { %1819 = vmatprep.subr.bf16.mxu0 %v1900_v42 }
  0x28   :  { %1728 = vmatpush3.bf16.msra.mxu1 %v1896_v39  ;;  %1820 = vmatpush3.bf16.msra.mxu0 %v1900_v42 }
  0x29   :  { %1745 = vmatprep.subr.bf16.mxu1 %v1901_v43  ;;  %1825 = vmatprep.subr.bf16.mxu0 %v1905_v46 }
  0x2b   :  { %269 = vmatmul.mubr.bf16.gmra.mrb[4].mxu0 %v2119_v41  ;;  %504 = vmatmul.mubr.bf16.vlgmr.msra.gmra.mrb[4].mxu1 %v2091_v34 }
  0x2c   :  { %1821 = vmatprep.mubr.msk.bf16.mxu0 %vm221_vm0, %v2000_v7  ;;  %1746 = vmatpush3.bf16.msra.mxu1 %v1902_v44 }
  0x2d   :  { %511 = vmatprep.mubr.bf16.mxu1 %v2114_v40  ;;  %1747 = vmatprep.subr.bf16.mxu1 %v1903_v45 }
  0x30   :  { %1748 = vmatpush3.bf16.msra.mxu1 %v1904_v47 }
  0x31   :  { %1749 = vmatprep.subr.bf16.mxu1 %v1906_v48 }
  0x33   :  { %1822 = vmatmul.mubr.msk.bf16.vlgmr.msra.gmra.mrb[8].mxu0 %vm221_vm0, %v2008_v9  ;;  %512 = vmatmul.mubr.bf16.gmra.mrb[8].mxu1 %v2119_v41 }
  0x34   :  { %1826 = vmatpush3.bf16.msra.mxu0 %v1905_v46  ;;  %1829 = vmatprep.mubr.msk.bf16.mxu0 %vm221_vm0, %v2000_v7 }
  0x35   :  { %1827 = vmatprep.subr.bf16.mxu0 %v1908_v49  ;;  %1750 = vmatpush3.bf16.msra.mxu1 %v1907_v50 }
  0x36   :  { %746 = vmatprep.mubr.bf16.mxu1 %v2086_v33  ;;  %1751 = vmatprep.subr.bf16.mxu1 %v1909_v51 }
  0x38   :  { %1828 = vmatpush3.bf16.msra.mxu0 %v1908_v49 }
  0x39   :  { %1777 = vmatprep.subr.bf16.mxu0 %v1911_v52  ;;  %1752 = vmatpush3.bf16.msra.mxu1 %v1910_v53 }
  0x3a   :  { %1753 = vmatprep.subr.bf16.mxu1 %v1912_v54 }
  0x3b   :  { %1830 = vmatmul.mubr.msk.bf16.vlgmr.msra.gmra.mrb[12].mxu0 %vm221_vm0, %v2008_v9 }
  0x3c   :  { %1778 = vmatpush3.bf16.msra.mxu0 %v1913_v55  ;;  %989 = vmatprep.mubr.bf16.mxu0 %v2086_v33 }
  0x3d   :  { %1779 = vmatprep.subr.bf16.mxu0 %v1915_v56  ;;  %1754 = vmatpush3.bf16.msra.mxu1 %v1914_v57 }
  0x3e   :  { %1755 = vmatprep.subr.bf16.mxu1 %v1916_v58 }
  0x40   :  { %1780 = vmatpush3.bf16.msra.mxu0 %v1917_v59 }
  0x41   :  { %1781 = vmatprep.subr.bf16.mxu0 %v1919_v60  ;;  %1756 = vmatpush3.bf16.msra.mxu1 %v1918_v61 }
  0x42   :  { %1757 = vmatprep.subr.bf16.mxu1 %v1920_v62 }
  0x44   :  { %1782 = vmatpush3.bf16.msra.mxu0 %v1921_v63 }
  0x45   :  { %1783 = vmatprep.subr.bf16.mxu0 %v1923_v0  ;;  %1758 = vmatpush3.bf16.msra.mxu1 %v1922_v1 }
  0x46   :  { %1759 = vmatprep.subr.bf16.mxu1 %v1924_v2 }
  0x48   :  { %1784 = vmatpush3.bf16.msra.mxu0 %v1925_v3 }
  0x49   :  { %1785 = vmatprep.subr.bf16.mxu0 %v1927_v4  ;;  %1760 = vmatpush3.bf16.msra.mxu1 %v1926_v5 }
  0x4a   :  { %1833 = vmatprep.subr.bf16.mxu1 %v1930_v6 }
  0x4c   :  { %1786 = vmatpush3.bf16.msra.mxu0 %v1928_v8  ;;  %747 = vmatmul.mubr.bf16.vlgmr.msra.gmra.mrb[12].mxu1 %v2091_v34 }
  0x4d   :  { %1787 = vmatprep.subr.bf16.mxu0 %v1929_v10  ;;  %1834 = vmatpush3.bf16.msra.mxu1 %v1930_v6 }
  0x4e   :  { %754 = vmatprep.mubr.bf16.mxu1 %v2114_v40  ;;  %1835 = vmatprep.subr.bf16.mxu1 %v1935_v11 }
  0x50   :  { %1788 = vmatpush3.bf16.msra.mxu0 %v1931_v12 }
  0x51   :  { %1789 = vmatprep.subr.bf16.mxu0 %v1932_v14  ;;  %1836 = vmatpush3.bf16.msra.mxu1 %v1935_v11 }
  0x54   :  { %1790 = vmatpush3.bf16.msra.mxu0 %v1933_v16  ;;  %755 = vmatmul.mubr.bf16.gmra.mrb[16].mxu1 %v2119_v41 }
  0x55   :  { %1791 = vmatprep.subr.bf16.mxu0 %v1934_v18  ;;  %1837 = vmatprep.mubr.msk.bf16.mxu1 %vm221_vm0, %v2000_v7 }
  0x58   :  { %1792 = vmatpush3.bf16.msra.mxu0 %v1936_v20 }
  0x5b   :  { %990 = vmatmul.mubr.bf16.vlgmr.msra.gmra.mrb[16].mxu0 %v2091_v34 }
  0x5c   :  { %997 = vmatprep.mubr.bf16.mxu0 %v2114_v40  ;;  %1838 = vmatmul.mubr.msk.bf16.vlgmr.msra.gmra.mrb[20].mxu1 %vm221_vm0, %v2008_v9 }
  0x63   :  { %998 = vmatmul.mubr.bf16.gmra.mrb[20].mxu0 %v2119_v41 }
  0x99   :  { %v2281_v25 = vpop.permute.xlu0 %65 }
  0x9a   :  { %v2283_v29 = vpop.permute.xlu1 %75 }
  0x9d   :  { %v2285_v31 = vpop.permute.xlu0 %70 }
  0x9e   :  { %v2295_v39 = vpop.permute.xlu1 %80 }
  0xde   :  { %v1815_v21 = vpop.f32.mrb[0].mxu1 }
  0xdf   :  { %v311_v22 = vpop.f32.mrb[1].mxu1 }
  0xe0   :  { %v1816_v23 = vpop.f32.mrb[2].mxu1 }
  0xe1   :  { %v314_v24 = vpop.f32.mrb[3].mxu1 }
  0xf6   :  { %v1697_v26 = vpop.f32.mrb[0].mxu0 }
  0xf7   :  { %v1698_v27 = vpop.f32.mrb[1].mxu0 }
  0xf8   :  { %v1699_v28 = vadd.f32 %v1698_v27, %v1697_v26  ;;  %v1700_v7 = vpop.f32.mrb[2].mxu0 }
  0xf9   :  { %v1701_v30 = vpop.f32.mrb[3].mxu0 }
  0xfa   :  { %v263_v32 = vadd.f32 %v1699_v28, %v2281_v25  ;;  %v1702_v9 = vadd.f32 %v1701_v30, %v1700_v7 }
  0xfc   :  { %v2288_v33 = vadd.f32 %v311_v22, %v263_v32  ;;  %v266_v34 = vadd.f32 %v1702_v9, %v2285_v31 }
  0xfe   :  { %v1703_v35 = vpop.f32.mrb[4].mxu0  ;;  %v1055_v36 = vsel %vm221_vm0, %v2288_v33, 0.0  ;;  %v2293_v37 = vadd.f32 %v314_v24, %v266_v34  ;;  %v1729_v40 = vpop.f32.mrb[4].mxu1  ;;  %v1123_v45 = vmul.f32 %v2288_v33, %v2288_v33 }
  0xff   :  { %v1704_v38 = vpop.f32.mrb[5].mxu0  ;;  %1056 = vadd.xlane.f32.xlu0 %v1055_v36  ;;  %v1730_v46 = vpop.f32.mrb[5].mxu1 }
 0x100   :  { %v1705_v41 = vadd.f32 %v1704_v38, %v1703_v35  ;;  %v1706_v42 = vpop.f32.mrb[6].mxu0  ;;  %v1058_v43 = vsel %vm221_vm0, %v2293_v37, 0.0  ;;  %v1124_v44 = vmul.f32 %v2293_v37, %v2293_v37  ;;  %v1731_v49 = vadd.f32 %v1730_v46, %v1729_v40  ;;  %v1732_v50 = vpop.f32.mrb[6].mxu1 }
 0x101   :  { %v1707_v47 = vpop.f32.mrb[7].mxu0  ;;  %1059 = vadd.xlane.f32.xlu1 %v1058_v43  ;;  %v1733_v53 = vpop.f32.mrb[7].mxu1  ;;  %v1127_v57 = vsel %vm221_vm0, %v1123_v45, 0.0 }
 0x102   :  { %v271_v48 = vadd.f32 %v1705_v41, %v2283_v29  ;;  %v1708_v51 = vadd.f32 %v1707_v47, %v1706_v42  ;;  %v1130_v52 = vsel %vm221_vm0, %v1124_v44, 0.0  ;;  %v1734_v55 = vadd.f32 %v1733_v53, %v1732_v50 }
 0x103   :  { %1131 = vadd.xlane.f32.xlu0 %v1130_v52  ;;  %v506_v59 = vadd.f32 %v1731_v49, %v2281_v25 }
 0x104   :  { %v2305_v54 = vadd.f32 %v1815_v21, %v271_v48  ;;  %v274_v56 = vadd.f32 %v1708_v51, %v2295_v39  ;;  %v509_v3 = vadd.f32 %v1734_v55, %v2285_v31 }
 0x105   :  { %1128 = vadd.xlane.f32.xlu1 %v1127_v57 }
 0x106   :  { %v1823_v58 = vpop.f32.mrb[8].mxu0  ;;  %v1061_v60 = vsel %vm221_vm0, %v2305_v54, 0.0  ;;  %v1125_v61 = vmul.f32 %v2305_v54, %v2305_v54  ;;  %v2314_v62 = vadd.f32 %v1816_v23, %v274_v56  ;;  %v1735_v0 = vpop.f32.mrb[8].mxu1 }
 0x107   :  { %v554_v63 = vpop.f32.mrb[9].mxu0  ;;  %1062 = vadd.xlane.f32.xlu0 %v1061_v60  ;;  %v1736_v5 = vpop.f32.mrb[9].mxu1 }
 0x108   :  { %v2316_v1 = vadd.f32 %v554_v63, %v506_v59  ;;  %v1824_v2 = vpop.f32.mrb[10].mxu0  ;;  %v1133_v4 = vsel %vm221_vm0, %v1125_v61, 0.0  ;;  %v1737_v8 = vadd.f32 %v1736_v5, %v1735_v0  ;;  %v1738_v10 = vpop.f32.mrb[10].mxu1  ;;  %v1064_v12 = vsel %vm221_vm0, %v2314_v62, 0.0 }
 0x109   :  { %v557_v6 = vpop.f32.mrb[11].mxu0  ;;  %1134 = vadd.xlane.f32.xlu1 %v1133_v4  ;;  %v1126_v14 = vmul.f32 %v2314_v62, %v2314_v62  ;;  %v1739_v16 = vpop.f32.mrb[11].mxu1 }
 0x10a   :  { %v2320_v11 = vadd.f32 %v557_v6, %v509_v3  ;;  %v514_v18 = vadd.f32 %v1737_v8, %v2283_v29  ;;  %v1740_v20 = vadd.f32 %v1739_v16, %v1738_v10  ;;  %v1071_v21 = vsel %vm221_vm0, %v2316_v1, 0.0 }
 0x10b   :  { %1065 = vadd.xlane.f32.xlu0 %v1064_v12  ;;  %v1143_v22 = vmul.f32 %v2316_v1, %v2316_v1  ;;  %v1136_v27 = vsel %vm221_vm0, %v1126_v14, 0.0 }
 0x10c   :  { %v2331_v23 = vadd.f32 %v1823_v58, %v514_v18  ;;  %v517_v24 = vadd.f32 %v1740_v20, %v2295_v39  ;;  %v1074_v34 = vsel %vm221_vm0, %v2320_v11, 0.0  ;;  %v1144_v35 = vmul.f32 %v2320_v11, %v2320_v11 }
 0x10d   :  { %1072 = vadd.xlane.f32.xlu1 %v1071_v21  ;;  %v1147_v32 = vsel %vm221_vm0, %v1143_v22, 0.0 }
 0x10e   :  { %v1831_v26 = vpop.f32.mrb[12].mxu0  ;;  %v2335_v7 = vadd.f32 %v1824_v2, %v517_v24  ;;  %v1077_v36 = vsel %vm221_vm0, %v2331_v23, 0.0  ;;  %v1145_v38 = vmul.f32 %v2331_v23, %v2331_v23  ;;  %v1150_v40 = vsel %vm221_vm0, %v1144_v35, 0.0 }
 0x10f   :  { %v797_v28 = vpop.f32.mrb[13].mxu0  ;;  %1137 = vadd.xlane.f32.xlu0 %v1136_v27 }
 0x110   :  { %v1832_v30 = vpop.f32.mrb[14].mxu0  ;;  %v1153_v41 = vsel %vm221_vm0, %v1145_v38, 0.0  ;;  %v1080_v42 = vsel %vm221_vm0, %v2335_v7, 0.0  ;;  %v1146_v43 = vmul.f32 %v2335_v7, %v2335_v7 }
 0x111   :  { %v800_v9 = vpop.f32.mrb[15].mxu0  ;;  %1148 = vadd.xlane.f32.xlu1 %v1147_v32 }
 0x112   :  { %v1156_v44 = vsel %vm221_vm0, %v1146_v43, 0.0 }
 0x113   :  { %1075 = vadd.xlane.f32.xlu0 %v1074_v34 }
 0x115   :  { %1078 = vadd.xlane.f32.xlu1 %v1077_v36 }
 0x117   :  { %1151 = vadd.xlane.f32.xlu0 %v1150_v40 }
 0x119   :  { %1154 = vadd.xlane.f32.xlu1 %v1153_v41 }
 0x11b   :  { %1081 = vadd.xlane.f32.xlu0 %v1080_v42 }
 0x11f   :  { %1157 = vadd.xlane.f32.xlu0 %v1156_v44  ;;  %v1761_v45 = vpop.f32.mrb[12].mxu1 }
 0x120   :  { %v1762_v46 = vpop.f32.mrb[13].mxu1 }
 0x121   :  { %v1763_v47 = vadd.f32 %v1762_v46, %v1761_v45  ;;  %v1764_v48 = vpop.f32.mrb[14].mxu1 }
 0x122   :  { %v1765_v49 = vpop.f32.mrb[15].mxu1 }
 0x123   :  { %v749_v50 = vadd.f32 %v1763_v47, %v2281_v25  ;;  %v1766_v51 = vadd.f32 %v1765_v49, %v1764_v48 }
 0x125   :  { %v2354_v52 = vadd.f32 %v797_v28, %v749_v50  ;;  %v752_v53 = vadd.f32 %v1766_v51, %v2285_v31 }
 0x127   :  { %v2357_v55 = vadd.f32 %v800_v9, %v752_v53  ;;  %v1767_v56 = vpop.f32.mrb[16].mxu1  ;;  %v1087_v57 = vsel %vm221_vm0, %v2354_v52, 0.0  ;;  %v1163_v58 = vmul.f32 %v2354_v52, %v2354_v52 }
 0x128   :  { %v1768_v59 = vpop.f32.mrb[17].mxu1  ;;  %1088 = vadd.xlane.f32.xlu1 %v1087_v57 }
 0x129   :  { %v1769_v60 = vadd.f32 %v1768_v59, %v1767_v56  ;;  %v1770_v61 = vpop.f32.mrb[18].mxu1  ;;  %v1090_v63 = vsel %vm221_vm0, %v2357_v55, 0.0  ;;  %v1164_v0 = vmul.f32 %v2357_v55, %v2357_v55  ;;  %v1167_v5 = vsel %vm221_vm0, %v1163_v58, 0.0 }
 0x12a   :  { %v1771_v2 = vpop.f32.mrb[19].mxu1  ;;  %1091 = vadd.xlane.f32.xlu0 %v1090_v63 }
 0x12b   :  { %v757_v3 = vadd.f32 %v1769_v60, %v2283_v29  ;;  %v1772_v4 = vadd.f32 %v1771_v2, %v1770_v61  ;;  %v1170_v12 = vsel %vm221_vm0, %v1164_v0, 0.0  ;;  %v1954_v2 = vmov 1  }
 0x12c   :  { %1168 = vadd.xlane.f32.xlu1 %v1167_v5  ;;  %1849 = vset.pattern.permute.xlu0 %v1954_v2 }
 0x12d   :  { %v2369_v6 = vadd.f32 %v1831_v26, %v757_v3  ;;  %v760_v8 = vadd.f32 %v1772_v4, %v2295_v39  ;;  %1850 = vset.pattern.permute.xlu1 %v1954_v2 }
 0x12e   :  { %v1793_v10 = vpop.f32.mrb[16].mxu0  ;;  %1171 = vadd.xlane.f32.xlu0 %v1170_v12 }
 0x12f   :  { %v1794_v14 = vpop.f32.mrb[17].mxu0  ;;  %v2373_v16 = vadd.f32 %v1832_v30, %v760_v8  ;;  %v1839_v21 = vpop.f32.mrb[20].mxu1  ;;  %v1093_v22 = vsel %vm221_vm0, %v2369_v6, 0.0  ;;  %v1165_v24 = vmul.f32 %v2369_v6, %v2369_v6 }
 0x130   :  { %v1795_v18 = vadd.f32 %v1794_v14, %v1793_v10  ;;  %v1796_v20 = vpop.f32.mrb[18].mxu0  ;;  %1094 = vadd.xlane.f32.xlu1 %v1093_v22  ;;  %v1040_v27 = vpop.f32.mrb[21].mxu1 }
 0x131   :  { %v1797_v26 = vpop.f32.mrb[19].mxu0  ;;  %v1840_v9 = vpop.f32.mrb[22].mxu1  ;;  %v1096_v30 = vsel %vm221_vm0, %v2373_v16, 0.0  ;;  %v1166_v35 = vmul.f32 %v2373_v16, %v2373_v16  ;;  %v1173_v40 = vsel %vm221_vm0, %v1165_v24, 0.0 }
 0x132   :  { %v1798_v28 = vadd.f32 %v1797_v26, %v1796_v20  ;;  %v992_v32 = vadd.f32 %v1795_v18, %v2281_v25  ;;  %1097 = vadd.xlane.f32.xlu0 %v1096_v30  ;;  %v1043_v34 = vpop.f32.mrb[23].mxu1 }
 0x133   :  { %v1176_v25 = vsel %vm221_vm0, %v1166_v35, 0.0 }
 0x134   :  { %v2384_v36 = vadd.f32 %v1040_v27, %v992_v32  ;;  %v995_v38 = vadd.f32 %v1798_v28, %v2285_v31  ;;  %1174 = vadd.xlane.f32.xlu1 %v1173_v40 }
 0x136   :  { %v2388_v41 = vadd.f32 %v1043_v34, %v995_v38  ;;  %v1799_v42 = vpop.f32.mrb[20].mxu0  ;;  %v1103_v43 = vsel %vm221_vm0, %v2384_v36, 0.0  ;;  %1177 = vadd.xlane.f32.xlu0 %v1176_v25  ;;  %v1183_v31 = vmul.f32 %v2384_v36, %v2384_v36 }
 0x137   :  { %v1800_v44 = vpop.f32.mrb[21].mxu0 }
 0x138   :  { %v1801_v45 = vadd.f32 %v1800_v44, %v1799_v42  ;;  %v1802_v46 = vpop.f32.mrb[22].mxu0  ;;  %v1106_v47 = vsel %vm221_vm0, %v2388_v41, 0.0  ;;  %1104 = vadd.xlane.f32.xlu1 %v1103_v43  ;;  %v1184_v51 = vmul.f32 %v2388_v41, %v2388_v41  ;;  %v1187_v57 = vsel %vm221_vm0, %v1183_v31, 0.0 }
 0x139   :  { %v1803_v48 = vpop.f32.mrb[23].mxu0 }
 0x13a   :  { %v1000_v49 = vadd.f32 %v1801_v45, %v2283_v29  ;;  %v1804_v50 = vadd.f32 %v1803_v48, %v1802_v46  ;;  %1107 = vadd.xlane.f32.xlu0 %v1106_v47  ;;  %v1190_v59 = vsel %vm221_vm0, %v1184_v51, 0.0 }
 0x13c   :  { %v2400_v53 = vadd.f32 %v1839_v21, %v1000_v49  ;;  %v1003_v56 = vadd.f32 %v1804_v50, %v2295_v39  ;;  %1188 = vadd.xlane.f32.xlu1 %v1187_v57 }
 0x13e   :  { %v2404_v58 = vadd.f32 %v1840_v9, %v1003_v56  ;;  %v1109_v60 = vsel %vm221_vm0, %v2400_v53, 0.0  ;;  %1191 = vadd.xlane.f32.xlu0 %v1190_v59  ;;  %v1185_v61 = vmul.f32 %v2400_v53, %v2400_v53 }
 0x140   :  { %v1112_v29 = vsel %vm221_vm0, %v2404_v58, 0.0  ;;  %1110 = vadd.xlane.f32.xlu1 %v1109_v60  ;;  %v1186_v39 = vmul.f32 %v2404_v58, %v2404_v58  ;;  %v1193_v63 = vsel %vm221_vm0, %v1185_v61, 0.0 }
 0x142   :  { %1113 = vadd.xlane.f32.xlu0 %v1112_v29  ;;  %v1196_v0 = vsel %vm221_vm0, %v1186_v39, 0.0 }
 0x144   :  { %1194 = vadd.xlane.f32.xlu1 %v1193_v63 }
 0x146   :  { %1197 = vadd.xlane.f32.xlu0 %v1196_v0 }
 0x18c   :  { %v1057_v3 = vpop.xlane.xlu0 %1056 }
 0x18e   :  { %v1060_v4 = vpop.xlane.xlu1 %1059 }
 0x190   :  { %v1132_v5 = vpop.xlane.xlu0 %1131 }
 0x192   :  { %v1129_v8 = vpop.xlane.xlu1 %1128 }
 0x194   :  { %v1063_v10 = vpop.xlane.xlu0 %1062 }
 0x196   :  { %v1135_v14 = vpop.xlane.xlu1 %1134 }
 0x198   :  { %v1066_v12 = vpop.xlane.xlu0 %1065 }
 0x19a   :  { %v1073_v20 = vpop.xlane.xlu1 %1072 }
 0x19b   :  { %v1083_v25 = vadd.f32 %v1073_v20, %v1057_v3 }
 0x19c   :  { %v1138_v18 = vpop.xlane.xlu0 %1137 }
 0x19e   :  { %v1149_v22 = vpop.xlane.xlu1 %1148 }
 0x19f   :  { %v1159_v47 = vadd.f32 %v1149_v22, %v1129_v8 }
 0x1a0   :  { %v1076_v21 = vpop.xlane.xlu0 %1075 }
 0x1a1   :  { %v1084_v44 = vadd.f32 %v1076_v21, %v1060_v4 }
 0x1a2   :  { %v1079_v26 = vpop.xlane.xlu1 %1078 }
 0x1a3   :  { %v1085_v60 = vadd.f32 %v1079_v26, %v1063_v10 }
 0x1a4   :  { %v1152_v24 = vpop.xlane.xlu0 %1151 }
 0x1a5   :  { %v1160_v50 = vadd.f32 %v1152_v24, %v1132_v5 }
 0x1a6   :  { %v1155_v28 = vpop.xlane.xlu1 %1154 }
 0x1a7   :  { %v1161_v24 = vadd.f32 %v1155_v28, %v1135_v14 }
 0x1a8   :  { %v1082_v27 = vpop.xlane.xlu0 %1081 }
 0x1a9   :  { %v1086_v63 = vadd.f32 %v1082_v27, %v1066_v12 }
 0x1ac   :  { %v1158_v32 = vpop.xlane.xlu0 %1157 }
 0x1b5   :  { %v1089_v9 = vpop.xlane.xlu1 %1088 }
 0x1b6   :  { %v1099_v45 = vadd.f32 %v1089_v9, %v1083_v25  ;;  %v1162_v25 = vadd.f32 %v1158_v32, %v1138_v18 }
 0x1b7   :  { %v1092_v30 = vpop.xlane.xlu0 %1091 }
 0x1b8   :  { %v1100_v31 = vadd.f32 %v1092_v30, %v1084_v44 }
 0x1b9   :  { %v1169_v34 = vpop.xlane.xlu1 %1168 }
 0x1ba   :  { %v1179_v51 = vadd.f32 %v1169_v34, %v1159_v47 }
 0x1bb   :  { %v1172_v35 = vpop.xlane.xlu0 %1171 }
 0x1bc   :  { %v1180_v29 = vadd.f32 %v1172_v35, %v1160_v50 }
 0x1bd   :  { %v1095_v38 = vpop.xlane.xlu1 %1094 }
 0x1be   :  { %v1101_v2 = vadd.f32 %v1095_v38, %v1085_v60 }
 0x1bf   :  { %v1098_v40 = vpop.xlane.xlu0 %1097 }
 0x1c0   :  { %v1102_v21 = vadd.f32 %v1098_v40, %v1086_v63 }
 0x1c1   :  { %v1175_v42 = vpop.xlane.xlu1 %1174 }
 0x1c2   :  { %v1181_v35 = vadd.f32 %v1175_v42, %v1161_v24 }
 0x1c3   :  { %v1178_v43 = vpop.xlane.xlu0 %1177 }
 0x1c4   :  { %v1182_v27 = vadd.f32 %v1178_v43, %v1162_v25 }
 0x1c5   :  { %v1105_v46 = vpop.xlane.xlu1 %1104 }
 0x1c6   :  { %v1115_v48 = vadd.f32 %v1105_v46, %v1099_v45 }
 0x1c7   :  { %v1108_v49 = vpop.xlane.xlu0 %1107 }
 0x1c8   :  { %v1119_v56 = vmul.f32 0.0078125, %v1115_v48  ;;  %v1116_v57 = vadd.f32 %v1108_v49, %v1100_v31 }
 0x1c9   :  { %v1189_v59 = vpop.xlane.xlu1 %1188 }
 0x1ca   :  { %v1120_v61 = vmul.f32 0.0078125, %v1116_v57  ;;  %v1199_v39 = vadd.f32 %v1189_v59, %v1179_v51  ;;  %v1207_v3 = vmul.f32 %v1119_v56, %v1119_v56 }
 0x1cb   :  { %v1192_v0 = vpop.xlane.xlu0 %1191 }
 0x1cc   :  { %v1203_v4 = vmul.f32 0.0078125, %v1199_v39  ;;  %v1200_v20 = vadd.f32 %v1192_v0, %v1180_v29  ;;  %v1208_v22 = vmul.f32 %v1120_v61, %v1120_v61 }
 0x1cd   :  { %v1111_v8 = vpop.xlane.xlu1 %1110 }
 0x1ce   :  { %v1211_v9 = vsub.f32 %v1203_v4, %v1207_v3  ;;  %v1204_v30 = vmul.f32 0.0078125, %v1200_v20  ;;  %v1117_v5 = vadd.f32 %v1111_v8, %v1101_v2  ;;  %v1956_v4 = vmov 2  }
 0x1cf   :  { %v1114_v34 = vpop.xlane.xlu0 %1113 }
 0x1d0   :  { %v1215_v44 = vadd.f32 1e-05, %v1211_v9  ;;  %v1212_v10 = vsub.f32 %v1204_v30, %v1208_v22  ;;  %v1118_v26 = vadd.f32 %v1114_v34, %v1102_v21  ;;  %v1121_v45 = vmul.f32 0.0078125, %v1117_v5 }
 0x1d1   :  { %v1195_v12 = vpop.xlane.xlu1 %1194 }
 0x1d2   :  { %1937 = vrsqrt.f32 %v1215_v44  ;;  %v1216_v38 = vadd.f32 1e-05, %v1212_v10  ;;  %v1122_v46 = vmul.f32 0.0078125, %v1118_v26  ;;  %v1201_v47 = vadd.f32 %v1195_v12, %v1181_v35 }
 0x1d3   :  { %v1198_v40 = vpop.xlane.xlu0 %1197  ;;  %v1209_v48 = vmul.f32 %v1121_v45, %v1121_v45 }
 0x1d4   :  { %1939 = vrsqrt.f32 %v1216_v38  ;;  %v1202_v31 = vadd.f32 %v1198_v40, %v1182_v27  ;;  %v1205_v49 = vmul.f32 0.0078125, %v1201_v47  ;;  %v1210_v50 = vmul.f32 %v1122_v46, %v1122_v46 }
 0x1d6   :  { %v1206_v14 = vmul.f32 0.0078125, %v1202_v31  ;;  %v1213_v28 = vsub.f32 %v1205_v49, %v1209_v48 }
 0x1d8   :  { %v1214_v18 = vsub.f32 %v1206_v14, %v1210_v50  ;;  %v1217_v32 = vadd.f32 1e-05, %v1213_v28 }
 0x1da   :  { %v1218_v51 = vadd.f32 1e-05, %v1214_v18  ;;  %1941 = vrsqrt.f32 %v1217_v32 }
 0x1dc   :  { %v1938_v42 = vpop.eup %1937  ;;  %1943 = vrsqrt.f32 %v1218_v51 }
 0x1dd   :  { %v1223_v43 = vmul.f32 %v1938_v42, %v2238_v13 }
 0x1de   :  { %v1940_v57 = vpop.eup %1939 }
 0x1df   :  { %v1227_v59 = vmul.f32 %v1223_v43, %v1119_v56  ;;  %v1224_v60 = vmul.f32 %v1940_v57, %v2257_v17 }
 0x1e1   :  { %1235 = vrot.lane.b32.xlu1 %v1227_v59, %s1955_s0  ;;  %v1228_v29 = vmul.f32 %v1224_v60, %v1120_v61 }
 0x1e3   :  { %1237 = vrot.lane.b32.xlu0 %v1228_v29, %s1955_s0 }
 0x1e4   :  { %v1942_v39 = vpop.eup %1941 }
 0x1e5   :  { %v1225_v0 = vmul.f32 %v1942_v39, %v2247_v15 }
 0x1e6   :  { %v1944_v63 = vpop.eup %1943 }
 0x1e7   :  { %1253 = vperm.xlu0 %1849, %v1223_v43   ;;  %v1229_v2 = vmul.f32 %v1225_v0, %v1121_v45  ;;  %v1226_v3 = vmul.f32 %v1944_v63, %v2266_v19 }
 0x1e9   :  { %1239 = vrot.lane.b32.xlu1 %v1229_v2, %s1955_s0  ;;  %v1230_v56 = vmul.f32 %v1226_v3, %v1122_v46 }
 0x1eb   :  { %1268 = vperm.xlu0 %1849, %v1226_v3  }
 0x1ed   :  { %1241 = vrot.lane.b32.xlu1 %v1230_v56, %s1955_s0 }
 0x1ef   :  { %1852 = vset.pattern.permute.xlu0 %v1956_v4 }
 0x1f1   :  { %1258 = vperm.xlu1 %1850, %v1224_v60  }
 0x1f5   :  { %1263 = vperm.xlu1 %1850, %v1225_v0  }
 0x1f9   :  { %1851 = vset.pattern.permute.xlu1 %v1956_v4 }
 0x253   :  { %v1236_v61 = vpop.permute.xlu1 %1235 }
 0x254   :  { %v1247_v20 = vsub.f32 %v2238_v13, %v1236_v61 }
 0x255   :  { %v1238_v21 = vpop.permute.xlu0 %1237 }
 0x256   :  { %v1248_v8 = vsub.f32 %v2257_v17, %v1238_v21  ;;  %1277 = vperm.xlu1 %1851, %v1247_v20  }
 0x258   :  { %1282 = vperm.xlu0 %1852, %v1248_v8  }
 0x25b   :  { %v1240_v22 = vpop.permute.xlu1 %1239 }
 0x25c   :  { %v1249_v9 = vsub.f32 %v2247_v15, %v1240_v22 }
 0x25e   :  { %1287 = vperm.xlu1 %1851, %v1249_v9  }
 0x25f   :  { %v1242_v30 = vpop.permute.xlu1 %1241 }
 0x260   :  { %v1250_v5 = vsub.f32 %v2266_v19, %v1242_v30 }
 0x262   :  { %1292 = vperm.xlu1 %1851, %v1250_v5  }
 0x266   :  { %v1254_v34 = vpop.permute.xlu0 %1253 }
 0x267   :  { %v1271_v10 = vmul.f32 %v1254_v34, %v2288_v33  ;;  %v1303_v26 = vmul.f32 %v1254_v34, %v2316_v1  ;;  %v1315_v35 = vmul.f32 %v1254_v34, %v2354_v52  ;;  %v1327_v45 = vmul.f32 %v1254_v34, %v2384_v36 }
 0x26a   :  { %v1269_v44 = vpop.permute.xlu0 %1268 }
 0x26b   :  { %v1274_v0 = vmul.f32 %v1269_v44, %v2314_v62  ;;  %v1318_v20 = vmul.f32 %v1269_v44, %v2373_v16 }
 0x270   :  { %v1259_v24 = vpop.permute.xlu1 %1258 }
 0x271   :  { %v1272_v40 = vmul.f32 %v1259_v24, %v2293_v37  ;;  %v1304_v31 = vmul.f32 %v1259_v24, %v2320_v11  ;;  %v1316_v48 = vmul.f32 %v1259_v24, %v2357_v55  ;;  %v1328_v49 = vmul.f32 %v1259_v24, %v2388_v41 }
 0x274   :  { %v1264_v25 = vpop.permute.xlu1 %1263 }
 0x275   :  { %v1273_v11 = vmul.f32 %v1264_v25, %v2305_v54  ;;  %v1305_v55 = vmul.f32 %v1264_v25, %v2331_v23  ;;  %v1317_v60 = vmul.f32 %v1264_v25, %v2369_v6  ;;  %v1329_v29 = vmul.f32 %v1264_v25, %v2400_v53 }
 0x276   :  { %v1306_v23 = vmul.f32 %v1269_v44, %v2335_v7  ;;  %v1330_v6 = vmul.f32 %v1269_v44, %v2404_v58 }
 0x2d5   :  { %v1278_v12 = vpop.permute.xlu1 %1277 }
 0x2d6   :  { %v1295_v27 = vadd.f32 %v1278_v12, %v1271_v10  ;;  %v1307_v38 = vadd.f32 %v1303_v26, %v1278_v12  ;;  %v1319_v46 = vadd.f32 %v1315_v35, %v1278_v12  ;;  %v1331_v47 = vadd.f32 %v1327_v45, %v1278_v12 }
 0x2d7   :  { %v1283_v33 = vpop.permute.xlu0 %1282 }
 0x2d8   :  { %v1299_v50 = vmax.f32 %v1295_v27, 0.0  ;;  %v1311_v1 = vmax.f32 %v1307_v38, 0.0  ;;  %v1323_v14 = vmax.f32 %v1319_v46, 0.0  ;;  %v1335_v52 = vmax.f32 %v1331_v47, 0.0 }
 0x2d9   :  { %v1296_v28 = vadd.f32 %v1283_v33, %v1272_v40  ;;  %v1308_v36 = vadd.f32 %v1304_v31, %v1283_v33  ;;  %v1320_v18 = vadd.f32 %v1316_v48, %v1283_v33  ;;  %v1332_v32 = vadd.f32 %v1328_v49, %v1283_v33 }
 0x2da   :  { %v1339_v51 = vmax.f32 %v1299_v50, %v1311_v1  ;;  %v1343_v42 = vmax.f32 %v1323_v14, %v1335_v52  ;;  %v1957_v14 = vmov 3  }
 0x2db   :  { %v1300_v43 = vmax.f32 %v1296_v28, 0.0  ;;  %v1312_v57 = vmax.f32 %v1308_v36, 0.0  ;;  %v1324_v37 = vmax.f32 %v1320_v18, 0.0  ;;  %v1336_v59 = vmax.f32 %v1332_v32, 0.0  ;;  %1853 = vset.pattern.permute.xlu0 %v1957_v14  ;;  %1854 = vset.pattern.permute.xlu1 %v1957_v14 }
 0x2dc   :  { %v2439_v41 = vmax.f32 %v1339_v51, %v1343_v42 }
 0x2dd   :  { %v1340_v39 = vmax.f32 %v1300_v43, %v1312_v57  ;;  %v1344_v63 = vmax.f32 %v1324_v37, %v1336_v59  ;;  %v1288_v2 = vpop.permute.xlu1 %1287 }
 0x2de   :  { %v1351_v3 = vsel %vm221_vm0, %v2439_v41, 0.0  ;;  %v1297_v56 = vadd.f32 %v1288_v2, %v1273_v11  ;;  %v1309_v4 = vadd.f32 %v1305_v55, %v1288_v2  ;;  %v1321_v61 = vadd.f32 %v1317_v60, %v1288_v2 }
 0x2df   :  { %v1333_v54 = vadd.f32 %v1329_v29, %v1288_v2  ;;  %1352 = vadd.xlane.f32.xlu0 %v1351_v3  ;;  %v2449_v53 = vmax.f32 %v1340_v39, %v1344_v63  ;;  %v1367_v7 = vmul.f32 %v2439_v41, %v2439_v41 }
 0x2e0   :  { %v1301_v21 = vmax.f32 %v1297_v56, 0.0  ;;  %v1313_v8 = vmax.f32 %v1309_v4, 0.0  ;;  %v1325_v62 = vmax.f32 %v1321_v61, 0.0 }
 0x2e1   :  { %v1337_v22 = vmax.f32 %v1333_v54, 0.0  ;;  %v1293_v9 = vpop.permute.xlu1 %1292  ;;  %v1354_v30 = vsel %vm221_vm0, %v2449_v53, 0.0  ;;  %v1368_v5 = vmul.f32 %v2449_v53, %v2449_v53  ;;  %v1371_v27 = vsel %vm221_vm0, %v1367_v7, 0.0 }
 0x2e2   :  { %v1298_v24 = vadd.f32 %v1293_v9, %v1274_v0  ;;  %v1310_v16 = vadd.f32 %v1306_v23, %v1293_v9  ;;  %v1322_v34 = vadd.f32 %v1318_v20, %v1293_v9  ;;  %v1334_v58 = vadd.f32 %v1330_v6, %v1293_v9  ;;  %1355 = vadd.xlane.f32.xlu1 %v1354_v30 }
 0x2e3   :  { %v1374_v25 = vsel %vm221_vm0, %v1368_v5, 0.0  ;;  %v1341_v44 = vmax.f32 %v1301_v21, %v1313_v8  ;;  %v1345_v10 = vmax.f32 %v1325_v62, %v1337_v22 }
 0x2e4   :  { %v1302_v26 = vmax.f32 %v1298_v24, 0.0  ;;  %v1314_v35 = vmax.f32 %v1310_v16, 0.0  ;;  %v1326_v45 = vmax.f32 %v1322_v34, 0.0  ;;  %v1338_v12 = vmax.f32 %v1334_v58, 0.0  ;;  %1375 = vadd.xlane.f32.xlu0 %v1374_v25 }
 0x2e5   :  { %v2459_v38 = vmax.f32 %v1341_v44, %v1345_v10  ;;  %v1958_v44 = vmov 4  }
 0x2e6   :  { %1372 = vadd.xlane.f32.xlu1 %v1371_v27  ;;  %v1342_v46 = vmax.f32 %v1302_v26, %v1314_v35  ;;  %v1346_v47 = vmax.f32 %v1326_v45, %v1338_v12 }
 0x2e7   :  { %v1357_v40 = vsel %vm221_vm0, %v2459_v38, 0.0  ;;  %v1369_v31 = vmul.f32 %v2459_v38, %v2459_v38 }
 0x2e8   :  { %1358 = vadd.xlane.f32.xlu0 %v1357_v40  ;;  %v2465_v48 = vmax.f32 %v1342_v46, %v1346_v47 }
 0x2e9   :  { %v1377_v49 = vsel %vm221_vm0, %v1369_v31, 0.0 }
 0x2ea   :  { %1378 = vadd.xlane.f32.xlu1 %v1377_v49  ;;  %v1360_v33 = vsel %vm221_vm0, %v2465_v48, 0.0  ;;  %v1370_v50 = vmul.f32 %v2465_v48, %v2465_v48 }
 0x2ec   :  { %1361 = vadd.xlane.f32.xlu0 %v1360_v33  ;;  %v1380_v1 = vsel %vm221_vm0, %v1370_v50, 0.0 }
 0x2f0   :  { %1381 = vadd.xlane.f32.xlu0 %v1380_v1 }
 0x36c   :  { %v1353_v52 = vpop.xlane.xlu0 %1352 }
 0x36d   :  { %v1363_v36 = vmul.f32 0.03125, %v1353_v52 }
 0x36f   :  { %v1356_v28 = vpop.xlane.xlu1 %1355  ;;  %v1387_v57 = vmul.f32 %v1363_v36, %v1363_v36 }
 0x370   :  { %v1364_v18 = vmul.f32 0.03125, %v1356_v28 }
 0x371   :  { %v1376_v32 = vpop.xlane.xlu0 %1375 }
 0x372   :  { %v1388_v51 = vmul.f32 %v1364_v18, %v1364_v18  ;;  %v1384_v42 = vmul.f32 0.03125, %v1376_v32 }
 0x373   :  { %v1373_v43 = vpop.xlane.xlu1 %1372 }
 0x374   :  { %v1392_v37 = vsub.f32 %v1384_v42, %v1388_v51  ;;  %v1383_v59 = vmul.f32 0.03125, %v1373_v43 }
 0x375   :  { %v1359_v11 = vpop.xlane.xlu0 %1358 }
 0x376   :  { %v1396_v55 = vadd.f32 1e-05, %v1392_v37  ;;  %v1391_v60 = vsub.f32 %v1383_v59, %v1387_v57  ;;  %v1365_v29 = vmul.f32 0.03125, %v1359_v11 }
 0x377   :  { %v1379_v39 = vpop.xlane.xlu1 %1378 }
 0x378   :  { %1945 = vrsqrt.f32 %v1396_v55  ;;  %v1395_v63 = vadd.f32 1e-05, %v1391_v60  ;;  %v1389_v0 = vmul.f32 %v1365_v29, %v1365_v29  ;;  %v1385_v2 = vmul.f32 0.03125, %v1379_v39 }
 0x379   :  { %v1362_v3 = vpop.xlane.xlu0 %1361 }
 0x37a   :  { %1947 = vrsqrt.f32 %v1395_v63  ;;  %v1393_v56 = vsub.f32 %v1385_v2, %v1389_v0  ;;  %v1366_v4 = vmul.f32 0.03125, %v1362_v3 }
 0x37c   :  { %v1397_v61 = vadd.f32 1e-05, %v1393_v56  ;;  %v1390_v23 = vmul.f32 %v1366_v4, %v1366_v4 }
 0x37d   :  { %v1382_v54 = vpop.xlane.xlu0 %1381 }
 0x37e   :  { %1949 = vrsqrt.f32 %v1397_v61  ;;  %v1386_v20 = vmul.f32 0.03125, %v1382_v54 }
 0x380   :  { %v1394_v6 = vsub.f32 %v1386_v20, %v1390_v23 }
 0x382   :  { %v1946_v21 = vpop.eup %1945  ;;  %v1398_v8 = vadd.f32 1e-05, %v1394_v6 }
 0x383   :  { %v1404_v62 = vmul.f32 %v1946_v21, %v2257_v17 }
 0x384   :  { %v1948_v22 = vpop.eup %1947  ;;  %1951 = vrsqrt.f32 %v1398_v8 }
 0x385   :  { %v1408_v9 = vmul.f32 %v1404_v62, %v1364_v18  ;;  %v1403_v30 = vmul.f32 %v1948_v22, %v2238_v13 }
 0x387   :  { %1417 = vrot.lane.b32.xlu0 %v1408_v9, %s1955_s0  ;;  %v1407_v5 = vmul.f32 %v1403_v30, %v1363_v36 }
 0x388   :  { %v1950_v7 = vpop.eup %1949 }
 0x389   :  { %1415 = vrot.lane.b32.xlu1 %v1407_v5, %s1955_s0  ;;  %v1405_v24 = vmul.f32 %v1950_v7, %v2247_v15 }
 0x38b   :  { %1433 = vperm.xlu0 %1853, %v1403_v30   ;;  %v1409_v16 = vmul.f32 %v1405_v24, %v1365_v29 }
 0x38d   :  { %1419 = vrot.lane.b32.xlu1 %v1409_v16, %s1955_s0 }
 0x38e   :  { %v1952_v34 = vpop.eup %1951 }
 0x38f   :  { %v1406_v58 = vmul.f32 %v1952_v34, %v2266_v19 }
 0x391   :  { %1448 = vperm.xlu0 %1853, %v1406_v58   ;;  %v1410_v25 = vmul.f32 %v1406_v58, %v1366_v4 }
 0x393   :  { %1421 = vrot.lane.b32.xlu1 %v1410_v25, %s1955_s0 }
 0x395   :  { %1856 = vset.pattern.permute.xlu0 %v1958_v44 }
 0x397   :  { %1438 = vperm.xlu1 %1854, %v1404_v62  }
 0x39b   :  { %1443 = vperm.xlu1 %1854, %v1405_v24  }
 0x39f   :  { %1855 = vset.pattern.permute.xlu1 %v1958_v44 }
 0x3f9   :  { %v1418_v10 = vpop.permute.xlu0 %1417 }
 0x3fa   :  { %v1428_v26 = vsub.f32 %v2257_v17, %v1418_v10 }
 0x3fb   :  { %v1416_v35 = vpop.permute.xlu1 %1415 }
 0x3fc   :  { %v1427_v45 = vsub.f32 %v2238_v13, %v1416_v35  ;;  %1462 = vperm.xlu0 %1856, %v1428_v26  }
 0x3fe   :  { %1457 = vperm.xlu1 %1855, %v1427_v45  }
 0x3ff   :  { %v1420_v12 = vpop.permute.xlu1 %1419 }
 0x400   :  { %v1429_v27 = vsub.f32 %v2247_v15, %v1420_v12 }
 0x402   :  { %1467 = vperm.xlu1 %1855, %v1429_v27  }
 0x405   :  { %v1422_v46 = vpop.permute.xlu1 %1421 }
 0x406   :  { %v1430_v47 = vsub.f32 %v2266_v19, %v1422_v46 }
 0x408   :  { %1472 = vperm.xlu1 %1855, %v1430_v47  }
 0x40a   :  { %v1434_v40 = vpop.permute.xlu0 %1433 }
 0x40b   :  { %v1451_v1 = vmul.f32 %v1434_v40, %v2439_v41 }
 0x410   :  { %v1449_v49 = vpop.permute.xlu0 %1448 }
 0x411   :  { %v1454_v41 = vmul.f32 %v1449_v49, %v2465_v48 }
 0x416   :  { %v1439_v31 = vpop.permute.xlu1 %1438 }
 0x417   :  { %v1452_v50 = vmul.f32 %v1439_v31, %v2449_v53 }
 0x41a   :  { %v1444_v33 = vpop.permute.xlu1 %1443 }
 0x41b   :  { %v1453_v19 = vmul.f32 %v1444_v33, %v2459_v38 }
 0x47b   :  { %v1463_v17 = vpop.permute.xlu0 %1462 }
 0x47c   :  { %v1476_v13 = vadd.f32 %v1463_v17, %v1452_v50 }
 0x47d   :  { %v1458_v14 = vpop.permute.xlu1 %1457 }
 0x47e   :  { %1480 = vst.msk [vmem:[%s2508_s3 + $0x8] sm:$0xff] %vm221_vm0, %v1476_v13  ;;  %v1475_v15 = vadd.f32 %v1458_v14, %v1451_v1 }
 0x480   :  { %1479 = vst.msk [vmem:[%s2508_s3] sm:$0xff] %vm221_vm0, %v1475_v15 }
 0x481   :  { %v1468_v52 = vpop.permute.xlu1 %1467 }
 0x482   :  { %v1477_v53 = vadd.f32 %v1468_v52, %v1453_v19 }
 0x484   :  { %1481 = vst.msk [vmem:[%s2508_s3 + $0x10] sm:$0xff] %vm221_vm0, %v1477_v53 }
 0x487   :  { %v1473_v28 = vpop.permute.xlu1 %1472 }
 0x488   :  { %v1478_v36 = vadd.f32 %v1473_v28, %v1454_v41 }
 0x48a   :  { %1482 = vst.msk [vmem:[%s2508_s3 + $0x18] sm:$0xff] %vm221_vm0, %v1478_v36 }

// kernel: model_heatmap_resnet_forward.11
= control target key start
LH: loop header
LB: loop body
LE: loop exit
PB: predicated region body
PF: predicated region fallthrough
CT: control target
= control target key end

     0   :  { %v591_v1 = vmov 0   ;;  %vm224_vm0 = vcmask 261120   ;;  %s786_s0 = inlined_call_operand.vmem [shape: bf16[288,32], index: 0, kind: input, shape index: {}]   ;;  %s787_s1 = inlined_call_operand.vmem [shape: bf16[32,288], index: 1, kind: input, shape index: {}]   ;;  %s788_s2 = inlined_call_operand.vmem [shape: f32[32,8], index: 2, kind: input, shape index: {}]   ;;  %s789_s3 = inlined_call_operand.vmem [shape: f32[32,32], index: 3, kind: input, shape index: {}]   ;;  %s790_s4 = inlined_call_operand.vmem [shape: f32[32,32], index: 4, kind: output, shape index: {}]  }
   0x1   :  { %v557_v0 = vld [vmem:[%s786_s0 + $0x40] sm:$0xff]   ;;  %551 = vset.pattern.permute.xlu0 %v591_v1  ;;  %552 = vset.pattern.permute.xlu1 %v591_v1  ;;  %v559_v3 = vld [vmem:[%s786_s0 + $0x48] sm:$0xff]   ;;  %v561_v5 = vld [vmem:[%s786_s0 + $0x50] sm:$0xff]  }
   0x2   :  { %v558_v2 = vld [vmem:[%s786_s0] sm:$0xff]   ;;  %507 = vmatprep.subr.bf16.mxu0 %v557_v0  ;;  %v560_v4 = vld [vmem:[%s786_s0 + $0x8] sm:$0xff]   ;;  %v562_v6 = vld [vmem:[%s786_s0 + $0x10] sm:$0xff]  }
   0x3   :  { %508 = vmatpush3.bf16.msra.mxu0 %v558_v2  ;;  %v563_v7 = vld [vmem:[%s786_s0 + $0x58] sm:$0xff]   ;;  %v565_v9 = vld [vmem:[%s786_s0 + $0x60] sm:$0xff]   ;;  %v567_v12 = vld [vmem:[%s786_s0 + $0x68] sm:$0xff]  }
   0x4   :  { %509 = vmatprep.subr.bf16.mxu0 %v559_v3  ;;  %v564_v8 = vld [vmem:[%s786_s0 + $0x18] sm:$0xff]   ;;  %v571_v10 = vld [vmem:[%s786_s0 + $0x80] sm:$0xff]   ;;  %v568_v13 = vld [vmem:[%s786_s0 + $0x28] sm:$0xff]  }
   0x5   :  { %v566_v11 = vld [vmem:[%s786_s0 + $0x20] sm:$0xff]   ;;  %539 = vmatprep.subr.bf16.mxu1 %v571_v10  ;;  %v574_v14 = vld [vmem:[%s786_s0 + $0x88] sm:$0xff]   ;;  %v569_v15 = vld [vmem:[%s786_s0 + $0x70] sm:$0xff]  }
   0x6   :  { %540 = vmatpush3.bf16.msra.mxu1 %v571_v10  ;;  %v577_v16 = vld [vmem:[%s787_s1 + $0x4] ss:$12 sps:$4 sm:$0xff]   ;;  %v578_v17 = vld [vmem:[%s787_s1 + $0x8] ss:$12 sps:$4 sm:$0xff]   ;;  %v579_v18 = vld [vmem:[%s787_s1 + $0x20] ss:$12 sps:$4 sm:$0xff]  }
   0x7   :  { %510 = vmatpush3.bf16.msra.mxu0 %v560_v4  ;;  %541 = vmatprep.subr.bf16.mxu1 %v574_v14  ;;  %v678_v19 = vld [vmem:[%s788_s2] sm:$0xff]  ;;  %v570_v20 = vld [vmem:[%s786_s0 + $0x30] sm:$0xff]   ;;  %v572_v22 = vld [vmem:[%s786_s0 + $0x78] sm:$0xff]  }
   0x8   :  { %511 = vmatprep.subr.bf16.mxu0 %v561_v5  ;;  %263 = vmatprep.mubr.bf16.mxu0 %v577_v16  ;;  %v687_v21 = vld [vmem:[%s788_s2 + $0x10] sm:$0xff]  ;;  %v696_v23 = vld [vmem:[%s788_s2 + $0x8] sm:$0xff]  ;;  %v702_v24 = vld [vmem:[%s788_s2 + $0x18] sm:$0xff]  ;;  %v592_v5 = vmov 1  }
   0x9   :  { %543 = vmatprep.mubr.msk.bf16.mxu1 %vm224_vm0, %v578_v17  ;;  %68 = vperm.xlu0 %551, %v678_v19   ;;  %v573_v25 = vld [vmem:[%s786_s0 + $0x38] sm:$0xff]   ;;  %v575_v26 = vld [vmem:[%s787_s1] ss:$12 sps:$4 sm:$0xff]   ;;  %s593_s0 = smov 1  }
   0xa   :  { %542 = vmatpush3.bf16.msra.mxu1 %v574_v14  ;;  %78 = vperm.xlu1 %552, %v687_v21   ;;  %v580_v27 = vld [vmem:[%s787_s1 + $0x1c] ss:$12 sps:$4 sm:$0xff]   ;;  %v582_v28 = vld [vmem:[%s787_s1 + $0x18] ss:$12 sps:$4 sm:$0xff]  }
   0xb   :  { %512 = vmatpush3.bf16.msra.mxu0 %v562_v6 }
   0xc   :  { %513 = vmatprep.subr.bf16.mxu0 %v563_v7 }
   0xd   :  { %544 = vmatmul.mubr.msk.bf16.vlgmr.msra.gmra.mrb[0].mxu1 %vm224_vm0, %v579_v18  ;;  %73 = vperm.xlu0 %551, %v696_v23  }
   0xe   :  { %83 = vperm.xlu1 %552, %v702_v24  }
   0xf   :  { %514 = vmatpush3.bf16.msra.mxu0 %v564_v8 }
  0x10   :  { %515 = vmatprep.subr.bf16.mxu0 %v565_v9 }
  0x11   :  { %553 = vset.pattern.permute.xlu0 %v592_v5 }
  0x12   :  { %554 = vset.pattern.permute.xlu1 %v592_v5  ;;  %v462_v5 = vld [vmem:[%s789_s3 + $0x8] sm:$0xff] }
  0x13   :  { %516 = vmatpush3.bf16.msra.mxu0 %v566_v11 }
  0x14   :  { %517 = vmatprep.subr.bf16.mxu0 %v567_v12 }
  0x17   :  { %518 = vmatpush3.bf16.msra.mxu0 %v568_v13 }
  0x18   :  { %519 = vmatprep.subr.bf16.mxu0 %v569_v15 }
  0x1b   :  { %520 = vmatpush3.bf16.msra.mxu0 %v570_v20 }
  0x1c   :  { %521 = vmatprep.subr.bf16.mxu0 %v572_v22 }
  0x1f   :  { %522 = vmatpush3.bf16.msra.mxu0 %v573_v25 }
  0x22   :  { %264 = vmatmul.mubr.bf16.vlgmr.msra.gmra.mrb[0].mxu0 %v575_v26 }
  0x23   :  { %271 = vmatprep.mubr.bf16.mxu0 %v580_v27 }
  0x2a   :  { %272 = vmatmul.mubr.bf16.gmra.mrb[4].mxu0 %v582_v28 }
  0x88   :  { %v69_v33 = vpop.permute.xlu0 %68 }
  0x89   :  { %v79_v44 = vpop.permute.xlu1 %78 }
  0x8c   :  { %v74_v41 = vpop.permute.xlu0 %73 }
  0x8d   :  { %v84_v58 = vpop.permute.xlu1 %83 }
  0xe0   :  { %v545_v29 = vpop.f32.mrb[0].mxu1 }
  0xe1   :  { %v314_v30 = vpop.f32.mrb[1].mxu1 }
  0xe2   :  { %v546_v31 = vpop.f32.mrb[2].mxu1 }
  0xe3   :  { %v317_v32 = vpop.f32.mrb[3].mxu1 }
  0xf5   :  { %v523_v34 = vpop.f32.mrb[0].mxu0 }
  0xf6   :  { %v524_v35 = vpop.f32.mrb[1].mxu0 }
  0xf7   :  { %v525_v36 = vadd.f32 %v524_v35, %v523_v34  ;;  %v526_v37 = vpop.f32.mrb[2].mxu0 }
  0xf8   :  { %v527_v38 = vpop.f32.mrb[3].mxu0 }
  0xf9   :  { %v266_v39 = vadd.f32 %v525_v36, %v69_v33  ;;  %v528_v40 = vadd.f32 %v527_v38, %v526_v37 }
  0xfb   :  { %v718_v42 = vadd.f32 %v314_v30, %v266_v39  ;;  %v269_v43 = vadd.f32 %v528_v40, %v74_v41 }
  0xfd   :  { %v720_v45 = vadd.f32 %v317_v32, %v269_v43  ;;  %v529_v46 = vpop.f32.mrb[4].mxu0  ;;  %v329_v47 = vsel %vm224_vm0, %v718_v42, 0.0  ;;  %v345_v53 = vmul.f32 %v718_v42, %v718_v42 }
  0xfe   :  { %v530_v48 = vpop.f32.mrb[5].mxu0  ;;  %330 = vadd.xlane.f32.xlu0 %v329_v47 }
  0xff   :  { %v531_v49 = vadd.f32 %v530_v48, %v529_v46  ;;  %v532_v50 = vpop.f32.mrb[6].mxu0  ;;  %v332_v51 = vsel %vm224_vm0, %v720_v45, 0.0  ;;  %v346_v52 = vmul.f32 %v720_v45, %v720_v45  ;;  %v349_v61 = vsel %vm224_vm0, %v345_v53, 0.0 }
 0x100   :  { %v533_v54 = vpop.f32.mrb[7].mxu0  ;;  %333 = vadd.xlane.f32.xlu1 %v332_v51 }
 0x101   :  { %v274_v55 = vadd.f32 %v531_v49, %v79_v44  ;;  %v534_v56 = vadd.f32 %v533_v54, %v532_v50  ;;  %v352_v57 = vsel %vm224_vm0, %v346_v52, 0.0  ;;  %v594_v52 = vmov 2  }
 0x102   :  { %353 = vadd.xlane.f32.xlu0 %v352_v57 }
 0x103   :  { %v731_v59 = vadd.f32 %v545_v29, %v274_v55  ;;  %v277_v60 = vadd.f32 %v534_v56, %v84_v58 }
 0x104   :  { %350 = vadd.xlane.f32.xlu1 %v349_v61 }
 0x105   :  { %v734_v62 = vadd.f32 %v546_v31, %v277_v60  ;;  %v335_v63 = vsel %vm224_vm0, %v731_v59, 0.0  ;;  %v347_v0 = vmul.f32 %v731_v59, %v731_v59 }
 0x106   :  { %336 = vadd.xlane.f32.xlu0 %v335_v63 }
 0x107   :  { %v355_v1 = vsel %vm224_vm0, %v347_v0, 0.0  ;;  %v338_v2 = vsel %vm224_vm0, %v734_v62, 0.0  ;;  %v348_v3 = vmul.f32 %v734_v62, %v734_v62 }
 0x108   :  { %356 = vadd.xlane.f32.xlu1 %v355_v1 }
 0x109   :  { %v358_v4 = vsel %vm224_vm0, %v348_v3, 0.0 }
 0x10a   :  { %339 = vadd.xlane.f32.xlu0 %v338_v2 }
 0x10e   :  { %359 = vadd.xlane.f32.xlu0 %v358_v4 }
 0x18b   :  { %v331_v6 = vpop.xlane.xlu0 %330 }
 0x18c   :  { %v341_v8 = vmul.f32 0.03125, %v331_v6 }
 0x18d   :  { %v334_v7 = vpop.xlane.xlu1 %333 }
 0x18e   :  { %v342_v9 = vmul.f32 0.03125, %v334_v7  ;;  %v365_v14 = vmul.f32 %v341_v8, %v341_v8 }
 0x18f   :  { %v354_v10 = vpop.xlane.xlu0 %353 }
 0x190   :  { %v366_v11 = vmul.f32 %v342_v9, %v342_v9  ;;  %v362_v12 = vmul.f32 0.03125, %v354_v10 }
 0x191   :  { %v351_v13 = vpop.xlane.xlu1 %350 }
 0x192   :  { %v370_v15 = vsub.f32 %v362_v12, %v366_v11  ;;  %v361_v16 = vmul.f32 0.03125, %v351_v13  ;;  %v463_v13 = vld [vmem:[%s789_s3 + $0x10] sm:$0xff] }
 0x193   :  { %v337_v17 = vpop.xlane.xlu0 %336 }
 0x194   :  { %v374_v18 = vadd.f32 1e-05, %v370_v15  ;;  %v369_v20 = vsub.f32 %v361_v16, %v365_v14  ;;  %v343_v22 = vmul.f32 0.03125, %v337_v17 }
 0x195   :  { %v357_v25 = vpop.xlane.xlu1 %356 }
 0x196   :  { %583 = vrsqrt.f32 %v374_v18  ;;  %v373_v26 = vadd.f32 1e-05, %v369_v20  ;;  %v367_v27 = vmul.f32 %v343_v22, %v343_v22  ;;  %v363_v28 = vmul.f32 0.03125, %v357_v25 }
 0x197   :  { %v340_v29 = vpop.xlane.xlu0 %339 }
 0x198   :  { %585 = vrsqrt.f32 %v373_v26  ;;  %v371_v30 = vsub.f32 %v363_v28, %v367_v27  ;;  %v344_v31 = vmul.f32 0.03125, %v340_v29 }
 0x19a   :  { %v375_v32 = vadd.f32 1e-05, %v371_v30  ;;  %v368_v34 = vmul.f32 %v344_v31, %v344_v31 }
 0x19b   :  { %v360_v33 = vpop.xlane.xlu0 %359 }
 0x19c   :  { %587 = vrsqrt.f32 %v375_v32  ;;  %v364_v35 = vmul.f32 0.03125, %v360_v33 }
 0x19e   :  { %v372_v36 = vsub.f32 %v364_v35, %v368_v34 }
 0x1a0   :  { %v584_v37 = vpop.eup %583  ;;  %v376_v38 = vadd.f32 1e-05, %v372_v36 }
 0x1a1   :  { %v382_v39 = vmul.f32 %v584_v37, %v696_v23 }
 0x1a2   :  { %v586_v40 = vpop.eup %585  ;;  %589 = vrsqrt.f32 %v376_v38 }
 0x1a3   :  { %v386_v41 = vmul.f32 %v382_v39, %v342_v9  ;;  %v381_v43 = vmul.f32 %v586_v40, %v678_v19 }
 0x1a5   :  { %395 = vrot.lane.b32.xlu0 %v386_v41, %s593_s0  ;;  %v385_v44 = vmul.f32 %v381_v43, %v341_v8 }
 0x1a6   :  { %v588_v46 = vpop.eup %587 }
 0x1a7   :  { %393 = vrot.lane.b32.xlu1 %v385_v44, %s593_s0  ;;  %v383_v47 = vmul.f32 %v588_v46, %v687_v21 }
 0x1a9   :  { %411 = vperm.xlu0 %553, %v381_v43   ;;  %v387_v48 = vmul.f32 %v383_v47, %v343_v22  ;;  %v464_v22 = vld [vmem:[%s789_s3 + $0x18] sm:$0xff] }
 0x1ab   :  { %397 = vrot.lane.b32.xlu1 %v387_v48, %s593_s0 }
 0x1ac   :  { %v590_v49 = vpop.eup %589 }
 0x1ad   :  { %v384_v50 = vmul.f32 %v590_v49, %v702_v24 }
 0x1af   :  { %426 = vperm.xlu0 %553, %v384_v50   ;;  %v388_v51 = vmul.f32 %v384_v50, %v344_v31 }
 0x1b1   :  { %399 = vrot.lane.b32.xlu1 %v388_v51, %s593_s0 }
 0x1b3   :  { %556 = vset.pattern.permute.xlu0 %v594_v52 }
 0x1b5   :  { %416 = vperm.xlu1 %554, %v382_v39  }
 0x1b9   :  { %421 = vperm.xlu1 %554, %v383_v47  }
 0x1bd   :  { %555 = vset.pattern.permute.xlu1 %v594_v52 }
 0x217   :  { %v396_v53 = vpop.permute.xlu0 %395 }
 0x218   :  { %v406_v54 = vsub.f32 %v696_v23, %v396_v53 }
 0x219   :  { %v394_v55 = vpop.permute.xlu1 %393 }
 0x21a   :  { %v405_v56 = vsub.f32 %v678_v19, %v394_v55  ;;  %440 = vperm.xlu0 %556, %v406_v54  }
 0x21c   :  { %435 = vperm.xlu1 %555, %v405_v56  }
 0x21d   :  { %v398_v57 = vpop.permute.xlu1 %397 }
 0x21e   :  { %v407_v58 = vsub.f32 %v687_v21, %v398_v57 }
 0x220   :  { %445 = vperm.xlu1 %555, %v407_v58  }
 0x223   :  { %v400_v60 = vpop.permute.xlu1 %399 }
 0x224   :  { %v408_v61 = vsub.f32 %v702_v24, %v400_v60  ;;  %v461_v24 = vld [vmem:[%s789_s3] sm:$0xff] }
 0x226   :  { %450 = vperm.xlu1 %555, %v408_v61  }
 0x228   :  { %v412_v63 = vpop.permute.xlu0 %411 }
 0x229   :  { %v429_v4 = vmul.f32 %v412_v63, %v718_v42 }
 0x22e   :  { %v427_v1 = vpop.permute.xlu0 %426 }
 0x22f   :  { %v432_v16 = vmul.f32 %v427_v1, %v734_v62 }
 0x234   :  { %v417_v0 = vpop.permute.xlu1 %416 }
 0x235   :  { %v430_v3 = vmul.f32 %v417_v0, %v720_v45 }
 0x238   :  { %v422_v2 = vpop.permute.xlu1 %421 }
 0x239   :  { %v431_v8 = vmul.f32 %v422_v2, %v731_v59 }
 0x299   :  { %v441_v23 = vpop.permute.xlu0 %440 }
 0x29a   :  { %v454_v19 = vadd.f32 %v441_v23, %v430_v3 }
 0x29b   :  { %v436_v21 = vpop.permute.xlu1 %435 }
 0x29c   :  { %v458_v6 = vmax.f32 %v454_v19, 0.0  ;;  %v453_v7 = vadd.f32 %v436_v21, %v429_v4 }
 0x29e   :  { %v466_v9 = vadd.f32 %v462_v5, %v458_v6  ;;  %v457_v10 = vmax.f32 %v453_v7, 0.0 }
 0x29f   :  { %v446_v45 = vpop.permute.xlu1 %445 }
 0x2a0   :  { %v470_v11 = vmax.f32 %v466_v9, 0.0  ;;  %v465_v12 = vadd.f32 %v461_v24, %v457_v10  ;;  %v455_v42 = vadd.f32 %v446_v45, %v431_v8 }
 0x2a2   :  { %474 = vst.msk [vmem:[%s790_s4 + $0x8] sm:$0xff] %vm224_vm0, %v470_v11  ;;  %v469_v14 = vmax.f32 %v465_v12, 0.0  ;;  %v459_v15 = vmax.f32 %v455_v42, 0.0 }
 0x2a4   :  { %473 = vst.msk [vmem:[%s790_s4] sm:$0xff] %vm224_vm0, %v469_v14  ;;  %v467_v59 = vadd.f32 %v463_v13, %v459_v15 }
 0x2a5   :  { %v451_v17 = vpop.permute.xlu1 %450 }
 0x2a6   :  { %v471_v18 = vmax.f32 %v467_v59, 0.0  ;;  %v456_v20 = vadd.f32 %v451_v17, %v432_v16 }
 0x2a8   :  { %475 = vst.msk [vmem:[%s790_s4 + $0x10] sm:$0xff] %vm224_vm0, %v471_v18  ;;  %v460_v25 = vmax.f32 %v456_v20, 0.0 }
 0x2aa   :  { %v468_v62 = vadd.f32 %v464_v22, %v460_v25 }
 0x2ac   :  { %v472_v26 = vmax.f32 %v468_v62, 0.0 }
 0x2ae   :  { %476 = vst.msk [vmem:[%s790_s4 + $0x18] sm:$0xff] %vm224_vm0, %v472_v26 }

// kernel: model_heatmap_resnet_forward.12
= control target key start
LH: loop header
LB: loop body
LE: loop exit
PB: predicated region body
PF: predicated region fallthrough
CT: control target
= control target key end

     0   :  { %v1460_v0 = vmov 0.0   ;;  %vm1461_vm0 = vmmov 0   ;;  %v1462_v3 = vmov 0   ;;  %vm177_vm1 = vcmask 261120   ;;  %s1780_s0 = inlined_call_operand.vmem [shape: bf16[4,288,8], index: 0, kind: input, shape index: {}]   ;;  %s1781_s1 = inlined_call_operand.vmem [shape: bf16[8,288], index: 1, kind: input, shape index: {}]   ;;  %s1782_s2 = inlined_call_operand.vmem [shape: f32[8,8], index: 2, kind: input, shape index: {}]   ;;  %s1783_s3 = inlined_call_operand.vmem [shape: f32[8,8], index: 3, kind: output, shape index: {}]  }
   0x1   :  { %1335 = vmatprep.subr.bf16.mxu1 %v1460_v0  ;;  %v1381_v1 = vld [vmem:[%s1780_s0 + $0x40] sm:$0xff]   ;;  %1339 = vmatprep.mubr.msk.bf16.mxu1 %vm1461_vm0, %v1460_v0  ;;  %v1384_v5 = vld [vmem:[%s1780_s0 + $0x48] sm:$0xff]   ;;  %v1388_v9 = vld [vmem:[%s1780_s0 + $0xd0] sm:$0xff]   ;;  %vm936_vm2 = vcmask 64512  }
   0x2   :  { %v1382_v2 = vld [vmem:[%s1780_s0 + $0x80] sm:$0xff]   ;;  %1375 = vset.pattern.permute.xlu0 %v1462_v3  ;;  %1235 = vmatprep.subr.bf16.mxu0 %v1381_v1  ;;  %v1385_v6 = vld [vmem:[%s1780_s0 + $0x88] sm:$0xff]   ;;  %v1389_v10 = vld [vmem:[%s1780_s0 + $0x50] sm:$0xff]  }
   0x3   :  { %v1383_v4 = vld [vmem:[%s1780_s0] sm:$0xff]   ;;  %1336 = vmatpush3.bf16.msra.mxu1 %v1382_v2  ;;  %v1386_v7 = vld [vmem:[%s1780_s0 + $0x8] sm:$0xff]   ;;  %v1390_v11 = vld [vmem:[%s1780_s0 + $0x90] sm:$0xff]  }
   0x4   :  { %1236 = vmatpush3.bf16.msra.mxu0 %v1383_v4  ;;  %1337 = vmatprep.subr.bf16.mxu1 %v1460_v0  ;;  %v1513_v8 = vld [vmem:[%s1781_s1 + $0x8] ss:$0 sps:$4 sm:$0xff]   ;;  %v1391_v12 = vld [vmem:[%s1780_s0 + $0x10] sm:$0xff]   ;;  %v1392_v13 = vld [vmem:[%s1780_s0 + $0xd8] sm:$0xff]  }
   0x5   :  { %1237 = vmatprep.subr.bf16.mxu0 %v1384_v5  ;;  %v1393_v14 = vld [vmem:[%s1780_s0 + $0x58] sm:$0xff]   ;;  %v1396_v17 = vld [vmem:[%s1780_s0 + $0xe0] sm:$0xff]   ;;  %v1400_v21 = vld [vmem:[%s1780_s0 + $0xe8] sm:$0xff]  }
   0x6   :  { %v1394_v15 = vld [vmem:[%s1780_s0 + $0x98] sm:$0xff]   ;;  %v1397_v18 = vld [vmem:[%s1780_s0 + $0x60] sm:$0xff]   ;;  %v1401_v22 = vld [vmem:[%s1780_s0 + $0x68] sm:$0xff]  }
   0x7   :  { %1338 = vmatpush3.bf16.msra.mxu1 %v1385_v6  ;;  %v1395_v16 = vld [vmem:[%s1780_s0 + $0x18] sm:$0xff]   ;;  %v1398_v19 = vld [vmem:[%s1780_s0 + $0xa0] sm:$0xff]   ;;  %v1402_v23 = vld [vmem:[%s1780_s0 + $0xa8] sm:$0xff]  }
   0x8   :  { %1238 = vmatpush3.bf16.msra.mxu0 %v1386_v7  ;;  %1260 = vmatprep.subr.bf16.mxu1 %v1388_v9  ;;  %v1399_v20 = vld [vmem:[%s1780_s0 + $0x20] sm:$0xff]   ;;  %v1403_v24 = vld [vmem:[%s1780_s0 + $0x28] sm:$0xff]   ;;  %v1404_v25 = vld [vmem:[%s1780_s0 + $0xf0] sm:$0xff]  }
   0x9   :  { %1239 = vmatprep.subr.bf16.mxu0 %v1389_v10  ;;  %v1405_v26 = vld [vmem:[%s1780_s0 + $0x70] sm:$0xff]   ;;  %v1408_v29 = vld [vmem:[%s1780_s0 + $0xf8] sm:$0xff]   ;;  %v15_v33 = vld [vmem:[%s1781_s1] sm:$0xff] }
   0xa   :  { %1340 = vmatmul.mubr.msk.bf16.vlgmr.msra.gmra.mrb[0].mxu1 %vm177_vm1, %v1513_v8  ;;  %v1406_v27 = vld [vmem:[%s1780_s0 + $0xb0] sm:$0xff]   ;;  %v1409_v30 = vld [vmem:[%s1780_s0 + $0x78] sm:$0xff]   ;;  %v1049_v34 = vcombine.high %v15_v33, %v15_v33  ;;  %v1413_v35 = vld [vmem:[%s1780_s0 + $0x100] sm:$0xff]   ;;  %v1595_v36 = vcombine.low %v15_v33, %v15_v33 }
   0xb   :  { %1261 = vmatpush3.bf16.msra.mxu1 %v1390_v11  ;;  %v1407_v28 = vld [vmem:[%s1780_s0 + $0x30] sm:$0xff]   ;;  %v1410_v31 = vld [vmem:[%s1780_s0 + $0xb8] sm:$0xff]   ;;  %v1415_v37 = vld [vmem:[%s1780_s0 + $0xc0] sm:$0xff]  }
   0xc   :  { %1240 = vmatpush3.bf16.msra.mxu0 %v1391_v12  ;;  %1262 = vmatprep.subr.bf16.mxu1 %v1392_v13  ;;  %v1411_v32 = vld [vmem:[%s1780_s0 + $0x38] sm:$0xff]   ;;  %v1416_v38 = vld [vmem:[%s1780_s0 + $0x110] sm:$0xff]   ;;  %v1417_v39 = vld [vmem:[%s1780_s0 + $0x108] sm:$0xff]  }
   0xd   :  { %1241 = vmatprep.subr.bf16.mxu0 %v1393_v14  ;;  %213 = vmatprep.mubr.bf16.mxu0 %v1049_v34  ;;  %v1418_v40 = vld [vmem:[%s1780_s0 + $0xc8] sm:$0xff]   ;;  %v1419_v41 = vld [vmem:[%s1780_s0 + $0x118] sm:$0xff]   ;;  %v1420_v42 = vld [vmem:[%s1780_s0 + $0x160] sm:$0xff]  }
   0xe   :  { %438 = vmatprep.mubr.bf16.mxu1 %v1049_v34  ;;  %v1421_v43 = vld [vmem:[%s1780_s0 + $0x1a0] sm:$0xff]   ;;  %v1423_v45 = vld [vmem:[%s1780_s0 + $0x168] sm:$0xff]   ;;  %v1426_v48 = vld [vmem:[%s1780_s0 + $0x1f0] sm:$0xff]  }
   0xf   :  { %1263 = vmatpush3.bf16.msra.mxu1 %v1394_v15  ;;  %v1422_v44 = vld [vmem:[%s1780_s0 + $0x120] sm:$0xff]   ;;  %v1424_v46 = vld [vmem:[%s1780_s0 + $0x1a8] sm:$0xff]   ;;  %v1427_v49 = vld [vmem:[%s1780_s0 + $0x170] sm:$0xff]  }
  0x10   :  { %1242 = vmatpush3.bf16.msra.mxu0 %v1395_v16  ;;  %1264 = vmatprep.subr.bf16.mxu1 %v1396_v17  ;;  %v1425_v47 = vld [vmem:[%s1780_s0 + $0x128] sm:$0xff]   ;;  %v1428_v50 = vld [vmem:[%s1780_s0 + $0x1b0] sm:$0xff]   ;;  %v1430_v52 = vld [vmem:[%s1780_s0 + $0x1f8] sm:$0xff]  }
  0x11   :  { %1243 = vmatprep.subr.bf16.mxu0 %v1397_v18  ;;  %v1429_v51 = vld [vmem:[%s1780_s0 + $0x130] sm:$0xff]   ;;  %v1431_v53 = vld [vmem:[%s1780_s0 + $0x178] sm:$0xff]   ;;  %v1434_v56 = vld [vmem:[%s1780_s0 + $0x200] sm:$0xff]  }
  0x12   :  { %v1432_v54 = vld [vmem:[%s1780_s0 + $0x1b8] sm:$0xff]   ;;  %v1435_v57 = vld [vmem:[%s1780_s0 + $0x180] sm:$0xff]   ;;  %v1438_v60 = vld [vmem:[%s1780_s0 + $0x208] sm:$0xff]  }
  0x13   :  { %1265 = vmatpush3.bf16.msra.mxu1 %v1398_v19  ;;  %v1433_v55 = vld [vmem:[%s1780_s0 + $0x138] sm:$0xff]   ;;  %v1436_v58 = vld [vmem:[%s1780_s0 + $0x1c0] sm:$0xff]   ;;  %v1439_v61 = vld [vmem:[%s1780_s0 + $0x188] sm:$0xff]  }
  0x14   :  { %1244 = vmatpush3.bf16.msra.mxu0 %v1399_v20  ;;  %1266 = vmatprep.subr.bf16.mxu1 %v1400_v21  ;;  %v1437_v59 = vld [vmem:[%s1780_s0 + $0x140] sm:$0xff]   ;;  %v1440_v62 = vld [vmem:[%s1780_s0 + $0x1c8] sm:$0xff]   ;;  %v1442_v1 = vld [vmem:[%s1780_s0 + $0x210] sm:$0xff]  }
  0x15   :  { %1245 = vmatprep.subr.bf16.mxu0 %v1401_v22  ;;  %v1441_v63 = vld [vmem:[%s1780_s0 + $0x148] sm:$0xff]   ;;  %v1443_v2 = vld [vmem:[%s1780_s0 + $0x190] sm:$0xff]   ;;  %v1446_v5 = vld [vmem:[%s1780_s0 + $0x218] sm:$0xff]  }
  0x16   :  { %v1444_v3 = vld [vmem:[%s1780_s0 + $0x1d0] sm:$0xff]   ;;  %v1447_v6 = vld [vmem:[%s1780_s0 + $0x198] sm:$0xff]   ;;  %v1450_v10 = vld [vmem:[%s1780_s0 + $0x220] sm:$0xff]  }
  0x17   :  { %1267 = vmatpush3.bf16.msra.mxu1 %v1402_v23  ;;  %v1445_v4 = vld [vmem:[%s1780_s0 + $0x150] sm:$0xff]   ;;  %v1448_v7 = vld [vmem:[%s1780_s0 + $0x1d8] sm:$0xff]   ;;  %v1451_v11 = vld [vmem:[%s1780_s0 + $0x1e0] sm:$0xff]  }
  0x18   :  { %1246 = vmatpush3.bf16.msra.mxu0 %v1403_v24  ;;  %1268 = vmatprep.subr.bf16.mxu1 %v1404_v25  ;;  %v1449_v9 = vld [vmem:[%s1780_s0 + $0x158] sm:$0xff]   ;;  %v1452_v12 = vld [vmem:[%s1780_s0 + $0x228] sm:$0xff]   ;;  %v1453_v13 = vld [vmem:[%s1780_s0 + $0x230] sm:$0xff]  }
  0x19   :  { %1247 = vmatprep.subr.bf16.mxu0 %v1405_v26  ;;  %v1732_v14 = vld [vmem:[%s1782_s2] sm:$0xff]  ;;  %v1454_v15 = vld [vmem:[%s1780_s0 + $0x1e8] sm:$0xff]   ;;  %v1455_v16 = vld [vmem:[%s1780_s0 + $0x238] sm:$0xff]   ;;  %s1465_s0 = smov 1  }
  0x1a   :  { %56 = vperm.xlu0 %1375, %v1732_v14  }
  0x1b   :  { %1269 = vmatpush3.bf16.msra.mxu1 %v1406_v27 }
  0x1c   :  { %1248 = vmatpush3.bf16.msra.mxu0 %v1407_v28  ;;  %1270 = vmatprep.subr.bf16.mxu1 %v1408_v29 }
  0x1d   :  { %1249 = vmatprep.subr.bf16.mxu0 %v1409_v30 }
  0x1f   :  { %1271 = vmatpush3.bf16.msra.mxu1 %v1410_v31 }
  0x20   :  { %1250 = vmatpush3.bf16.msra.mxu0 %v1411_v32  ;;  %1272 = vmatprep.subr.bf16.mxu1 %v1413_v35 }
  0x21   :  { %1343 = vmatprep.subr.bf16.mxu0 %v1460_v0 }
  0x23   :  { %214 = vmatmul.mubr.bf16.vlgmr.msra.gmra.mrb[0].mxu0 %v1595_v36  ;;  %1273 = vmatpush3.bf16.msra.mxu1 %v1415_v37 }
  0x24   :  { %1344 = vmatpush3.bf16.msra.mxu0 %v1416_v38  ;;  %1274 = vmatprep.subr.bf16.mxu1 %v1417_v39 }
  0x25   :  { %1345 = vmatprep.subr.bf16.mxu0 %v1460_v0  ;;  %1347 = vmatprep.mubr.msk.bf16.mxu0 %vm1461_vm0, %v1460_v0 }
  0x27   :  { %1275 = vmatpush3.bf16.msra.mxu1 %v1418_v40 }
  0x28   :  { %1346 = vmatpush3.bf16.msra.mxu0 %v1419_v41  ;;  %1351 = vmatprep.subr.bf16.mxu1 %v1460_v0 }
  0x29   :  { %1285 = vmatprep.subr.bf16.mxu0 %v1420_v42 }
  0x2a   :  { %439 = vmatmul.mubr.bf16.vlgmr.msra.gmra.mrb[4].mxu1 %v1595_v36 }
  0x2b   :  { %1348 = vmatmul.mubr.msk.bf16.vlgmr.msra.gmra.mrb[4].mxu0 %vm177_vm1, %v1513_v8  ;;  %1352 = vmatpush3.bf16.msra.mxu1 %v1421_v43 }
  0x2c   :  { %1286 = vmatpush3.bf16.msra.mxu0 %v1422_v44  ;;  %1353 = vmatprep.subr.bf16.mxu1 %v1460_v0 }
  0x2d   :  { %1287 = vmatprep.subr.bf16.mxu0 %v1423_v45  ;;  %1355 = vmatprep.mubr.msk.bf16.mxu1 %vm1461_vm0, %v1460_v0 }
  0x2e   :  { %663 = vmatprep.mubr.bf16.mxu0 %v1049_v34 }
  0x2f   :  { %1354 = vmatpush3.bf16.msra.mxu1 %v1424_v46 }
  0x30   :  { %1288 = vmatpush3.bf16.msra.mxu0 %v1425_v47  ;;  %1310 = vmatprep.subr.bf16.mxu1 %v1426_v48 }
  0x31   :  { %1289 = vmatprep.subr.bf16.mxu0 %v1427_v49 }
  0x32   :  { %1356 = vmatmul.mubr.msk.bf16.vlgmr.msra.gmra.mrb[8].mxu1 %vm177_vm1, %v1513_v8 }
  0x33   :  { %1311 = vmatpush3.bf16.msra.mxu1 %v1428_v50  ;;  %888 = vmatprep.mubr.bf16.mxu1 %v1049_v34 }
  0x34   :  { %1290 = vmatpush3.bf16.msra.mxu0 %v1429_v51  ;;  %1312 = vmatprep.subr.bf16.mxu1 %v1430_v52 }
  0x35   :  { %1291 = vmatprep.subr.bf16.mxu0 %v1431_v53 }
  0x37   :  { %1313 = vmatpush3.bf16.msra.mxu1 %v1432_v54 }
  0x38   :  { %1292 = vmatpush3.bf16.msra.mxu0 %v1433_v55  ;;  %1314 = vmatprep.subr.bf16.mxu1 %v1434_v56 }
  0x39   :  { %1293 = vmatprep.subr.bf16.mxu0 %v1435_v57 }
  0x3b   :  { %1315 = vmatpush3.bf16.msra.mxu1 %v1436_v58 }
  0x3c   :  { %1294 = vmatpush3.bf16.msra.mxu0 %v1437_v59  ;;  %1316 = vmatprep.subr.bf16.mxu1 %v1438_v60 }
  0x3d   :  { %1295 = vmatprep.subr.bf16.mxu0 %v1439_v61 }
  0x3f   :  { %1317 = vmatpush3.bf16.msra.mxu1 %v1440_v62 }
  0x40   :  { %1296 = vmatpush3.bf16.msra.mxu0 %v1441_v63  ;;  %1318 = vmatprep.subr.bf16.mxu1 %v1442_v1 }
  0x41   :  { %1297 = vmatprep.subr.bf16.mxu0 %v1443_v2 }
  0x43   :  { %1319 = vmatpush3.bf16.msra.mxu1 %v1444_v3 }
  0x44   :  { %1298 = vmatpush3.bf16.msra.mxu0 %v1445_v4  ;;  %1320 = vmatprep.subr.bf16.mxu1 %v1446_v5 }
  0x45   :  { %1299 = vmatprep.subr.bf16.mxu0 %v1447_v6 }
  0x47   :  { %1321 = vmatpush3.bf16.msra.mxu1 %v1448_v7 }
  0x48   :  { %1300 = vmatpush3.bf16.msra.mxu0 %v1449_v9  ;;  %1322 = vmatprep.subr.bf16.mxu1 %v1450_v10  ;;  %v1463_v10 = vmov 1  }
  0x49   :  { %1359 = vmatprep.subr.bf16.mxu0 %v1460_v0  ;;  %1376 = vset.pattern.permute.xlu0 %v1463_v10 }
  0x4b   :  { %664 = vmatmul.mubr.bf16.vlgmr.msra.gmra.mrb[8].mxu0 %v1595_v36  ;;  %1323 = vmatpush3.bf16.msra.mxu1 %v1451_v11 }
  0x4c   :  { %1324 = vmatprep.subr.bf16.mxu1 %v1452_v12  ;;  %1360 = vmatpush3.bf16.msra.mxu0 %v1453_v13 }
  0x4d   :  { %1361 = vmatprep.subr.bf16.mxu0 %v1460_v0  ;;  %1363 = vmatprep.mubr.msk.bf16.mxu0 %vm1461_vm0, %v1460_v0 }
  0x4f   :  { %1325 = vmatpush3.bf16.msra.mxu1 %v1454_v15 }
  0x50   :  { %1362 = vmatpush3.bf16.msra.mxu0 %v1455_v16 }
  0x52   :  { %889 = vmatmul.mubr.bf16.vlgmr.msra.gmra.mrb[12].mxu1 %v1595_v36 }
  0x53   :  { %1364 = vmatmul.mubr.msk.bf16.vlgmr.msra.gmra.mrb[12].mxu0 %vm177_vm1, %v1513_v8 }
  0x99   :  { %v57_v23 = vpop.permute.xlu0 %56 }
  0xdd   :  { %v255_v17 = vpop.f32.mrb[0].mxu1 }
  0xde   :  { %v1341_v18 = vpop.f32.mrb[1].mxu1 }
  0xdf   :  { %v258_v19 = vpop.f32.mrb[2].mxu1 }
  0xe0   :  { %v1342_v20 = vpop.f32.mrb[3].mxu1 }
  0xf6   :  { %v1251_v21 = vpop.f32.mrb[0].mxu0 }
  0xf7   :  { %v1252_v22 = vpop.f32.mrb[1].mxu0 }
  0xf8   :  { %v1253_v24 = vadd.f32 %v1252_v22, %v1251_v21  ;;  %v1254_v25 = vpop.f32.mrb[2].mxu0 }
  0xf9   :  { %v1255_v26 = vpop.f32.mrb[3].mxu0 }
  0xfa   :  { %v216_v27 = vadd.f32 %v1253_v24, %v57_v23 }
  0xfc   :  { %v1748_v0 = vadd.f32 %v255_v17, %v216_v27 }
  0xfd   :  { %v1276_v28 = vpop.f32.mrb[4].mxu1 }
  0xfe   :  { %v1277_v29 = vpop.f32.mrb[5].mxu1  ;;  %v480_v30 = vpop.f32.mrb[4].mxu0  ;;  %v937_v8 = vsel %vm936_vm2, %v1748_v0, 0.0  ;;  %v954_v31 = vmul.f32 %v1748_v0, %v1748_v0 }
  0xff   :  { %v1278_v32 = vadd.f32 %v1277_v29, %v1276_v28  ;;  %v1279_v33 = vpop.f32.mrb[6].mxu1  ;;  %v1349_v34 = vpop.f32.mrb[5].mxu0  ;;  %938 = vadd.xlane.f32.xlu0 %v937_v8  ;;  %v1464_v8 = vmov 2  }
 0x100   :  { %v1280_v35 = vpop.f32.mrb[7].mxu1  ;;  %v483_v36 = vpop.f32.mrb[6].mxu0  ;;  %v955_v37 = vsel %vm936_vm2, %v954_v31, 0.0  ;;  %1377 = vset.pattern.permute.xlu1 %v1464_v8 }
 0x101   :  { %v441_v38 = vadd.f32 %v1278_v32, %v57_v23  ;;  %v1350_v39 = vpop.f32.mrb[7].mxu0  ;;  %956 = vadd.xlane.f32.xlu1 %v955_v37 }
 0x103   :  { %v1755_v40 = vadd.f32 %v480_v30, %v441_v38 }
 0x105   :  { %v705_v41 = vpop.f32.mrb[8].mxu1  ;;  %v941_v42 = vsel %vm936_vm2, %v1755_v40, 0.0  ;;  %v959_v43 = vmul.f32 %v1755_v40, %v1755_v40 }
 0x106   :  { %v1357_v44 = vpop.f32.mrb[9].mxu1  ;;  %942 = vadd.xlane.f32.xlu1 %v941_v42 }
 0x107   :  { %v708_v45 = vpop.f32.mrb[10].mxu1  ;;  %v960_v47 = vsel %vm936_vm2, %v959_v43, 0.0 }
 0x108   :  { %v1358_v46 = vpop.f32.mrb[11].mxu1 }
 0x10a   :  { %961 = vadd.xlane.f32.xlu1 %v960_v47 }
 0x11e   :  { %v1301_v48 = vpop.f32.mrb[8].mxu0 }
 0x11f   :  { %v1302_v49 = vpop.f32.mrb[9].mxu0 }
 0x120   :  { %v1303_v50 = vadd.f32 %v1302_v49, %v1301_v48  ;;  %v1304_v51 = vpop.f32.mrb[10].mxu0 }
 0x121   :  { %v1305_v52 = vpop.f32.mrb[11].mxu0 }
 0x122   :  { %v666_v53 = vadd.f32 %v1303_v50, %v57_v23 }
 0x124   :  { %v706_v54 = vadd.f32 %v705_v41, %v666_v53 }
 0x125   :  { %v1326_v55 = vpop.f32.mrb[12].mxu1 }
 0x126   :  { %v1327_v56 = vpop.f32.mrb[13].mxu1  ;;  %v945_v57 = vsel %vm936_vm2, %v706_v54, 0.0  ;;  %v930_v58 = vpop.f32.mrb[12].mxu0  ;;  %v964_v59 = vmul.f32 %v706_v54, %v706_v54 }
 0x127   :  { %v1328_v60 = vadd.f32 %v1327_v56, %v1326_v55  ;;  %v1329_v61 = vpop.f32.mrb[14].mxu1  ;;  %946 = vadd.xlane.f32.xlu1 %v945_v57  ;;  %v1365_v62 = vpop.f32.mrb[13].mxu0 }
 0x128   :  { %v1330_v63 = vpop.f32.mrb[15].mxu1  ;;  %v933_v1 = vpop.f32.mrb[14].mxu0  ;;  %v965_v4 = vsel %vm936_vm2, %v964_v59, 0.0 }
 0x129   :  { %v891_v2 = vadd.f32 %v1328_v60, %v57_v23  ;;  %v1366_v3 = vpop.f32.mrb[15].mxu0  ;;  %v1467_v63 = vmov 4  }
 0x12b   :  { %v931_v5 = vadd.f32 %v930_v58, %v891_v2  ;;  %966 = vadd.xlane.f32.xlu1 %v965_v4 }
 0x12d   :  { %v949_v6 = vsel %vm936_vm2, %v931_v5, 0.0  ;;  %v969_v7 = vmul.f32 %v931_v5, %v931_v5 }
 0x12f   :  { %950 = vadd.xlane.f32.xlu1 %v949_v6  ;;  %v970_v9 = vsel %vm936_vm2, %v969_v7, 0.0 }
 0x133   :  { %971 = vadd.xlane.f32.xlu1 %v970_v9 }
 0x18c   :  { %v939_v16 = vpop.xlane.xlu0 %938 }
 0x18e   :  { %v957_v11 = vpop.xlane.xlu1 %956 }
 0x193   :  { %v943_v12 = vpop.xlane.xlu1 %942 }
 0x194   :  { %v944_v18 = vadd.f32 %v943_v12, %v939_v16 }
 0x197   :  { %v962_v13 = vpop.xlane.xlu1 %961 }
 0x198   :  { %v963_v21 = vadd.f32 %v962_v13, %v957_v11 }
 0x1b4   :  { %v947_v15 = vpop.xlane.xlu1 %946 }
 0x1b5   :  { %v948_v19 = vadd.f32 %v947_v15, %v944_v18 }
 0x1b8   :  { %v967_v17 = vpop.xlane.xlu1 %966 }
 0x1b9   :  { %v968_v23 = vadd.f32 %v967_v17, %v963_v21 }
 0x1bc   :  { %v951_v20 = vpop.xlane.xlu1 %950 }
 0x1bd   :  { %v952_v22 = vadd.f32 %v951_v20, %v948_v19 }
 0x1bf   :  { %v953_v24 = vmul.f32 0.03125, %v952_v22 }
 0x1c0   :  { %v972_v25 = vpop.xlane.xlu1 %971 }
 0x1c1   :  { %v973_v26 = vadd.f32 %v972_v25, %v968_v23  ;;  %v975_v27 = vmul.f32 %v953_v24, %v953_v24 }
 0x1c3   :  { %v974_v28 = vmul.f32 0.03125, %v973_v26 }
 0x1c5   :  { %v976_v29 = vsub.f32 %v974_v28, %v975_v27 }
 0x1c7   :  { %v977_v30 = vadd.f32 1e-05, %v976_v29 }
 0x1c9   :  { %1456 = vrsqrt.f32 %v977_v30 }
 0x1d3   :  { %v1457_v31 = vpop.eup %1456 }
 0x1d4   :  { %v979_v32 = vmul.f32 %v1457_v31, %v1732_v14 }
 0x1d6   :  { %988 = vperm.xlu0 %1376, %v979_v32   ;;  %v980_v33 = vmul.f32 %v979_v32, %v953_v24 }
 0x1d8   :  { %982 = vrot.lane.b32.xlu1 %v980_v33, %s1465_s0 }
 0x1da   :  { %1380 = vset.pattern.permute.xlu0 %v1467_v63 }
 0x24a   :  { %v983_v34 = vpop.permute.xlu1 %982 }
 0x24b   :  { %v985_v35 = vsub.f32 %v1732_v14, %v983_v34 }
 0x24d   :  { %994 = vperm.xlu1 %1377, %v985_v35  }
 0x255   :  { %v989_v36 = vpop.permute.xlu0 %988 }
 0x256   :  { %v991_v37 = vmul.f32 %v989_v36, %v1748_v0  ;;  %v999_v38 = vmul.f32 %v989_v36, %v1755_v40  ;;  %v1002_v39 = vmul.f32 %v989_v36, %v706_v54  ;;  %v1005_v41 = vmul.f32 %v989_v36, %v931_v5 }
 0x257   :  { %v1466_v40 = vmov 3  }
 0x258   :  { %1378 = vset.pattern.permute.xlu1 %v1466_v40 }
 0x2cc   :  { %v995_v42 = vpop.permute.xlu1 %994 }
 0x2cd   :  { %v997_v43 = vadd.f32 %v995_v42, %v991_v37  ;;  %v1000_v44 = vadd.f32 %v999_v38, %v995_v42  ;;  %v1003_v45 = vadd.f32 %v1002_v39, %v995_v42  ;;  %v1006_v46 = vadd.f32 %v1005_v41, %v995_v42 }
 0x2cf   :  { %v998_v47 = vmax.f32 %v997_v43, 0.0  ;;  %v1001_v48 = vmax.f32 %v1000_v44, 0.0  ;;  %v1004_v49 = vmax.f32 %v1003_v45, 0.0  ;;  %v1007_v50 = vmax.f32 %v1006_v46, 0.0 }
 0x2d1   :  { %v1008_v51 = vmax.f32 %v998_v47, %v1001_v48  ;;  %v1009_v52 = vmax.f32 %v1004_v49, %v1007_v50 }
 0x2d3   :  { %v1010_v53 = vmax.f32 %v1008_v51, %v1009_v52 }
 0x2d5   :  { %v1011_v55 = vsel %vm936_vm2, %v1010_v53, 0.0  ;;  %v1015_v56 = vmul.f32 %v1010_v53, %v1010_v53 }
 0x2d6   :  { %1012 = vadd.xlane.f32.xlu1 %v1011_v55 }
 0x2d7   :  { %v1016_v0 = vsel %vm936_vm2, %v1015_v56, 0.0 }
 0x2d8   :  { %1017 = vadd.xlane.f32.xlu0 %v1016_v0 }
 0x363   :  { %v1013_v54 = vpop.xlane.xlu1 %1012 }
 0x364   :  { %v1014_v57 = vmul.f32 0.125, %v1013_v54 }
 0x365   :  { %v1018_v58 = vpop.xlane.xlu0 %1017 }
 0x366   :  { %v1020_v59 = vmul.f32 %v1014_v57, %v1014_v57  ;;  %v1019_v60 = vmul.f32 0.125, %v1018_v58 }
 0x368   :  { %v1021_v61 = vsub.f32 %v1019_v60, %v1020_v59 }
 0x36a   :  { %v1022_v62 = vadd.f32 1e-05, %v1021_v61 }
 0x36c   :  { %1458 = vrsqrt.f32 %v1022_v62 }
 0x376   :  { %v1459_v1 = vpop.eup %1458 }
 0x377   :  { %v1024_v2 = vmul.f32 %v1459_v1, %v1732_v14 }
 0x379   :  { %v1025_v3 = vmul.f32 %v1024_v2, %v1014_v57 }
 0x37b   :  { %1027 = vrot.lane.b32.xlu1 %v1025_v3, %s1465_s0 }
 0x37f   :  { %1033 = vperm.xlu1 %1378, %v1024_v2  }
 0x383   :  { %1379 = vset.pattern.permute.xlu1 %v1467_v63 }
 0x3ed   :  { %v1028_v4 = vpop.permute.xlu1 %1027 }
 0x3ee   :  { %v1030_v5 = vsub.f32 %v1732_v14, %v1028_v4 }
 0x3f0   :  { %1039 = vperm.xlu1 %1379, %v1030_v5  }
 0x3fe   :  { %v1034_v6 = vpop.permute.xlu1 %1033 }
 0x3ff   :  { %v1036_v7 = vmul.f32 %v1034_v6, %v1010_v53 }
 0x46f   :  { %v1040_v9 = vpop.permute.xlu1 %1039 }
 0x470   :  { %v1042_v10 = vadd.f32 %v1040_v9, %v1036_v7 }
 0x472   :  { %1043 = vst.msk [vmem:[%s1783_s3] sm:$0xff] %vm936_vm2, %v1042_v10 }

// kernel: model_heatmap_resnet_forward.13
= control target key start
LH: loop header
LB: loop body
LE: loop exit
PB: predicated region body
PF: predicated region fallthrough
CT: control target
= control target key end

     0   :  { %v194_v0 = vmov 0.0   ;;  %vm195_vm0 = vmmov 0   ;;  %v196_v2 = vmov 0   ;;  %vm65_vm1 = vcmask 1043456   ;;  %s255_s0 = inlined_call_operand.vmem [shape: bf16[72,8], index: 0, kind: input, shape index: {}]   ;;  %s256_s2 = inlined_call_operand.vmem [shape: f32[8,8], index: 2, kind: input, shape index: {}]   ;;  %s257_s1 = inlined_call_operand.vmem [shape: bf16[8,72], index: 1, kind: input, shape index: {}]   ;;  %s258_s3 = inlined_call_operand.vmem [shape: f32[8,8], index: 3, kind: input, shape index: {}]   ;;  %s259_s4 = inlined_call_operand.vmem [shape: f32[8,8], index: 4, kind: output, shape index: {}]  }
   0x1   :  { %163 = vmatprep.subr.bf16.mxu0 %v194_v0  ;;  %v187_v1 = vld [vmem:[%s255_s0] sm:$0xff]   ;;  %173 = vmatprep.mubr.msk.bf16.mxu0 %vm195_vm0, %v194_v0  ;;  %v188_v3 = vld [vmem:[%s255_s0 + $0x8] sm:$0xff]   ;;  %v189_v5 = vld [vmem:[%s255_s0 + $0x10] sm:$0xff]   ;;  %vm61_vm2 = vcmask 588800   ;;  %vm109_vm3 = vcmask 64512   ;;  %v197_v19 = vmov 1  }
   0x2   :  { %183 = vset.pattern.permute.xlu0 %v196_v2  ;;  %164 = vmatpush3.bf16.msra.mxu0 %v187_v1  ;;  %v18_v4 = vld [vmem:[%s256_s2] sm:$0xff]  ;;  %v190_v6 = vld [vmem:[%s255_s0 + $0x18] sm:$0xff]   ;;  %v198_v27 = vmov 2  }
   0x3   :  { %165 = vmatprep.subr.bf16.mxu0 %v194_v0  ;;  %31 = vperm.xlu0 %183, %v18_v4   ;;  %v191_v7 = vld [vmem:[%s255_s0 + $0x20] ss:$0 sps:$4 sm:$0xff]   ;;  %s199_s0 = smov 1  }
   0x4   :  { %v67_v8 = vsel %vm65_vm1, %v191_v7, 0  ;;  %v19_v9 = vld [vmem:[%s257_s1] sm:$0xf]  ;;  %184 = vset.pattern.permute.xlu1 %v197_v19 }
   0x5   :  { %v143_v37 = vld [vmem:[%s258_s3] sm:$0xff] }
   0x6   :  { %166 = vmatpush3.bf16.msra.mxu0 %v188_v3 }
   0x7   :  { %167 = vmatprep.subr.bf16.mxu0 %v194_v0  ;;  %186 = vset.pattern.permute.xlu0 %v198_v27 }
   0xa   :  { %168 = vmatpush3.bf16.msra.mxu0 %v189_v5 }
   0xb   :  { %169 = vmatprep.subr.bf16.mxu0 %v194_v0 }
   0xe   :  { %170 = vmatpush3.bf16.msra.mxu0 %v190_v6 }
   0xf   :  { %171 = vmatprep.subr.bf16.mxu0 %v194_v0 }
  0x12   :  { %172 = vmatpush3.bf16.msra.mxu0 %v67_v8 }
  0x15   :  { %174 = vmatmul.mubr.msk.bf16.vlgmr.msra.gmra.mrb[0].mxu0 %vm61_vm2, %v19_v9 }
  0x82   :  { %v32_v10 = vpop.permute.xlu0 %31 }
  0xe8   :  { %v103_v11 = vpop.f32.mrb[0].mxu0 }
  0xe9   :  { %v104_v12 = vadd.f32 %v103_v11, %v32_v10  ;;  %v175_v13 = vpop.f32.mrb[1].mxu0 }
  0xea   :  { %v106_v14 = vpop.f32.mrb[2].mxu0 }
  0xeb   :  { %v176_v15 = vpop.f32.mrb[3].mxu0  ;;  %v110_v16 = vsel %vm109_vm3, %v104_v12, 0.0  ;;  %v114_v17 = vmul.f32 %v104_v12, %v104_v12 }
  0xec   :  { %111 = vadd.xlane.f32.xlu0 %v110_v16 }
  0xed   :  { %v115_v18 = vsel %vm109_vm3, %v114_v17, 0.0 }
  0xee   :  { %116 = vadd.xlane.f32.xlu1 %v115_v18 }
 0x179   :  { %v112_v20 = vpop.xlane.xlu0 %111 }
 0x17a   :  { %v113_v21 = vmul.f32 0.125, %v112_v20 }
 0x17b   :  { %v117_v22 = vpop.xlane.xlu1 %116 }
 0x17c   :  { %v119_v23 = vmul.f32 %v113_v21, %v113_v21  ;;  %v118_v24 = vmul.f32 0.125, %v117_v22 }
 0x17e   :  { %v120_v25 = vsub.f32 %v118_v24, %v119_v23 }
 0x180   :  { %v121_v26 = vadd.f32 1e-05, %v120_v25 }
 0x182   :  { %192 = vrsqrt.f32 %v121_v26 }
 0x18c   :  { %v193_v28 = vpop.eup %192 }
 0x18d   :  { %v123_v29 = vmul.f32 %v193_v28, %v18_v4 }
 0x18f   :  { %v124_v30 = vmul.f32 %v123_v29, %v113_v21 }
 0x191   :  { %126 = vrot.lane.b32.xlu1 %v124_v30, %s199_s0 }
 0x195   :  { %132 = vperm.xlu1 %184, %v123_v29  }
 0x199   :  { %185 = vset.pattern.permute.xlu1 %v198_v27 }
 0x203   :  { %v127_v31 = vpop.permute.xlu1 %126 }
 0x204   :  { %v129_v32 = vsub.f32 %v18_v4, %v127_v31 }
 0x206   :  { %138 = vperm.xlu1 %185, %v129_v32  }
 0x214   :  { %v133_v33 = vpop.permute.xlu1 %132 }
 0x215   :  { %v135_v34 = vmul.f32 %v133_v33, %v104_v12 }
 0x285   :  { %v139_v35 = vpop.permute.xlu1 %138 }
 0x286   :  { %v141_v36 = vadd.f32 %v139_v35, %v135_v34 }
 0x288   :  { %v142_v38 = vmax.f32 %v141_v36, 0.0 }
 0x28a   :  { %v144_v39 = vadd.f32 %v143_v37, %v142_v38 }
 0x28c   :  { %v145_v40 = vmax.f32 %v144_v39, 0.0 }
 0x28e   :  { %146 = vst.msk [vmem:[%s259_s4] sm:$0xff] %vm109_vm3, %v145_v40 }

</bundles_post_ra>
